<compile_context>
chip_gen: v7x
topology: tpu7x:2x2x1
jax: 0.10.0
libtpu: 0.0.40
codegen_flags: <defaults>
</compile_context>

<pallas_src>
import math
import functools

import jax
import jax.numpy as jnp
from jax import lax
from jax.experimental import pallas as pl
from jax.experimental.pallas import tpu as pltpu


def _routing_kernel(x_ref, wdwc_ref, gamma_ref, beta_ref, wab_ref, bab_ref,
                    out_ref, *, H, W, C, OUT, proportion):
    BB = x_ref.shape[0]

    x = x_ref[...]                                    # (BB, H, W, C) f32
    wd = wdwc_ref[...]                                # (3, 3, C), read once

    # ---- W (sublane) shifts: built once, reused for all three dh taps ----
    zcol = jnp.zeros((BB, H, 1, C), jnp.float32)
    x_wm1 = jnp.concatenate([zcol, x[:, :, :W - 1, :]], axis=2)   # x[., w-1, .]
    x_wp1 = jnp.concatenate([x[:, :, 1:, :], zcol], axis=2)       # x[., w+1, .]
    taps_w = (x_wm1, x, x_wp1)                        # kw = 0, 1, 2

    # ---- depthwise 3x3 conv: dh shifts are major-dim concats (no relayout) --
    zrow = jnp.zeros((BB, 1, W, C), jnp.float32)
    acc = jnp.zeros((BB, H, W, C), jnp.float32)
    for kw in range(3):
        s = taps_w[kw]
        s_hm1 = jnp.concatenate([zrow, s[:, :H - 1]], axis=1)     # s[h-1]
        s_hp1 = jnp.concatenate([s[:, 1:], zrow], axis=1)         # s[h+1]
        acc = acc + s_hm1 * wd[0, kw] + s * wd[1, kw] + s_hp1 * wd[2, kw]

    # ---- LayerNorm over channels (two-pass variance), eps=1e-5, affine ----
    mu = jnp.mean(acc, axis=-1, keepdims=True)
    d = acc - mu
    var = jnp.mean(d * d, axis=-1, keepdims=True)
    y = d * lax.rsqrt(var + 1e-5)
    y = y * gamma_ref[0] + beta_ref[0]

    # ---- ReLU + global average pool over H, W -> (BB, C) ----
    y = jnp.maximum(y, 0.0)
    pooled = jnp.sum(jnp.sum(y, axis=1), axis=1) * (1.0 / (H * W))

    # ---- fused fc_alpha / fc_theta: one (BB, C) @ (C, 2*OUT) MXU matmul ----
    z = jnp.dot(pooled, wab_ref[...], preferred_element_type=jnp.float32)
    z = z + bab_ref[...]                              # theta half of bias = 0

    sig = 1.0 / (1.0 + jnp.exp(-z))                   # sigmoid  (alpha half)
    ssg = (z / (1.0 + jnp.abs(z))) * proportion       # softsign (theta half)
    lane = lax.broadcasted_iota(jnp.int32, z.shape, 1)
    out_ref[...] = jnp.where(lane < OUT, sig, ssg)    # single dense store


def _pick_batch_block(B, H, W, C):
    """One grid step per TensorCore, capped by a VMEM working-set budget."""
    kind = ""
    try:
        kind = jax.devices()[0].device_kind.lower()
    except Exception:
        pass
    # v7x has 2 TensorCores per chip; v5e / v6e have 1 -> fold the whole batch.
    n_cores = 2 if "7" in kind else 1

    per_image = 12 * H * W * C * 4       # x (dbl-buffered) + shifted copies + acc + LN temps
    cap = max(1, (20 << 20) // per_image)  # stay well under every chip's scoped VMEM

    target = B // n_cores if (n_cores > 1 and B % n_cores == 0) else B
    target = max(1, min(target, cap))
    bb = 1
    for dvs in range(1, target + 1):     # largest divisor of B not exceeding target
        if B % dvs == 0:
            bb = dvs
    return bb


def routing_function(x_nhwc, w_dwc, gamma, beta, w_alpha, b_alpha, w_theta,
                     proportion, *, batch_block=None):
    """x_nhwc: (B, H, W, C) float32.  Returns (alphas, angles): (B, OUT) each."""
    B, H, W, C = x_nhwc.shape
    OUT = w_alpha.shape[1]
    BB = _pick_batch_block(B, H, W, C) if batch_block is None else batch_block
    assert B % BB == 0, "batch_block must divide B"

    # Fuse the two tiny FC layers into one weight / bias (layout glue in JAX).
    w_both = jnp.concatenate([w_alpha, w_theta], axis=1)             # (C, 2*OUT)
    b_both = jnp.concatenate(
        [b_alpha, jnp.zeros((OUT,), b_alpha.dtype)]).reshape(1, 2 * OUT)
    gamma2 = gamma.reshape(1, C)
    beta2 = beta.reshape(1, C)

    kernel = functools.partial(_routing_kernel, H=H, W=W, C=C, OUT=OUT,
                               proportion=float(proportion))

    # Explicit, VMEM-aware scoped limit (v5e default is only 16 MiB; v7x has
    # 64 MiB physical) -- generous for the per-step working set, with headroom.
    vmem_limit = int(min(max(16 << 20, 24 * BB * H * W * C * 4), 40 << 20))

    fused = pl.pallas_call(
        kernel,
        out_shape=jax.ShapeDtypeStruct((B, 2 * OUT), jnp.float32),
        grid_spec=pltpu.PrefetchScalarGridSpec(
            num_scalar_prefetch=0,
            grid=(B // BB,),
            in_specs=[
                pl.BlockSpec((BB, H, W, C), lambda b: (b, 0, 0, 0)),
                pl.BlockSpec((3, 3, C), lambda b: (0, 0, 0)),
                pl.BlockSpec((1, C), lambda b: (0, 0)),
                pl.BlockSpec((1, C), lambda b: (0, 0)),
                pl.BlockSpec((C, 2 * OUT), lambda b: (0, 0)),
                pl.BlockSpec((1, 2 * OUT), lambda b: (0, 0)),
            ],
            out_specs=pl.BlockSpec((BB, 2 * OUT), lambda b: (b, 0)),
        ),
        compiler_params=pltpu.CompilerParams(
            dimension_semantics=("parallel",),
            vmem_limit_bytes=vmem_limit),
    )(x_nhwc, w_dwc, gamma2, beta2, w_both, b_both)

    return fused[:, :OUT], fused[:, OUT:]


def routing_function_ref(x_nhwc, w_dwc, gamma, beta, w_alpha, b_alpha,
                         w_theta, proportion):
    """Pure-JAX reference (independent conv path via lax.conv)."""
    B, H, W, C = x_nhwc.shape
    rhs = w_dwc.reshape(3, 3, 1, C)                  # depthwise: HWIO, groups=C
    y = lax.conv_general_dilated(
        x_nhwc, rhs, window_strides=(1, 1), padding=((1, 1), (1, 1)),
        dimension_numbers=('NHWC', 'HWIO', 'NHWC'), feature_group_count=C)
    mu = jnp.mean(y, axis=-1, keepdims=True)
    var = jnp.mean((y - mu) ** 2, axis=-1, keepdims=True)
    y = (y - mu) / jnp.sqrt(var + 1e-5) * gamma + beta
    y = jnp.maximum(y, 0.0)
    pooled = jnp.mean(y, axis=(1, 2))                                  # (B, C)
    alphas = jax.nn.sigmoid(pooled @ w_alpha + b_alpha)
    t = pooled @ w_theta
    angles = (t / (1.0 + jnp.abs(t))) * proportion
    return alphas, angles


if __name__ == "__main__":
    B, C, H, W = 2, 32, 16, 16          # in_channels = 32
    OUT = 8                             # out_channels (angle groups)
    proportion = 40.0 / 180.0 * math.pi

    key = jax.random.PRNGKey(0)
    kx, kd, ka, kb, kt = jax.random.split(key, 5)

    x = jax.random.normal(kx, (B, H, W, C), jnp.float32)

    # Deterministic synthetic parameters (trunc_normal(std=0.02) approximated
    # by a normal with std=0.02 -- synthetic weights, no checkpoint).
    w_dwc = 0.02 * jax.random.normal(kd, (3, 3, C), jnp.float32)     # depthwise
    gamma = jnp.ones((C,), jnp.float32)                              # LayerNorm
    beta = jnp.zeros((C,), jnp.float32)
    w_alpha = 0.02 * jax.random.normal(ka, (C, OUT), jnp.float32)    # fc_alpha.W^T
    b_alpha = 0.01 * jax.random.normal(kb, (OUT,), jnp.float32)      # fc_alpha.b
    w_theta = 0.02 * jax.random.normal(kt, (C, OUT), jnp.float32)    # fc_theta.W^T

    # TODO(synk): dropout layers are modeled in eval mode (identity); training-
    # mode stochastic dropout is not implemented in the kernel.

    alphas, angles = routing_function(x, w_dwc, gamma, beta, w_alpha, b_alpha,
                                      w_theta, proportion)
    jax.block_until_ready((alphas, angles))

    a_ref, t_ref = routing_function_ref(x, w_dwc, gamma, beta, w_alpha,
                                        b_alpha, w_theta, proportion)
    assert jnp.allclose(alphas, a_ref, atol=1e-4, rtol=1e-4), "alphas mismatch"
    assert jnp.allclose(angles, t_ref, atol=1e-4, rtol=1e-4), "angles mismatch"

    print("KERNEL_OK")
</pallas_src>

<mosaic_0001>
module attributes {stable_mosaic.version = 11 : i64} {
  func.func @_routing_kernel(%arg0: i32, %arg1: memref<2x16x16x32xf32, #tpu.memory_space<vmem>>, %arg2: memref<3x3x32xf32, #tpu.memory_space<vmem>>, %arg3: memref<1x32xf32, #tpu.memory_space<vmem>>, %arg4: memref<1x32xf32, #tpu.memory_space<vmem>>, %arg5: memref<32x16xf32, #tpu.memory_space<vmem>>, %arg6: memref<1x16xf32, #tpu.memory_space<vmem>>, %arg7: memref<2x16xf32, #tpu.memory_space<vmem>>) attributes {dimension_semantics = [#tpu.dimension_semantics<parallel>], iteration_bounds = array<i64: 1>, scalar_prefetch = 0 : i64, scratch_operands = 0 : i64, tpu.core_type = #tpu.core_type<tc>, window_params = [{transform_indices = @transform_0, window_bounds = array<i64: 2, 16, 16, 32>}, {pipeline_mode = #tpu.pipeline_mode<synchronous>, transform_indices = @transform_1, window_bounds = array<i64: 3, 3, 32>}, {pipeline_mode = #tpu.pipeline_mode<synchronous>, transform_indices = @transform_2, window_bounds = array<i64: 1, 32>}, {pipeline_mode = #tpu.pipeline_mode<synchronous>, transform_indices = @transform_3, window_bounds = array<i64: 1, 32>}, {pipeline_mode = #tpu.pipeline_mode<synchronous>, transform_indices = @transform_4, window_bounds = array<i64: 32, 16>}, {pipeline_mode = #tpu.pipeline_mode<synchronous>, transform_indices = @transform_5, window_bounds = array<i64: 1, 16>}, {transform_indices = @transform_6, window_bounds = array<i64: 2, 16>}]} {
    %c0 = arith.constant 0 : index
    %c0_0 = arith.constant 0 : index
    %c0_1 = arith.constant 0 : index
    %c0_2 = arith.constant 0 : index
    %0 = vector.load %arg1[%c0, %c0_0, %c0_1, %c0_2] : memref<2x16x16x32xf32, #tpu.memory_space<vmem>>, vector<2x16x16x32xf32>
    %c0_3 = arith.constant 0 : index
    %c0_4 = arith.constant 0 : index
    %c0_5 = arith.constant 0 : index
    %1 = vector.load %arg2[%c0_3, %c0_4, %c0_5] : memref<3x3x32xf32, #tpu.memory_space<vmem>>, vector<3x3x32xf32>
    %cst = arith.constant 0.000000e+00 : f32
    %2 = vector.broadcast %cst : f32 to vector<2x16x1x32xf32>
    %3 = vector.extract_strided_slice %0 {offsets = [0, 0, 0, 0], sizes = [2, 16, 15, 32], strides = [1, 1, 1, 1]} : vector<2x16x16x32xf32> to vector<2x16x15x32xf32>
    %4 = tpu.concatenate %2, %3 in 2 : vector<2x16x1x32xf32>, vector<2x16x15x32xf32> -> vector<2x16x16x32xf32>
    %5 = vector.extract_strided_slice %0 {offsets = [0, 0, 1, 0], sizes = [2, 16, 15, 32], strides = [1, 1, 1, 1]} : vector<2x16x16x32xf32> to vector<2x16x15x32xf32>
    %6 = tpu.concatenate %5, %2 in 2 : vector<2x16x15x32xf32>, vector<2x16x1x32xf32> -> vector<2x16x16x32xf32>
    %cst_6 = arith.constant 0.000000e+00 : f32
    %7 = vector.broadcast %cst_6 : f32 to vector<2x1x16x32xf32>
    %cst_7 = arith.constant 0.000000e+00 : f32
    %8 = vector.broadcast %cst_7 : f32 to vector<2x16x16x32xf32>
    %9 = vector.extract_strided_slice %4 {offsets = [0, 0, 0, 0], sizes = [2, 15, 16, 32], strides = [1, 1, 1, 1]} : vector<2x16x16x32xf32> to vector<2x15x16x32xf32>
    %10 = tpu.concatenate %7, %9 in 1 : vector<2x1x16x32xf32>, vector<2x15x16x32xf32> -> vector<2x16x16x32xf32>
    %11 = vector.extract_strided_slice %4 {offsets = [0, 1, 0, 0], sizes = [2, 15, 16, 32], strides = [1, 1, 1, 1]} : vector<2x16x16x32xf32> to vector<2x15x16x32xf32>
    %12 = tpu.concatenate %11, %7 in 1 : vector<2x15x16x32xf32>, vector<2x1x16x32xf32> -> vector<2x16x16x32xf32>
    %13 = vector.extract_strided_slice %1 {offsets = [0, 0, 0], sizes = [1, 1, 32], strides = [1, 1, 1]} : vector<3x3x32xf32> to vector<1x1x32xf32>
    %14 = vector.shape_cast %13 : vector<1x1x32xf32> to vector<32xf32>
    %15 = vector.shape_cast %14 : vector<32xf32> to vector<1x1x1x32xf32>
    %16 = vector.broadcast %15 : vector<1x1x1x32xf32> to vector<2x16x16x32xf32>
    %17 = arith.mulf %10, %16 : vector<2x16x16x32xf32>
    %18 = arith.addf %8, %17 : vector<2x16x16x32xf32>
    %19 = vector.extract_strided_slice %1 {offsets = [1, 0, 0], sizes = [1, 1, 32], strides = [1, 1, 1]} : vector<3x3x32xf32> to vector<1x1x32xf32>
    %20 = vector.shape_cast %19 : vector<1x1x32xf32> to vector<32xf32>
    %21 = vector.shape_cast %20 : vector<32xf32> to vector<1x1x1x32xf32>
    %22 = vector.broadcast %21 : vector<1x1x1x32xf32> to vector<2x16x16x32xf32>
    %23 = arith.mulf %4, %22 : vector<2x16x16x32xf32>
    %24 = arith.addf %18, %23 : vector<2x16x16x32xf32>
    %25 = vector.extract_strided_slice %1 {offsets = [2, 0, 0], sizes = [1, 1, 32], strides = [1, 1, 1]} : vector<3x3x32xf32> to vector<1x1x32xf32>
    %26 = vector.shape_cast %25 : vector<1x1x32xf32> to vector<32xf32>
    %27 = vector.shape_cast %26 : vector<32xf32> to vector<1x1x1x32xf32>
    %28 = vector.broadcast %27 : vector<1x1x1x32xf32> to vector<2x16x16x32xf32>
    %29 = arith.mulf %12, %28 : vector<2x16x16x32xf32>
    %30 = arith.addf %24, %29 : vector<2x16x16x32xf32>
    %31 = vector.extract_strided_slice %0 {offsets = [0, 0, 0, 0], sizes = [2, 15, 16, 32], strides = [1, 1, 1, 1]} : vector<2x16x16x32xf32> to vector<2x15x16x32xf32>
    %32 = tpu.concatenate %7, %31 in 1 : vector<2x1x16x32xf32>, vector<2x15x16x32xf32> -> vector<2x16x16x32xf32>
    %33 = vector.extract_strided_slice %0 {offsets = [0, 1, 0, 0], sizes = [2, 15, 16, 32], strides = [1, 1, 1, 1]} : vector<2x16x16x32xf32> to vector<2x15x16x32xf32>
    %34 = tpu.concatenate %33, %7 in 1 : vector<2x15x16x32xf32>, vector<2x1x16x32xf32> -> vector<2x16x16x32xf32>
    %35 = vector.extract_strided_slice %1 {offsets = [0, 1, 0], sizes = [1, 1, 32], strides = [1, 1, 1]} : vector<3x3x32xf32> to vector<1x1x32xf32>
    %36 = vector.shape_cast %35 : vector<1x1x32xf32> to vector<32xf32>
    %37 = vector.shape_cast %36 : vector<32xf32> to vector<1x1x1x32xf32>
    %38 = vector.broadcast %37 : vector<1x1x1x32xf32> to vector<2x16x16x32xf32>
    %39 = arith.mulf %32, %38 : vector<2x16x16x32xf32>
    %40 = arith.addf %30, %39 : vector<2x16x16x32xf32>
    %41 = vector.extract_strided_slice %1 {offsets = [1, 1, 0], sizes = [1, 1, 32], strides = [1, 1, 1]} : vector<3x3x32xf32> to vector<1x1x32xf32>
    %42 = vector.shape_cast %41 : vector<1x1x32xf32> to vector<32xf32>
    %43 = vector.shape_cast %42 : vector<32xf32> to vector<1x1x1x32xf32>
    %44 = vector.broadcast %43 : vector<1x1x1x32xf32> to vector<2x16x16x32xf32>
    %45 = arith.mulf %0, %44 : vector<2x16x16x32xf32>
    %46 = arith.addf %40, %45 : vector<2x16x16x32xf32>
    %47 = vector.extract_strided_slice %1 {offsets = [2, 1, 0], sizes = [1, 1, 32], strides = [1, 1, 1]} : vector<3x3x32xf32> to vector<1x1x32xf32>
    %48 = vector.shape_cast %47 : vector<1x1x32xf32> to vector<32xf32>
    %49 = vector.shape_cast %48 : vector<32xf32> to vector<1x1x1x32xf32>
    %50 = vector.broadcast %49 : vector<1x1x1x32xf32> to vector<2x16x16x32xf32>
    %51 = arith.mulf %34, %50 : vector<2x16x16x32xf32>
    %52 = arith.addf %46, %51 : vector<2x16x16x32xf32>
    %53 = vector.extract_strided_slice %6 {offsets = [0, 0, 0, 0], sizes = [2, 15, 16, 32], strides = [1, 1, 1, 1]} : vector<2x16x16x32xf32> to vector<2x15x16x32xf32>
    %54 = tpu.concatenate %7, %53 in 1 : vector<2x1x16x32xf32>, vector<2x15x16x32xf32> -> vector<2x16x16x32xf32>
    %55 = vector.extract_strided_slice %6 {offsets = [0, 1, 0, 0], sizes = [2, 15, 16, 32], strides = [1, 1, 1, 1]} : vector<2x16x16x32xf32> to vector<2x15x16x32xf32>
    %56 = tpu.concatenate %55, %7 in 1 : vector<2x15x16x32xf32>, vector<2x1x16x32xf32> -> vector<2x16x16x32xf32>
    %57 = vector.extract_strided_slice %1 {offsets = [0, 2, 0], sizes = [1, 1, 32], strides = [1, 1, 1]} : vector<3x3x32xf32> to vector<1x1x32xf32>
    %58 = vector.shape_cast %57 : vector<1x1x32xf32> to vector<32xf32>
    %59 = vector.shape_cast %58 : vector<32xf32> to vector<1x1x1x32xf32>
    %60 = vector.broadcast %59 : vector<1x1x1x32xf32> to vector<2x16x16x32xf32>
    %61 = arith.mulf %54, %60 : vector<2x16x16x32xf32>
    %62 = arith.addf %52, %61 : vector<2x16x16x32xf32>
    %63 = vector.extract_strided_slice %1 {offsets = [1, 2, 0], sizes = [1, 1, 32], strides = [1, 1, 1]} : vector<3x3x32xf32> to vector<1x1x32xf32>
    %64 = vector.shape_cast %63 : vector<1x1x32xf32> to vector<32xf32>
    %65 = vector.shape_cast %64 : vector<32xf32> to vector<1x1x1x32xf32>
    %66 = vector.broadcast %65 : vector<1x1x1x32xf32> to vector<2x16x16x32xf32>
    %67 = arith.mulf %6, %66 : vector<2x16x16x32xf32>
    %68 = arith.addf %62, %67 : vector<2x16x16x32xf32>
    %69 = vector.extract_strided_slice %1 {offsets = [2, 2, 0], sizes = [1, 1, 32], strides = [1, 1, 1]} : vector<3x3x32xf32> to vector<1x1x32xf32>
    %70 = vector.shape_cast %69 : vector<1x1x32xf32> to vector<32xf32>
    %71 = vector.shape_cast %70 : vector<32xf32> to vector<1x1x1x32xf32>
    %72 = vector.broadcast %71 : vector<1x1x1x32xf32> to vector<2x16x16x32xf32>
    %73 = arith.mulf %56, %72 : vector<2x16x16x32xf32>
    %74 = arith.addf %68, %73 : vector<2x16x16x32xf32>
    %cst_8 = arith.constant dense<0.000000e+00> : vector<2x16x16xf32>
    %75 = vector.multi_reduction <add>, %74, %cst_8 [3] : vector<2x16x16x32xf32> to vector<2x16x16xf32>
    %76 = vector.shape_cast %75 : vector<2x16x16xf32> to vector<2x16x16x1xf32>
    %cst_9 = arith.constant 3.200000e+01 : f32
    %77 = vector.broadcast %cst_9 : f32 to vector<2x16x16x1xf32>
    %78 = arith.divf %76, %77 : vector<2x16x16x1xf32>
    %79 = vector.broadcast %78 : vector<2x16x16x1xf32> to vector<2x16x16x32xf32>
    %80 = arith.subf %74, %79 : vector<2x16x16x32xf32>
    %81 = arith.mulf %80, %80 : vector<2x16x16x32xf32>
    %cst_10 = arith.constant dense<0.000000e+00> : vector<2x16x16xf32>
    %82 = vector.multi_reduction <add>, %81, %cst_10 [3] : vector<2x16x16x32xf32> to vector<2x16x16xf32>
    %83 = vector.shape_cast %82 : vector<2x16x16xf32> to vector<2x16x16x1xf32>
    %cst_11 = arith.constant 3.200000e+01 : f32
    %84 = vector.broadcast %cst_11 : f32 to vector<2x16x16x1xf32>
    %85 = arith.divf %83, %84 : vector<2x16x16x1xf32>
    %cst_12 = arith.constant 9.99999974E-6 : f32
    %86 = vector.broadcast %cst_12 : f32 to vector<2x16x16x1xf32>
    %87 = arith.addf %85, %86 : vector<2x16x16x1xf32>
    %88 = math.rsqrt %87 : vector<2x16x16x1xf32>
    %89 = vector.broadcast %88 : vector<2x16x16x1xf32> to vector<2x16x16x32xf32>
    %90 = arith.mulf %80, %89 : vector<2x16x16x32xf32>
    %c0_13 = arith.constant 0 : index
    %c0_14 = arith.constant 0 : index
    %91 = vector.load %arg3[%c0_13, %c0_14] : memref<1x32xf32, #tpu.memory_space<vmem>>, vector<1x32xf32>
    %92 = vector.shape_cast %91 : vector<1x32xf32> to vector<32xf32>
    %93 = vector.shape_cast %92 : vector<32xf32> to vector<1x1x1x32xf32>
    %94 = vector.broadcast %93 : vector<1x1x1x32xf32> to vector<2x16x16x32xf32>
    %95 = arith.mulf %90, %94 : vector<2x16x16x32xf32>
    %c0_15 = arith.constant 0 : index
    %c0_16 = arith.constant 0 : index
    %96 = vector.load %arg4[%c0_15, %c0_16] : memref<1x32xf32, #tpu.memory_space<vmem>>, vector<1x32xf32>
    %97 = vector.shape_cast %96 : vector<1x32xf32> to vector<32xf32>
    %98 = vector.shape_cast %97 : vector<32xf32> to vector<1x1x1x32xf32>
    %99 = vector.broadcast %98 : vector<1x1x1x32xf32> to vector<2x16x16x32xf32>
    %100 = arith.addf %95, %99 : vector<2x16x16x32xf32>
    %cst_17 = arith.constant 0.000000e+00 : f32
    %101 = vector.broadcast %cst_17 : f32 to vector<2x16x16x32xf32>
    %102 = arith.maximumf %100, %101 : vector<2x16x16x32xf32>
    %cst_18 = arith.constant dense<0.000000e+00> : vector<2x16x32xf32>
    %103 = vector.multi_reduction <add>, %102, %cst_18 [1] : vector<2x16x16x32xf32> to vector<2x16x32xf32>
    %cst_19 = arith.constant dense<0.000000e+00> : vector<2x32xf32>
    %104 = vector.multi_reduction <add>, %103, %cst_19 [1] : vector<2x16x32xf32> to vector<2x32xf32>
    %cst_20 = arith.constant 3.906250e-03 : f32
    %105 = vector.broadcast %cst_20 : f32 to vector<2x32xf32>
    %106 = arith.mulf %104, %105 : vector<2x32xf32>
    %c0_21 = arith.constant 0 : index
    %c0_22 = arith.constant 0 : index
    %107 = vector.load %arg5[%c0_21, %c0_22] : memref<32x16xf32, #tpu.memory_space<vmem>>, vector<32x16xf32>
    %cst_23 = arith.constant dense<0.000000e+00> : vector<2x16xf32>
    %108 = tpu.matmul %106, %107, %cst_23 {dimension_numbers = #tpu.dot_dimension_numbers<[1], [0], [0], [1], [0, 0, 1, 1], [], []>} : vector<2x32xf32>, vector<32x16xf32>, vector<2x16xf32> -> vector<2x16xf32>
    %c0_24 = arith.constant 0 : index
    %c0_25 = arith.constant 0 : index
    %109 = vector.load %arg6[%c0_24, %c0_25] : memref<1x16xf32, #tpu.memory_space<vmem>>, vector<1x16xf32>
    %110 = vector.broadcast %109 : vector<1x16xf32> to vector<2x16xf32>
    %111 = arith.addf %108, %110 : vector<2x16xf32>
    %cst_26 = arith.constant 0.000000e+00 : f32
    %112 = vector.broadcast %cst_26 : f32 to vector<2x16xf32>
    %113 = arith.subf %112, %111 : vector<2x16xf32>
    %114 = math.exp %113 : vector<2x16xf32>
    %cst_27 = arith.constant 1.000000e+00 : f32
    %115 = vector.broadcast %cst_27 : f32 to vector<2x16xf32>
    %116 = arith.addf %115, %114 : vector<2x16xf32>
    %cst_28 = arith.constant 1.000000e+00 : f32
    %117 = vector.broadcast %cst_28 : f32 to vector<2x16xf32>
    %118 = arith.divf %117, %116 : vector<2x16xf32>
    %119 = math.absf %111 : vector<2x16xf32>
    %cst_29 = arith.constant 1.000000e+00 : f32
    %120 = vector.broadcast %cst_29 : f32 to vector<2x16xf32>
    %121 = arith.addf %120, %119 : vector<2x16xf32>
    %122 = arith.divf %111, %121 : vector<2x16xf32>
    %cst_30 = arith.constant 0.69813168 : f32
    %123 = vector.broadcast %cst_30 : f32 to vector<2x16xf32>
    %124 = arith.mulf %122, %123 : vector<2x16xf32>
    %125 = tpu.iota {dimensions = array<i32: 1>} : vector<2x16xi32>
    %c8_i32 = arith.constant 8 : i32
    %126 = vector.broadcast %c8_i32 : i32 to vector<2x16xi32>
    %127 = arith.cmpi slt, %125, %126 : vector<2x16xi32>
    %128 = arith.select %127, %118, %124 : vector<2x16xi1>, vector<2x16xf32>
    %c0_31 = arith.constant 0 : index
    %c0_32 = arith.constant 0 : index
    %129 = vector.load %arg7[%c0_31, %c0_32] : memref<2x16xf32, #tpu.memory_space<vmem>>, vector<2x16xf32>
    tpu.vector_store %arg7[%c0_31, %c0_32], %128 {strides = array<i32>} : memref<2x16xf32, #tpu.memory_space<vmem>>, vector<2x16xf32>,
    return
  }
  func.func @transform_0(%arg0: i32) -> (i32, i32, i32, i32) {
    %c0_i32 = arith.constant 0 : i32
    %c0_i32_0 = arith.constant 0 : i32
    %c0_i32_1 = arith.constant 0 : i32
    %c0_i32_2 = arith.constant 0 : i32
    return %arg0, %c0_i32, %c0_i32_0, %c0_i32_1 : i32, i32, i32, i32
  }
  func.func @transform_1(%arg0: i32) -> (i32, i32, i32) {
    %c0_i32 = arith.constant 0 : i32
    %c0_i32_0 = arith.constant 0 : i32
    %c0_i32_1 = arith.constant 0 : i32
    %c0_i32_2 = arith.constant 0 : i32
    return %c0_i32, %c0_i32_0, %c0_i32_1 : i32, i32, i32
  }
  func.func @transform_2(%arg0: i32) -> (i32, i32) {
    %c0_i32 = arith.constant 0 : i32
    %c0_i32_0 = arith.constant 0 : i32
    %c0_i32_1 = arith.constant 0 : i32
    return %c0_i32, %c0_i32_0 : i32, i32
  }
  func.func @transform_3(%arg0: i32) -> (i32, i32) {
    %c0_i32 = arith.constant 0 : i32
    %c0_i32_0 = arith.constant 0 : i32
    %c0_i32_1 = arith.constant 0 : i32
    return %c0_i32, %c0_i32_0 : i32, i32
  }
  func.func @transform_4(%arg0: i32) -> (i32, i32) {
    %c0_i32 = arith.constant 0 : i32
    %c0_i32_0 = arith.constant 0 : i32
    %c0_i32_1 = arith.constant 0 : i32
    return %c0_i32, %c0_i32_0 : i32, i32
  }
  func.func @transform_5(%arg0: i32) -> (i32, i32) {
    %c0_i32 = arith.constant 0 : i32
    %c0_i32_0 = arith.constant 0 : i32
    %c0_i32_1 = arith.constant 0 : i32
    return %c0_i32, %c0_i32_0 : i32, i32
  }
  func.func @transform_6(%arg0: i32) -> (i32, i32) {
    %c0_i32 = arith.constant 0 : i32
    %c0_i32_0 = arith.constant 0 : i32
    return %arg0, %c0_i32 : i32, i32
  }
}

</mosaic_0001>

<bundles_post_ra>
// kernel: tpu_custom_call.1
= control target key start
LH: loop header
LB: loop body
LE: loop exit
PB: predicated region body
PF: predicated region fallthrough
CT: control target
= control target key end

     0   :  { %11 = vsyncpa [#allocation3], 0  ;;  %s6443_s0 = inlined_call_operand.hbm [shape: f32[2,16,16,32], index: 0, kind: input, shape index: {}]   ;;  %s6444_s1 = inlined_call_operand.vmem [shape: f32[3,3,32], index: 1, kind: input, shape index: {}]   ;;  %s6445_s2 = inlined_call_operand.vmem [shape: f32[1,32], index: 2, kind: input, shape index: {}]   ;;  %s6446_s3 = inlined_call_operand.vmem [shape: f32[1,32], index: 3, kind: input, shape index: {}]   ;;  %s6447_s4 = inlined_call_operand.vmem [shape: f32[32,16], index: 4, kind: input, shape index: {}]   ;;  %s6448_s5 = inlined_call_operand.vmem [shape: f32[1,16], index: 5, kind: input, shape index: {}]   ;;  %s6449_s6 = inlined_call_operand.hbm [shape: f32[2,16], index: 6, kind: output, shape index: {}]  }
   0x1   :  { %12 = vsyncpa [#allocation4], 0  ;;  %s3242_s21 = smov [#allocation2]   ;;  %s3194_s25 = scalar_lea.hbm %s6443_s0, 8192 }
   0x2   :  { %s18_s22 = sshll.u32 %s3242_s21, 4  ;;  %p3195_p0 = scmp.ne.s32.totalorder %s6443_s0, %s3194_s25  ;;  %s19_s22 = int_to_ptr.vmem [resolvable:$true] %s18_s22 }
   0x3   :  { %p3198_p1 = scmp.lt.u32.totalorder %s3194_s25, %s6443_s0 }
   0x5   :  { %p3200_p2 = pnand %p3198_p1, %p3195_p0 }
   0x7   :  { %3203 = shalt.err (!%p3200_p2)
}
   0x8   :  { %s3204_s30 = scalar_lea.vmem %s19_s22, 8192  ;;  %p3209_p4 = scmp.lt.s32.totalorder %s19_s22, %s19_s22 }
   0x9   :  { %p3205_p3 = scmp.ne.s32.totalorder %s19_s22, %s3204_s30  ;;  %p3210_p5 = scmp.lt.s32.totalorder %s3204_s30, %s3204_s30 }
   0xb   :  { %p3211_p6 = por %p3210_p5, %p3209_p4 }
   0xd   :  { %p3212_p7 = pnand %p3211_p6, %p3205_p3 }
   0xf   :  { %3215 = shalt.err (!%p3212_p7)
}
  0x10   :  { %s3243_s7 = smov 128   ;;  %s3244_s8 = smov 8  }
  0x11   :  { %24 = dma.hbm_to_vmem [thread:$0]  %s6443_s0, 8192, %s19_s22, [#allocation3], %s3243_s7, %s3243_s7, %s3244_s8  }
  0x12   :  { %3238 = dma.done.wait [#allocation3], 8192  }
  0x13   :  { %3239 = vsyncadd [#allocation3], 4294959104  ;;  %v6450_v0 = vlaneseq  ;;  %v3297_v2 = vld [vmem:[#allocation2] sm:$0xff]  ;;  %v3299_v3 = vld [vmem:[#allocation2 + $0x10] sm:$0xff]  ;;  %vm169_vm0 = vcmask 1040384   ;;  %vm362_vm1 = vcmask 1046528  }
  0x14   :  { %v102_v5 = vld [vmem:[%s6444_s1] sm:$0x7]  ;;  %v103_v6 = vld [vmem:[%s6444_s1 + $0x4] sm:$0x7]  ;;  %v170_v7 = vrot.slane %v3297_v2, 7  ;;  %v3308_v9 = vld [vmem:[#allocation2 + $0x8] sm:$0xff] }
  0x15   :  { %v556_v1 = vshrl.u32 %v6450_v0, 7  ;;  %v104_v10 = vld [vmem:[%s6444_s1 + $0x8] sm:$0x7]  ;;  %v173_v11 = vrot.slane %v3299_v3, 7  ;;  %v363_v13 = vrot.slane %v3297_v2, 1  ;;  %v364_v14 = vrot.slane %v3308_v9, 1 }
  0x16   :  { %v330_v12 = vsel %vm169_vm0, 0.0, %v170_v7  ;;  %v3317_v16 = vld [vmem:[#allocation2 + $0x18] sm:$0xff]  ;;  %v366_v21 = vrot.slane %v3299_v3, 1  ;;  %v3334_v25 = vld [vmem:[#allocation2 + $0x20] sm:$0xff]  ;;  %v171_v30 = vrot.slane %v3308_v9, 7  ;;  %v3363_v42 = vld [vmem:[#allocation2 + $0x28] sm:$0xff] }
  0x17   :  { %v557_v4 = vsub.s32 0, %v556_v1  ;;  %v944_v8 = vsub.s32 1, %v556_v1  ;;  %v1334_v15 = vsub.s32 2, %v556_v1  ;;  %v3320_v17 = vsel %vm169_vm0, 0.0, %v173_v11  ;;  %s3248_s30 = smov [#allocation5]  }
  0x18   :  { %v367_v22 = vrot.slane %v3317_v16, 1  ;;  %v174_v31 = vrot.slane %v3317_v16, 7  ;;  %v365_v32 = vsel %vm362_vm1, %v363_v13, %v364_v14  ;;  %v176_v37 = vrot.slane %v3334_v25, 7  ;;  %s3016_s7 = sshll.u32 %s3248_s30, 4  ;;  %s3017_s7 = int_to_ptr.vmem [resolvable:$true] %s3016_s7 }
  0x19   :  { %v3322_v18 = vrot.slane %v102_v5, %v557_v4  ;;  %v3324_v19 = vrot.slane %v103_v6, %v557_v4  ;;  %v3326_v20 = vrot.slane %v104_v10, %v557_v4  ;;  %v3330_v23 = vrot.slane %v102_v5, %v944_v8  ;;  %p3221_p9 = scmp.lt.s32.totalorder %s3017_s7, %s3017_s7 }
  0x1a   :  { %v3332_v24 = vrot.slane %v103_v6, %v944_v8  ;;  %v3342_v29 = vrot.slane %v104_v10, %v944_v8  ;;  %v3347_v33 = vrot.slane %v102_v5, %v1334_v15  ;;  %v3353_v36 = vrot.slane %v103_v6, %v1334_v15  ;;  %v3404_v5 = vld [vmem:[#allocation2 + $0x100] sm:$0xff] }
  0x1b   :  { %v3337_v26 = vmul.f32 0.0, %v3322_v18  ;;  %v685_v27 = vmul.f32 %v3324_v19, %v330_v12  ;;  %v817_v28 = vmul.f32 %v3326_v20, %v3320_v17  ;;  %v3351_v35 = vmul.f32 0.0, %v3330_v23 }
  0x1c   :  { %v368_v38 = vsel %vm362_vm1, %v366_v21, %v367_v22  ;;  %v1075_v39 = vmul.f32 %v3332_v24, %v3297_v2  ;;  %v1207_v40 = vmul.f32 %v3342_v29, %v3299_v3  ;;  %v3361_v41 = vrot.slane %v104_v10, %v1334_v15 }
  0x1d   :  { %v749_v34 = vadd.f32 %v685_v27, %v3337_v26  ;;  %v3366_v44 = vmul.f32 0.0, %v3347_v33  ;;  %v3371_v45 = vsel %vm169_vm0, 0.0, %v176_v37  ;;  %v369_v46 = vrot.slane %v3334_v25, 1 }
  0x1e   :  { %v370_v47 = vrot.slane %v3363_v42, 1  ;;  %v560_v48 = vmul.f32 %v3322_v18, %v330_v12  ;;  %v687_v49 = vmul.f32 %v3324_v19, %v3320_v17  ;;  %v819_v50 = vmul.f32 %v3326_v20, %v3371_v45  ;;  %v3413_v12 = vld [vmem:[#allocation2 + $0x110] sm:$0xff] }
  0x1f   :  { %v878_v43 = vadd.f32 %v817_v28, %v749_v34  ;;  %v3382_v52 = vmul.f32 %v3347_v33, %v368_v38  ;;  %v1465_v53 = vmul.f32 %v3353_v36, %v365_v32  ;;  %v177_v54 = vrot.slane %v3363_v42, 7 }
  0x20   :  { %v1597_v55 = vmul.f32 %v3361_v41, %v368_v38  ;;  %vm1722_vm2 = vcmask 261120   ;;  %v751_v56 = vadd.f32 %v687_v49, %v560_v48  ;;  %v947_v57 = vmul.f32 %v3330_v23, %v3297_v2 }
  0x21   :  { %v1007_v51 = vadd.f32 %v3351_v35, %v878_v43  ;;  %v1077_v58 = vmul.f32 %v3332_v24, %v3299_v3  ;;  %v3394_v60 = vsel %vm362_vm1, %v369_v46, %v370_v47  ;;  %v1209_v61 = vmul.f32 %v3342_v29, %v3334_v25  ;;  %v3434_v43 = vld [vmem:[#allocation2 + $0x118] sm:$0xff] }
  0x22   :  { %v172_v62 = vsel %vm169_vm0, %v170_v7, %v171_v30  ;;  %v880_v63 = vadd.f32 %v819_v50, %v751_v56  ;;  %v1337_v1 = vmul.f32 %v3347_v33, %v365_v32  ;;  %v1467_v4 = vmul.f32 %v3353_v36, %v368_v38  ;;  %v3430_v38 = vld [vmem:[#allocation2 + $0x108] sm:$0xff] }
  0x23   :  { %v1139_v59 = vadd.f32 %v1075_v39, %v1007_v51  ;;  %v3402_v2 = vsel %vm169_vm0, %v173_v11, %v174_v31  ;;  %v3408_v8 = vmul.f32 %v3347_v33, %v3394_v60  ;;  %v686_v10 = vmul.f32 %v3324_v19, %v172_v62 }
  0x24   :  { %v818_v7 = vmul.f32 %v3326_v20, %v3402_v2  ;;  %v1009_v13 = vadd.f32 %v947_v57, %v880_v63  ;;  %v1599_v15 = vmul.f32 %v3361_v41, %v3394_v60  ;;  %v3418_v11 = vsel %vm362_vm1, %v364_v14, 0.0 }
  0x25   :  { %v1268_v6 = vadd.f32 %v1207_v40, %v1139_v59  ;;  %v3421_v21 = vsel %vm362_vm1, %v367_v22, 0.0  ;;  %v750_v28 = vadd.f32 %v686_v10, %v3337_v26  ;;  %v1076_v30 = vmul.f32 %v3332_v24, %v3308_v9 }
  0x26   :  { %v218_v31 = vrot.slane %v3404_v5, 7  ;;  %v1141_v32 = vadd.f32 %v1077_v58, %v1009_v13  ;;  %v1208_v34 = vmul.f32 %v3342_v29, %v3317_v16  ;;  %v221_v14 = vrot.slane %v3413_v12, 7 }
  0x27   :  { %v1397_v27 = vadd.f32 %v3366_v44, %v1268_v6  ;;  %v411_v22 = vrot.slane %v3404_v5, 1  ;;  %v879_v40 = vadd.f32 %v818_v7, %v750_v28  ;;  %v6452_v48 = vrot.slane %v3430_v38, 1 }
  0x28   :  { %v346_v46 = vsel %vm169_vm0, 0.0, %v218_v31  ;;  %v1270_v49 = vadd.f32 %v1209_v61, %v1141_v32  ;;  %v3443_v50 = vsel %vm169_vm0, 0.0, %v221_v14  ;;  %v414_v51 = vrot.slane %v3413_v12, 1 }
  0x29   :  { %v1529_v39 = vadd.f32 %v1465_v53, %v1397_v27  ;;  %v6451_v56 = vrot.slane %v3434_v43, 1  ;;  %v1008_v57 = vadd.f32 %v3351_v35, %v879_v40  ;;  %v717_v58 = vmul.f32 %v3324_v19, %v346_v46 }
  0x2a   :  { %v848_v59 = vmul.f32 %v3326_v20, %v3443_v50  ;;  %v1399_v63 = vadd.f32 %v1337_v1, %v1270_v49  ;;  %v1466_v61 = vmul.f32 %v3353_v36, %v3418_v11  ;;  %v1598_v6 = vmul.f32 %v3361_v41, %v3421_v21 }
  0x2b   :  { %v3447_v53 = vadd.f32 %v1597_v55, %v1529_v39  ;;  %v219_v10 = vrot.slane %v3430_v38, 7  ;;  %v1140_v7 = vadd.f32 %v1076_v30, %v1008_v57  ;;  %v413_v13 = vsel %vm362_vm1, %v411_v22, %v6452_v48 }
  0x2c   :  { %v781_v27 = vadd.f32 %v717_v58, %v3337_v26  ;;  %v1531_v1 = vadd.f32 %v1467_v4, %v1399_v63  ;;  %v3467_v28 = vsel %vm362_vm1, %v414_v51, %v6451_v56  ;;  %v1107_v32 = vmul.f32 %v3332_v24, %v3404_v5  ;;  %v3486_v63 = vld [vmem:[#allocation2 + $0x120] sm:$0xff] }
  0x2d   :  { %v1723_v55 = vsel %vm1722_vm2, %v3447_v53, 0.0  ;;  %v3474_v30 = vsel %vm169_vm0, %v176_v37, %v177_v54  ;;  %v1269_v39 = vadd.f32 %v1208_v34, %v1140_v7  ;;  %v561_v22 = vmul.f32 %v3322_v18, %v172_v62 }
  0x2e   :  { %1724 = vadd.xlane.f32.xlu0 %v1723_v55  ;;  %v910_v40 = vadd.f32 %v848_v59, %v781_v27  ;;  %v688_v4 = vmul.f32 %v3324_v19, %v3402_v2  ;;  %v3479_v49 = vadd.f32 %v1599_v15, %v1531_v1  ;;  %v1238_v51 = vmul.f32 %v3342_v29, %v3413_v12 }
  0x2f   :  { %v1497_v57 = vmul.f32 %v3353_v36, %v413_v13  ;;  %v820_v58 = vmul.f32 %v3326_v20, %v3474_v30  ;;  %v1398_v37 = vadd.f32 %v3366_v44, %v1269_v39  ;;  %v948_v34 = vmul.f32 %v3330_v23, %v3308_v9 }
  0x30   :  { %6576 = vst [vmem:[#allocation8_spill] sm:$0xff] %v3479_v49  ;;  %v1039_v54 = vadd.f32 %v3351_v35, %v910_v40  ;;  %v752_v62 = vadd.f32 %v688_v4, %v561_v22  ;;  %v1729_v15 = vsel %vm1722_vm2, %v3479_v49, 0.0  ;;  %v3497_v59 = vsel %vm362_vm1, %v370_v47, 0.0  ;;  %v3503_v40 = vld [vmem:[#allocation2 + $0x128] sm:$0xff] }
  0x31   :  { %v1078_v55 = vmul.f32 %v3332_v24, %v3317_v16  ;;  %v1210_v7 = vmul.f32 %v3342_v29, %v3363_v42  ;;  %1730 = vadd.xlane.f32.xlu1 %v1729_v15  ;;  %v1530_v27 = vadd.f32 %v1466_v61, %v1398_v37  ;;  %v224_v9 = vrot.slane %v3486_v63, 7 }
  0x32   :  { %v1171_v1 = vadd.f32 %v1107_v32, %v1039_v54  ;;  %v881_v39 = vadd.f32 %v820_v58, %v752_v62  ;;  %v417_v22 = vrot.slane %v3486_v63, 1  ;;  %v6454_v4 = vrot.slane %v3503_v40, 1 }
  0x33   :  { %v590_v47 = vmul.f32 %v3322_v18, %v346_v46  ;;  %v719_v0 = vmul.f32 %v3324_v19, %v3443_v50  ;;  %v3511_v56 = vadd.f32 %v1598_v6, %v1530_v27  ;;  %v3516_v61 = vsel %vm169_vm0, 0.0, %v224_v9 }
  0x34   :  { %v1300_v48 = vadd.f32 %v1238_v51, %v1171_v1  ;;  %v1010_v15 = vadd.f32 %v948_v34, %v881_v39  ;;  %v1628_v32 = vmul.f32 %v3361_v41, %v3467_v28  ;;  %v850_v37 = vmul.f32 %v3326_v20, %v3516_v61 }
  0x35   :  { %6577 = vst [vmem:[#allocation9_spill] sm:$0xff] %v3511_v56  ;;  %v783_v58 = vadd.f32 %v719_v0, %v590_v47  ;;  %v977_v46 = vmul.f32 %v3330_v23, %v3404_v5  ;;  %v1726_v6 = vsel %vm1722_vm2, %v3511_v56, 0.0  ;;  %v1338_v62 = vmul.f32 %v3347_v33, %v3418_v11 }
  0x36   :  { %v1429_v51 = vadd.f32 %v3366_v44, %v1300_v48  ;;  %v1142_v54 = vadd.f32 %v1078_v55, %v1010_v15  ;;  %1727 = vadd.xlane.f32.xlu0 %v1726_v6  ;;  %v1468_v34 = vmul.f32 %v3353_v36, %v3421_v21  ;;  %v1600_v0 = vmul.f32 %v3361_v41, %v3497_v59 }
  0x37   :  { %v912_v27 = vadd.f32 %v850_v37, %v783_v58  ;;  %v1109_v1 = vmul.f32 %v3332_v24, %v3413_v12  ;;  %v3538_v48 = vsel %vm362_vm1, %v417_v22, %v6454_v4  ;;  %v220_v11 = vsel %vm169_vm0, %v218_v31, %v219_v10 }
  0x38   :  { %v1561_v39 = vadd.f32 %v1497_v57, %v1429_v51  ;;  %v1271_v47 = vadd.f32 %v1210_v7, %v1142_v54  ;;  %v1240_v15 = vmul.f32 %v3342_v29, %v3486_v63  ;;  %v1367_v58 = vmul.f32 %v3347_v33, %v413_v13  ;;  %v3552_v51 = vld [vmem:[#allocation2 + $0x30] sm:$0xff] }
  0x39   :  { %v1041_v55 = vadd.f32 %v977_v46, %v912_v27  ;;  %v222_v37 = vrot.slane %v3434_v43, 7  ;;  %v1499_v7 = vmul.f32 %v3353_v36, %v3467_v28  ;;  %v718_v22 = vmul.f32 %v3324_v19, %v220_v11 }
  0x3a   :  { %v3547_v6 = vadd.f32 %v1628_v32, %v1561_v39  ;;  %v1400_v57 = vadd.f32 %v1338_v62, %v1271_v47  ;;  %v1630_v31 = vmul.f32 %v3361_v41, %v3538_v48  ;;  %v6579_v13 = vrot.slane %v3430_v38, 1  ;;  %v3573_v39 = vld [vmem:[#allocation2 + $0x38] sm:$0xff] }
  0x3b   :  { %v1173_v5 = vadd.f32 %v1109_v1, %v1041_v55  ;;  %v3559_v10 = vsel %vm169_vm0, %v221_v14, %v222_v37  ;;  %v782_v62 = vadd.f32 %v718_v22, %v3337_v26  ;;  %v1108_v14 = vmul.f32 %v3332_v24, %v3430_v38 }
  0x3c   :  { %6578 = vst [vmem:[#allocation10_spill] sm:$0xff] %v3547_v6  ;;  %v3564_v32 = vsel %vm362_vm1, %v6579_v13, 0.0  ;;  %v1819_v46 = vsel %vm1722_vm2, %v3547_v6, 0.0  ;;  %v1532_v54 = vadd.f32 %v1468_v34, %v1400_v57  ;;  %v849_v27 = vmul.f32 %v3326_v20, %v3559_v10 }
  0x3d   :  { %1820 = vadd.xlane.f32.xlu0 %v1819_v46  ;;  %v1302_v1 = vadd.f32 %v1240_v15, %v1173_v5  ;;  %v6453_v47 = vrot.slane %v3552_v51, 7  ;;  %v372_v55 = vrot.slane %v3552_v51, 1  ;;  %v6455_v34 = vrot.slane %v3573_v39, 1 }
  0x3e   :  { %v3577_v37 = vadd.f32 %v1600_v0, %v1532_v54  ;;  %v911_v13 = vadd.f32 %v849_v27, %v782_v62  ;;  %v562_v26 = vmul.f32 %v3322_v18, %v3320_v17  ;;  %v6581_v15 = vrot.slane %v3434_v43, 1 }
  0x3f   :  { %v1431_v57 = vadd.f32 %v1367_v58, %v1302_v1  ;;  %v3590_v5 = vsel %vm169_vm0, 0.0, %v6453_v47  ;;  %v689_v0 = vmul.f32 %v3324_v19, %v3371_v45  ;;  %v1239_v17 = vmul.f32 %v3342_v29, %v3434_v43 }
  0x40   :  { %6580 = vst [vmem:[#allocation11_spill] sm:$0xff] %v3577_v37  ;;  %v3585_v22 = vsel %vm362_vm1, %v6581_v15, 0.0  ;;  %v1732_v46 = vsel %vm1722_vm2, %v3577_v37, 0.0  ;;  %v1040_v54 = vadd.f32 %v3351_v35, %v911_v13  ;;  %v821_v58 = vmul.f32 %v3326_v20, %v3590_v5 }
  0x41   :  { %1733 = vadd.xlane.f32.xlu1 %v1732_v46  ;;  %v1563_v62 = vadd.f32 %v1499_v7, %v1431_v57  ;;  %v1498_v27 = vmul.f32 %v3353_v36, %v3564_v32  ;;  %v753_v1 = vadd.f32 %v689_v0, %v562_v26  ;;  %v949_v15 = vmul.f32 %v3330_v23, %v3299_v3 }
  0x42   :  { %v1172_v47 = vadd.f32 %v1108_v14, %v1040_v54  ;;  %v1629_v4 = vmul.f32 %v3361_v41, %v3585_v22  ;;  %v3610_v35 = vsel %vm362_vm1, %v372_v55, %v6455_v34  ;;  %v225_v13 = vrot.slane %v3503_v40, 7 }
  0x43   :  { %v3613_v46 = vadd.f32 %v1630_v31, %v1563_v62  ;;  %v882_v7 = vadd.f32 %v821_v58, %v753_v1  ;;  %v1079_v26 = vmul.f32 %v3332_v24, %v3334_v25  ;;  %v591_v57 = vmul.f32 %v3322_v18, %v220_v11  ;;  %v3627_v31 = vld [vmem:[#allocation2 + $0x130] sm:$0xff] }
  0x44   :  { %v1301_v3 = vadd.f32 %v1239_v17, %v1172_v47  ;;  %v1211_v14 = vmul.f32 %v3342_v29, %v3552_v51  ;;  %v3623_v0 = vsel %vm169_vm0, %v224_v9, %v225_v13  ;;  %v720_v55 = vmul.f32 %v3324_v19, %v3559_v10 }
  0x45   :  { %6582 = vst [vmem:[#allocation12_spill] sm:$0xff] %v3613_v46  ;;  %v1825_v54 = vsel %vm1722_vm2, %v3613_v46, 0.0  ;;  %v1011_v58 = vadd.f32 %v949_v15, %v882_v7  ;;  %v1469_v11 = vmul.f32 %v3353_v36, %v3394_v60  ;;  %v851_v47 = vmul.f32 %v3326_v20, %v3623_v0  ;;  %v3647_v7 = vld [vmem:[#allocation2 + $0x138] sm:$0xff] }
  0x46   :  { %1826 = vadd.xlane.f32.xlu0 %v1825_v54  ;;  %v1430_v17 = vadd.f32 %v3366_v44, %v1301_v3  ;;  %v1601_v9 = vmul.f32 %v3361_v41, %v3610_v35  ;;  %v784_v62 = vadd.f32 %v720_v55, %v591_v57  ;;  %v978_v1 = vmul.f32 %v3330_v23, %v3430_v38 }
  0x47   :  { %v1143_v13 = vadd.f32 %v1079_v26, %v1011_v58  ;;  %v6583_v34 = vrot.slane %v3503_v40, 1  ;;  %v1110_v60 = vmul.f32 %v3332_v24, %v3434_v43  ;;  %v6457_v44 = vrot.slane %v3627_v31, 7 }
  0x48   :  { %v1562_v3 = vadd.f32 %v1498_v27, %v1430_v17  ;;  %v913_v54 = vadd.f32 %v851_v47, %v784_v62  ;;  %v420_v57 = vrot.slane %v3627_v31, 1  ;;  %v6458_v55 = vrot.slane %v3647_v7, 1 }
  0x49   :  { %v3643_v15 = vsel %vm362_vm1, %v6583_v34, 0.0  ;;  %v1272_v38 = vadd.f32 %v1211_v14, %v1143_v13  ;;  %v3655_v26 = vsel %vm169_vm0, 0.0, %v6457_v44  ;;  %v592_v34 = vmul.f32 %v3322_v18, %v3443_v50 }
  0x4a   :  { %v721_v58 = vmul.f32 %v3324_v19, %v3516_v61  ;;  %v3661_v46 = vadd.f32 %v1629_v4, %v1562_v3  ;;  %v1042_v27 = vadd.f32 %v978_v1, %v913_v54  ;;  %v1241_v47 = vmul.f32 %v3342_v29, %v3503_v40 }
  0x4b   :  { %v852_v14 = vmul.f32 %v3326_v20, %v3655_v26  ;;  %v1401_v17 = vadd.f32 %v3382_v52, %v1272_v38  ;;  %v1368_v62 = vmul.f32 %v3347_v33, %v3564_v32  ;;  %v979_v50 = vmul.f32 %v3330_v23, %v3413_v12 }
  0x4c   :  { %6584 = vst [vmem:[#allocation13_spill] sm:$0xff] %v3661_v46  ;;  %v785_v13 = vadd.f32 %v721_v58, %v592_v34  ;;  %v1822_v4 = vsel %vm1722_vm2, %v3661_v46, 0.0  ;;  %v1174_v3 = vadd.f32 %v1110_v60, %v1042_v27  ;;  %v1500_v1 = vmul.f32 %v3353_v36, %v3585_v22 }
  0x4d   :  { %v1631_v54 = vmul.f32 %v3361_v41, %v3643_v15  ;;  %1823 = vadd.xlane.f32.xlu1 %v1822_v4  ;;  %v1533_v44 = vadd.f32 %v1469_v11, %v1401_v17  ;;  %v3681_v52 = vsel %vm362_vm1, %v420_v57, %v6458_v55  ;;  %v1111_v12 = vmul.f32 %v3332_v24, %v3486_v63 }
  0x4e   :  { %v914_v32 = vadd.f32 %v852_v14, %v785_v13  ;;  %v1303_v38 = vadd.f32 %v1241_v47, %v1174_v3  ;;  %v1242_v60 = vmul.f32 %v3342_v29, %v3627_v31  ;;  %v180_v34 = vrot.slane %v3573_v39, 7 }
  0x4f   :  { %v563_v58 = vmul.f32 %v3322_v18, %v3402_v2  ;;  %v3690_v27 = vadd.f32 %v1601_v9, %v1533_v44  ;;  %v1369_v57 = vmul.f32 %v3347_v33, %v3467_v28  ;;  %v690_v14 = vmul.f32 %v3324_v19, %v3474_v30  ;;  %v3705_v9 = vld [vmem:[#allocation2 + $0x40] sm:$0xff] }
  0x50   :  { %v1043_v11 = vadd.f32 %v979_v50, %v914_v32  ;;  %v1432_v17 = vadd.f32 %v1368_v62, %v1303_v38  ;;  %v1501_v47 = vmul.f32 %v3353_v36, %v3538_v48  ;;  %v6586_v13 = vrot.slane %v3552_v51, 7 }
  0x51   :  { %6585 = vst [vmem:[#allocation14_spill] sm:$0xff] %v3690_v27  ;;  %v950_v2 = vmul.f32 %v3330_v23, %v3317_v16  ;;  %v1735_v28 = vsel %vm1722_vm2, %v3690_v27, 0.0  ;;  %v754_v50 = vadd.f32 %v690_v14, %v563_v58  ;;  %v1632_v32 = vmul.f32 %v3361_v41, %v3681_v52 }
  0x52   :  { %v3701_v4 = vsel %vm169_vm0, %v6586_v13, %v180_v34  ;;  %v1175_v44 = vadd.f32 %v1111_v12, %v1043_v11  ;;  %1736 = vadd.xlane.f32.xlu0 %v1735_v28  ;;  %v1564_v3 = vadd.f32 %v1500_v1, %v1432_v17  ;;  %v6587_v38 = vrot.slane %v3573_v39, 1  ;;  %v3725_v1 = vld [vmem:[#allocation2 + $0x48] sm:$0xff] }
  0x53   :  { %v822_v62 = vmul.f32 %v3326_v20, %v3701_v4  ;;  %v1080_v16 = vmul.f32 %v3332_v24, %v3363_v42  ;;  %v1212_v12 = vmul.f32 %v3342_v29, %v3573_v39  ;;  %v6459_v58 = vrot.slane %v3705_v9, 7 }
  0x54   :  { %v3716_v34 = vsel %vm362_vm1, %v6587_v38, 0.0  ;;  %v1304_v13 = vadd.f32 %v1242_v60, %v1175_v44  ;;  %v3723_v11 = vadd.f32 %v1631_v54, %v1564_v3  ;;  %v375_v14 = vrot.slane %v3705_v9, 1 }
  0x55   :  { %v883_v55 = vadd.f32 %v822_v62, %v754_v50  ;;  %v564_v17 = vmul.f32 %v3322_v18, %v3371_v45  ;;  %v691_v28 = vmul.f32 %v3324_v19, %v3590_v5  ;;  %v3735_v44 = vsel %vm169_vm0, 0.0, %v6459_v58 }
  0x56   :  { %6588 = vst [vmem:[#allocation15_spill] sm:$0xff] %v3723_v11  ;;  %v1433_v38 = vadd.f32 %v1369_v57, %v1304_v13  ;;  %v1828_v50 = vsel %vm1722_vm2, %v3723_v11, 0.0  ;;  %v823_v3 = vmul.f32 %v3326_v20, %v3735_v44  ;;  %v951_v45 = vmul.f32 %v3330_v23, %v3334_v25 }
  0x57   :  { %v1012_v60 = vadd.f32 %v950_v2, %v883_v55  ;;  %v755_v62 = vadd.f32 %v691_v28, %v564_v17  ;;  %1829 = vadd.xlane.f32.xlu1 %v1828_v50  ;;  %v1340_v2 = vmul.f32 %v3347_v33, %v3421_v21  ;;  %v1470_v13 = vmul.f32 %v3353_v36, %v3497_v59 }
  0x58   :  { %v1565_v57 = vadd.f32 %v1501_v47, %v1433_v38  ;;  %v1602_v58 = vmul.f32 %v3361_v41, %v3716_v34  ;;  %v1081_v17 = vmul.f32 %v3332_v24, %v3552_v51  ;;  %v228_v28 = vrot.slane %v3647_v7, 7 }
  0x59   :  { %v1144_v55 = vadd.f32 %v1080_v16, %v1012_v60  ;;  %v884_v54 = vadd.f32 %v823_v3, %v755_v62  ;;  %v6590_v47 = vrot.slane %v3725_v1, 1  ;;  %v593_v21 = vmul.f32 %v3322_v18, %v3559_v10 }
  0x5a   :  { %v3753_v11 = vadd.f32 %v1632_v32, %v1565_v57  ;;  %v1213_v60 = vmul.f32 %v3342_v29, %v3705_v9  ;;  %v6591_v50 = vrot.slane %v3627_v31, 7  ;;  %v722_v32 = vmul.f32 %v3324_v19, %v3623_v0 }
  0x5b   :  { %v1273_v25 = vadd.f32 %v1212_v12, %v1144_v55  ;;  %v3758_v16 = vsel %vm362_vm1, %v375_v14, %v6590_v47  ;;  %v1013_v38 = vadd.f32 %v951_v45, %v884_v54  ;;  %v3771_v12 = vld [vmem:[#allocation2 + $0x140] sm:$0xff]  ;;  %v1471_v10 = vmul.f32 %v3353_v36, %v3610_v35 }
  0x5c   :  { %6589 = vst [vmem:[#allocation16_spill] sm:$0xff] %v3753_v11  ;;  %v3767_v62 = vsel %vm169_vm0, %v6591_v50, %v228_v28  ;;  %v1831_v14 = vsel %vm1722_vm2, %v3753_v11, 0.0  ;;  %v1603_v57 = vmul.f32 %v3361_v41, %v3758_v16  ;;  %v786_v55 = vadd.f32 %v722_v32, %v593_v21  ;;  %v3790_v11 = vld [vmem:[#allocation2 + $0x148] sm:$0xff] }
  0x5d   :  { %v1402_v3 = vadd.f32 %v1340_v2, %v1273_v25  ;;  %v853_v54 = vmul.f32 %v3326_v20, %v3767_v62  ;;  %1832 = vadd.xlane.f32.xlu0 %v1831_v14  ;;  %v1145_v45 = vadd.f32 %v1081_v17, %v1013_v38  ;;  %v980_v28 = vmul.f32 %v3330_v23, %v3434_v43 }
  0x5e   :  { %v6592_v50 = vrot.slane %v3647_v7, 1  ;;  %v1112_v25 = vmul.f32 %v3332_v24, %v3503_v40  ;;  %v6462_v17 = vrot.slane %v3771_v12, 7  ;;  %v423_v21 = vrot.slane %v3771_v12, 1 }
  0x5f   :  { %v1534_v47 = vadd.f32 %v1470_v13, %v1402_v3  ;;  %v1274_v38 = vadd.f32 %v1213_v60, %v1145_v45  ;;  %v915_v14 = vadd.f32 %v853_v54, %v786_v55  ;;  %v594_v3 = vmul.f32 %v3322_v18, %v3516_v61 }
  0x60   :  { %v3786_v2 = vsel %vm362_vm1, %v6592_v50, 0.0  ;;  %v3800_v13 = vsel %vm169_vm0, 0.0, %v6462_v17  ;;  %v723_v50 = vmul.f32 %v3324_v19, %v3655_v26  ;;  %v1243_v45 = vmul.f32 %v3342_v29, %v3647_v7 }
  0x61   :  { %v3795_v43 = vadd.f32 %v1602_v58, %v1534_v47  ;;  %v1403_v60 = vadd.f32 %v3408_v8, %v1274_v38  ;;  %v1044_v54 = vadd.f32 %v980_v28, %v915_v14  ;;  %v854_v58 = vmul.f32 %v3326_v20, %v3800_v13 }
  0x62   :  { %v1370_v47 = vmul.f32 %v3347_v33, %v3585_v22  ;;  %v787_v17 = vadd.f32 %v723_v50, %v594_v3  ;;  %v981_v61 = vmul.f32 %v3330_v23, %v3486_v63  ;;  %v1502_v28 = vmul.f32 %v3353_v36, %v3643_v15 }
  0x63   :  { %6593 = vst [vmem:[#allocation17_spill] sm:$0xff] %v3795_v43  ;;  %v1738_v55 = vsel %vm1722_vm2, %v3795_v43, 0.0  ;;  %v1535_v32 = vadd.f32 %v1471_v10, %v1403_v60  ;;  %v1176_v8 = vadd.f32 %v1112_v25, %v1044_v54  ;;  %v1633_v38 = vmul.f32 %v3361_v41, %v3786_v2 }
  0x64   :  { %1739 = vadd.xlane.f32.xlu1 %v1738_v55  ;;  %v6594_v14 = vrot.slane %v3790_v11, 1  ;;  %v916_v27 = vadd.f32 %v854_v58, %v787_v17  ;;  %v1113_v22 = vmul.f32 %v3332_v24, %v3627_v31  ;;  %v183_v63 = vrot.slane %v3725_v1, 7 }
  0x65   :  { %v3829_v3 = vadd.f32 %v1603_v57, %v1535_v32  ;;  %v1305_v10 = vadd.f32 %v1243_v45, %v1176_v8  ;;  %v1244_v25 = vmul.f32 %v3342_v29, %v3771_v12  ;;  %v565_v50 = vmul.f32 %v3322_v18, %v3474_v30  ;;  %v3844_v32 = vld [vmem:[#allocation2 + $0x50] sm:$0xff] }
  0x66   :  { %v3824_v43 = vsel %vm362_vm1, %v423_v21, %v6594_v14  ;;  %v1045_v60 = vadd.f32 %v981_v61, %v916_v27  ;;  %v1371_v21 = vmul.f32 %v3347_v33, %v3538_v48  ;;  %v6596_v17 = vrot.slane %v3705_v9, 7 }
  0x67   :  { %6595 = vst [vmem:[#allocation18_spill] sm:$0xff] %v3829_v3  ;;  %v692_v57 = vmul.f32 %v3324_v19, %v3701_v4  ;;  %v1741_v45 = vsel %vm1722_vm2, %v3829_v3, 0.0  ;;  %v1434_v58 = vadd.f32 %v1370_v47, %v1305_v10  ;;  %v1503_v30 = vmul.f32 %v3353_v36, %v3681_v52 }
  0x68   :  { %v3840_v54 = vsel %vm169_vm0, %v6596_v17, %v183_v63  ;;  %1742 = vadd.xlane.f32.xlu0 %v1741_v45  ;;  %v1177_v27 = vadd.f32 %v1113_v22, %v1045_v60  ;;  %v1634_v55 = vmul.f32 %v3361_v41, %v3824_v43  ;;  %v952_v8 = vmul.f32 %v3330_v23, %v3363_v42  ;;  %v3863_v17 = vld [vmem:[#allocation2 + $0x58] sm:$0xff] }
  0x69   :  { %v824_v48 = vmul.f32 %v3326_v20, %v3840_v54  ;;  %v756_v61 = vadd.f32 %v692_v57, %v565_v50  ;;  %v1566_v14 = vadd.f32 %v1502_v28, %v1434_v58  ;;  %v6597_v63 = vrot.slane %v3725_v1, 1 }
  0x6a   :  { %v1082_v10 = vmul.f32 %v3332_v24, %v3573_v39  ;;  %v6466_v22 = vrot.slane %v3844_v32, 7  ;;  %v1306_v60 = vadd.f32 %v1244_v25, %v1177_v27  ;;  %v378_v50 = vrot.slane %v3844_v32, 1 }
  0x6b   :  { %v3859_v47 = vsel %vm362_vm1, %v6597_v63, 0.0  ;;  %v885_v45 = vadd.f32 %v824_v48, %v756_v61  ;;  %v6468_v57 = vrot.slane %v3863_v17, 1  ;;  %v3868_v42 = vadd.f32 %v1633_v38, %v1566_v14 }
  0x6c   :  { %v3873_v28 = vsel %vm169_vm0, 0.0, %v6466_v22  ;;  %v566_v58 = vmul.f32 %v3322_v18, %v3590_v5  ;;  %v693_v63 = vmul.f32 %v3324_v19, %v3735_v44  ;;  %v1435_v3 = vadd.f32 %v1371_v21, %v1306_v60 }
  0x6d   :  { %6598 = vst [vmem:[#allocation19_spill] sm:$0xff] %v3868_v42  ;;  %v1014_v25 = vadd.f32 %v952_v8, %v885_v45  ;;  %v1214_v48 = vmul.f32 %v3342_v29, %v3725_v1  ;;  %v825_v38 = vmul.f32 %v3326_v20, %v3873_v28  ;;  %v1834_v27 = vsel %vm1722_vm2, %v3868_v42, 0.0 }
  0x6e   :  { %v1342_v61 = vmul.f32 %v3347_v33, %v3497_v59  ;;  %v757_v14 = vadd.f32 %v693_v63, %v566_v58  ;;  %v953_v5 = vmul.f32 %v3330_v23, %v3552_v51  ;;  %1835 = vadd.xlane.f32.xlu1 %v1834_v27  ;;  %v1567_v22 = vadd.f32 %v1503_v30, %v1435_v3 }
  0x6f   :  { %v1146_v21 = vadd.f32 %v1082_v10, %v1014_v25  ;;  %v1472_v8 = vmul.f32 %v3353_v36, %v3716_v34  ;;  %v1604_v60 = vmul.f32 %v3361_v41, %v3859_v47  ;;  %v3896_v45 = vsel %vm362_vm1, %v378_v50, %v6468_v57  ;;  %v3935_v57 = vld [vmem:[#allocation2 + $0x158] sm:$0xff] }
  0x70   :  { %v886_v42 = vadd.f32 %v825_v38, %v757_v14  ;;  %v1083_v59 = vmul.f32 %v3332_v24, %v3705_v9  ;;  %v231_v51 = vrot.slane %v3790_v11, 7  ;;  %v3901_v58 = vadd.f32 %v1634_v55, %v1567_v22  ;;  %v3916_v22 = vld [vmem:[#allocation2 + $0x150] sm:$0xff] }
  0x71   :  { %v1275_v3 = vadd.f32 %v1214_v48, %v1146_v21  ;;  %v1215_v30 = vmul.f32 %v3342_v29, %v3844_v32  ;;  %v595_v10 = vmul.f32 %v3322_v18, %v3623_v0  ;;  %v1343_v50 = vmul.f32 %v3347_v33, %v3610_v35 }
  0x72   :  { %6599 = vst [vmem:[#allocation20_spill] sm:$0xff] %v3901_v58  ;;  %v1015_v63 = vadd.f32 %v953_v5, %v886_v42  ;;  %v6600_v25 = vrot.slane %v3771_v12, 7  ;;  %v724_v55 = vmul.f32 %v3324_v19, %v3767_v62  ;;  %v1837_v48 = vsel %vm1722_vm2, %v3901_v58, 0.0 }
  0x73   :  { %v1404_v27 = vadd.f32 %v1342_v61, %v1275_v3  ;;  %v1473_v0 = vmul.f32 %v3353_v36, %v3758_v16  ;;  %1838 = vadd.xlane.f32.xlu0 %v1837_v48  ;;  %v1605_v14 = vmul.f32 %v3361_v41, %v3896_v45  ;;  %v982_v21 = vmul.f32 %v3330_v23, %v3503_v40 }
  0x74   :  { %v3912_v38 = vsel %vm169_vm0, %v6600_v25, %v231_v51  ;;  %v1147_v42 = vadd.f32 %v1083_v59, %v1015_v63  ;;  %v788_v5 = vadd.f32 %v724_v55, %v595_v10  ;;  %v6601_v25 = vrot.slane %v3790_v11, 1 }
  0x75   :  { %v855_v35 = vmul.f32 %v3326_v20, %v3912_v38  ;;  %v1536_v51 = vadd.f32 %v1472_v8, %v1404_v27  ;;  %v1114_v3 = vmul.f32 %v3332_v24, %v3647_v7  ;;  %v6470_v59 = vrot.slane %v3916_v22, 7 }
  0x76   :  { %v3931_v61 = vsel %vm362_vm1, %v6601_v25, 0.0  ;;  %v1276_v63 = vadd.f32 %v1215_v30, %v1147_v42  ;;  %v426_v10 = vrot.slane %v3916_v22, 1  ;;  %v6472_v55 = vrot.slane %v3935_v57, 1 }
  0x77   :  { %v917_v48 = vadd.f32 %v855_v35, %v788_v5  ;;  %v3940_v40 = vadd.f32 %v1604_v60, %v1536_v51  ;;  %v3945_v8 = vsel %vm169_vm0, 0.0, %v6470_v59  ;;  %v596_v27 = vmul.f32 %v3322_v18, %v3655_v26 }
  0x78   :  { %v725_v25 = vmul.f32 %v3324_v19, %v3800_v13  ;;  %v1405_v58 = vadd.f32 %v1343_v50, %v1276_v63  ;;  %v1245_v35 = vmul.f32 %v3342_v29, %v3790_v11  ;;  %v856_v60 = vmul.f32 %v3326_v20, %v3945_v8 }
  0x79   :  { %6602 = vst [vmem:[#allocation21_spill] sm:$0xff] %v3940_v40  ;;  %v1046_v30 = vadd.f32 %v982_v21, %v917_v48  ;;  %v1744_v42 = vsel %vm1722_vm2, %v3940_v40, 0.0  ;;  %v1372_v5 = vmul.f32 %v3347_v33, %v3643_v15  ;;  %v983_v26 = vmul.f32 %v3330_v23, %v3627_v31 }
  0x7a   :  { %v789_v51 = vadd.f32 %v725_v25, %v596_v27  ;;  %1745 = vadd.xlane.f32.xlu1 %v1744_v42  ;;  %v1537_v59 = vadd.f32 %v1473_v0, %v1405_v58  ;;  %v1504_v21 = vmul.f32 %v3353_v36, %v3786_v2  ;;  %v1635_v63 = vmul.f32 %v3361_v41, %v3931_v61 }
  0x7b   :  { %v1178_v50 = vadd.f32 %v1114_v3, %v1046_v30  ;;  %v3968_v48 = vsel %vm362_vm1, %v426_v10, %v6472_v55  ;;  %v1115_v15 = vmul.f32 %v3332_v24, %v3771_v12  ;;  %v186_v31 = vrot.slane %v3863_v17, 7  ;;  %v4007_v55 = vld [vmem:[#allocation2 + $0x68] sm:$0xff] }
  0x7c   :  { %v918_v40 = vadd.f32 %v856_v60, %v789_v51  ;;  %v3973_v27 = vadd.f32 %v1605_v14, %v1537_v59  ;;  %v1246_v0 = vmul.f32 %v3342_v29, %v3916_v22  ;;  %v567_v3 = vmul.f32 %v3322_v18, %v3701_v4  ;;  %v3988_v59 = vld [vmem:[#allocation2 + $0x60] sm:$0xff] }
  0x7d   :  { %v1307_v58 = vadd.f32 %v1245_v35, %v1178_v50  ;;  %v1373_v10 = vmul.f32 %v3347_v33, %v3681_v52  ;;  %v6604_v30 = vrot.slane %v3844_v32, 7  ;;  %v694_v14 = vmul.f32 %v3324_v19, %v3840_v54 }
  0x7e   :  { %6603 = vst [vmem:[#allocation22_spill] sm:$0xff] %v3973_v27  ;;  %v1047_v25 = vadd.f32 %v983_v26, %v918_v40  ;;  %v1747_v35 = vsel %vm1722_vm2, %v3973_v27, 0.0  ;;  %v1505_v4 = vmul.f32 %v3353_v36, %v3824_v43  ;;  %v1636_v51 = vmul.f32 %v3361_v41, %v3968_v48 }
  0x7f   :  { %v3984_v60 = vsel %vm169_vm0, %v6604_v30, %v186_v31  ;;  %v1436_v42 = vadd.f32 %v1372_v5, %v1307_v58  ;;  %1748 = vadd.xlane.f32.xlu0 %v1747_v35  ;;  %v758_v26 = vadd.f32 %v694_v14, %v567_v3  ;;  %v954_v50 = vmul.f32 %v3330_v23, %v3573_v39 }
  0x80   :  { %v826_v52 = vmul.f32 %v3326_v20, %v3984_v60  ;;  %v1179_v40 = vadd.f32 %v1115_v15, %v1047_v25  ;;  %v6605_v30 = vrot.slane %v3863_v17, 1  ;;  %v1084_v58 = vmul.f32 %v3332_v24, %v3725_v1 }
  0x81   :  { %v1568_v31 = vadd.f32 %v1504_v21, %v1436_v42  ;;  %v6474_v15 = vrot.slane %v3988_v59, 7  ;;  %v381_v3 = vrot.slane %v3988_v59, 1  ;;  %v6476_v14 = vrot.slane %v4007_v55, 1 }
  0x82   :  { %v4003_v5 = vsel %vm362_vm1, %v6605_v30, 0.0  ;;  %v1308_v25 = vadd.f32 %v1246_v0, %v1179_v40  ;;  %v887_v35 = vadd.f32 %v826_v52, %v758_v26  ;;  %v568_v42 = vmul.f32 %v3322_v18, %v3735_v44 }
  0x83   :  { %v4012_v39 = vadd.f32 %v1635_v63, %v1568_v31  ;;  %v4017_v21 = vsel %vm169_vm0, 0.0, %v6474_v15  ;;  %v695_v30 = vmul.f32 %v3324_v19, %v3873_v28  ;;  %v1216_v52 = vmul.f32 %v3342_v29, %v3863_v17 }
  0x84   :  { %v1437_v27 = vadd.f32 %v1373_v10, %v1308_v25  ;;  %v1016_v0 = vadd.f32 %v954_v50, %v887_v35  ;;  %v827_v63 = vmul.f32 %v3326_v20, %v4017_v21  ;;  %v1344_v26 = vmul.f32 %v3347_v33, %v3716_v34 }
  0x85   :  { %6606 = vst [vmem:[#allocation23_spill] sm:$0xff] %v4012_v39  ;;  %v1840_v40 = vsel %vm1722_vm2, %v4012_v39, 0.0  ;;  %v759_v31 = vadd.f32 %v695_v30, %v568_v42  ;;  %v955_v44 = vmul.f32 %v3330_v23, %v3705_v9  ;;  %v1474_v50 = vmul.f32 %v3353_v36, %v3859_v47 }
  0x86   :  { %1841 = vadd.xlane.f32.xlu1 %v1840_v40  ;;  %v1569_v15 = vadd.f32 %v1505_v4, %v1437_v27  ;;  %v1148_v10 = vadd.f32 %v1084_v58, %v1016_v0  ;;  %v1606_v25 = vmul.f32 %v3361_v41, %v4003_v5  ;;  %v4040_v35 = vsel %vm362_vm1, %v381_v3, %v6476_v14  ;;  %v4079_v14 = vld [vmem:[#allocation2 + $0x168] sm:$0xff] }
  0x87   :  { %v888_v39 = vadd.f32 %v827_v63, %v759_v31  ;;  %v1085_v34 = vmul.f32 %v3332_v24, %v3844_v32  ;;  %v234_v9 = vrot.slane %v3935_v57, 7  ;;  %v1217_v4 = vmul.f32 %v3342_v29, %v3988_v59 }
  0x88   :  { %v4045_v42 = vadd.f32 %v1636_v51, %v1569_v15  ;;  %v1277_v27 = vadd.f32 %v1216_v52, %v1148_v10  ;;  %v597_v58 = vmul.f32 %v3322_v18, %v3767_v62  ;;  %v1345_v3 = vmul.f32 %v3347_v33, %v3758_v16  ;;  %v4060_v15 = vld [vmem:[#allocation2 + $0x160] sm:$0xff] }
  0x89   :  { %v1017_v30 = vadd.f32 %v955_v44, %v888_v39  ;;  %v6608_v0 = vrot.slane %v3916_v22, 7  ;;  %v726_v51 = vmul.f32 %v3324_v19, %v3912_v38  ;;  %v1475_v62 = vmul.f32 %v3353_v36, %v3896_v45 }
  0x8a   :  { %6607 = vst [vmem:[#allocation24_spill] sm:$0xff] %v4045_v42  ;;  %v1843_v52 = vsel %vm1722_vm2, %v4045_v42, 0.0  ;;  %v1406_v40 = vadd.f32 %v1344_v26, %v1277_v27  ;;  %v1607_v31 = vmul.f32 %v3361_v41, %v4040_v35  ;;  %v984_v10 = vmul.f32 %v3330_v23, %v3647_v7 }
  0x8b   :  { %v4056_v63 = vsel %vm169_vm0, %v6608_v0, %v234_v9  ;;  %1844 = vadd.xlane.f32.xlu0 %v1843_v52  ;;  %v1149_v39 = vadd.f32 %v1085_v34, %v1017_v30  ;;  %v790_v44 = vadd.f32 %v726_v51, %v597_v58  ;;  %v6609_v0 = vrot.slane %v3935_v57, 1 }
  0x8c   :  { %v857_v16 = vmul.f32 %v3326_v20, %v4056_v63  ;;  %v1538_v9 = vadd.f32 %v1474_v50, %v1406_v40  ;;  %v1116_v27 = vmul.f32 %v3332_v24, %v3790_v11  ;;  %v6478_v34 = vrot.slane %v4060_v15, 7 }
  0x8d   :  { %v4075_v26 = vsel %vm362_vm1, %v6609_v0, 0.0  ;;  %v1278_v30 = vadd.f32 %v1217_v4, %v1149_v39  ;;  %v429_v58 = vrot.slane %v4060_v15, 1  ;;  %v6480_v51 = vrot.slane %v4079_v14, 1 }
  0x8e   :  { %v919_v52 = vadd.f32 %v857_v16, %v790_v44  ;;  %v4084_v7 = vadd.f32 %v1606_v25, %v1538_v9  ;;  %v4089_v50 = vsel %vm169_vm0, 0.0, %v6478_v34  ;;  %v598_v40 = vmul.f32 %v3322_v18, %v3800_v13 }
  0x8f   :  { %v727_v0 = vmul.f32 %v3324_v19, %v3945_v8  ;;  %v1407_v42 = vadd.f32 %v1345_v3, %v1278_v30  ;;  %v1247_v16 = vmul.f32 %v3342_v29, %v3935_v57  ;;  %v858_v25 = vmul.f32 %v3326_v20, %v4089_v50 }
  0x90   :  { %6610 = vst [vmem:[#allocation25_spill] sm:$0xff] %v4084_v7  ;;  %v1048_v4 = vadd.f32 %v984_v10, %v919_v52  ;;  %v1750_v39 = vsel %vm1722_vm2, %v4084_v7, 0.0  ;;  %v1374_v44 = vmul.f32 %v3347_v33, %v3786_v2  ;;  %v985_v13 = vmul.f32 %v3330_v23, %v3771_v12 }
  0x91   :  { %v791_v9 = vadd.f32 %v727_v0, %v598_v40  ;;  %1751 = vadd.xlane.f32.xlu1 %v1750_v39  ;;  %v1539_v34 = vadd.f32 %v1475_v62, %v1407_v42  ;;  %v1506_v10 = vmul.f32 %v3353_v36, %v3931_v61  ;;  %v1637_v30 = vmul.f32 %v3361_v41, %v4075_v26 }
  0x92   :  { %v1180_v3 = vadd.f32 %v1116_v27, %v1048_v4  ;;  %v4112_v52 = vsel %vm362_vm1, %v429_v58, %v6480_v51  ;;  %v1117_v2 = vmul.f32 %v3332_v24, %v3916_v22  ;;  %v189_v12 = vrot.slane %v4007_v55, 7  ;;  %v4151_v51 = vld [vmem:[#allocation2 + $0x78] sm:$0xff] }
  0x93   :  { %v920_v7 = vadd.f32 %v858_v25, %v791_v9  ;;  %v4117_v40 = vadd.f32 %v1607_v31, %v1539_v34  ;;  %v1248_v62 = vmul.f32 %v3342_v29, %v4060_v15  ;;  %v569_v27 = vmul.f32 %v3322_v18, %v3840_v54  ;;  %v4132_v34 = vld [vmem:[#allocation2 + $0x70] sm:$0xff] }
  0x94   :  { %v1309_v42 = vadd.f32 %v1247_v16, %v1180_v3  ;;  %v1375_v58 = vmul.f32 %v3347_v33, %v3824_v43  ;;  %v6612_v4 = vrot.slane %v3988_v59, 7  ;;  %v696_v31 = vmul.f32 %v3324_v19, %v3984_v60 }
  0x95   :  { %6611 = vst [vmem:[#allocation26_spill] sm:$0xff] %v4117_v40  ;;  %v1049_v0 = vadd.f32 %v985_v13, %v920_v7  ;;  %v1753_v16 = vsel %vm1722_vm2, %v4117_v40, 0.0  ;;  %v1507_v54 = vmul.f32 %v3353_v36, %v3968_v48  ;;  %v1638_v9 = vmul.f32 %v3361_v41, %v4112_v52 }
  0x96   :  { %v4128_v25 = vsel %vm169_vm0, %v6612_v4, %v189_v12  ;;  %v1438_v39 = vadd.f32 %v1374_v44, %v1309_v42  ;;  %1754 = vadd.xlane.f32.xlu0 %v1753_v16  ;;  %v760_v13 = vadd.f32 %v696_v31, %v569_v27  ;;  %v956_v3 = vmul.f32 %v3330_v23, %v3725_v1 }
  0x97   :  { %v828_v43 = vmul.f32 %v3326_v20, %v4128_v25  ;;  %v1181_v7 = vadd.f32 %v1117_v2, %v1049_v0  ;;  %v6613_v4 = vrot.slane %v4007_v55, 1  ;;  %v1086_v42 = vmul.f32 %v3332_v24, %v3863_v17 }
  0x98   :  { %v1570_v12 = vadd.f32 %v1506_v10, %v1438_v39  ;;  %v6482_v2 = vrot.slane %v4132_v34, 7  ;;  %v384_v27 = vrot.slane %v4132_v34, 1  ;;  %v6484_v31 = vrot.slane %v4151_v51, 1 }
  0x99   :  { %v4147_v44 = vsel %vm362_vm1, %v6613_v4, 0.0  ;;  %v1310_v0 = vadd.f32 %v1248_v62, %v1181_v7  ;;  %v889_v16 = vadd.f32 %v828_v43, %v760_v13  ;;  %v570_v39 = vmul.f32 %v3322_v18, %v3873_v28 }
  0x9a   :  { %v4156_v1 = vadd.f32 %v1637_v30, %v1570_v12  ;;  %v4161_v10 = vsel %vm169_vm0, 0.0, %v6482_v2  ;;  %v697_v4 = vmul.f32 %v3324_v19, %v4017_v21  ;;  %v1218_v43 = vmul.f32 %v3342_v29, %v4007_v55 }
  0x9b   :  { %v1439_v40 = vadd.f32 %v1375_v58, %v1310_v0  ;;  %v1018_v62 = vadd.f32 %v956_v3, %v889_v16  ;;  %v829_v30 = vmul.f32 %v3326_v20, %v4161_v10  ;;  %v1346_v13 = vmul.f32 %v3347_v33, %v3859_v47 }
  0x9c   :  { %6614 = vst [vmem:[#allocation27_spill] sm:$0xff] %v4156_v1  ;;  %v1846_v7 = vsel %vm1722_vm2, %v4156_v1, 0.0  ;;  %v761_v12 = vadd.f32 %v697_v4, %v570_v39  ;;  %v957_v28 = vmul.f32 %v3330_v23, %v3844_v32  ;;  %v1476_v3 = vmul.f32 %v3353_v36, %v4003_v5 }
  0x9d   :  { %1847 = vadd.xlane.f32.xlu1 %v1846_v7  ;;  %v1571_v2 = vadd.f32 %v1507_v54, %v1439_v40  ;;  %v1150_v58 = vadd.f32 %v1086_v42, %v1018_v62  ;;  %v1608_v0 = vmul.f32 %v3361_v41, %v4147_v44  ;;  %v4184_v16 = vsel %vm362_vm1, %v384_v27, %v6484_v31  ;;  %v4223_v31 = vld [vmem:[#allocation2 + $0x178] sm:$0xff] }
  0x9e   :  { %v890_v1 = vadd.f32 %v829_v30, %v761_v12  ;;  %v1087_v47 = vmul.f32 %v3332_v24, %v3988_v59  ;;  %v237_v32 = vrot.slane %v4079_v14, 7  ;;  %v1219_v54 = vmul.f32 %v3342_v29, %v4132_v34 }
  0x9f   :  { %v4189_v39 = vadd.f32 %v1638_v9, %v1571_v2  ;;  %v1279_v40 = vadd.f32 %v1218_v43, %v1150_v58  ;;  %v599_v42 = vmul.f32 %v3322_v18, %v3912_v38  ;;  %v1347_v27 = vmul.f32 %v3347_v33, %v3896_v45  ;;  %v4204_v2 = vld [vmem:[#allocation2 + $0x170] sm:$0xff] }
  0xa0   :  { %v1019_v4 = vadd.f32 %v957_v28, %v890_v1  ;;  %v6616_v62 = vrot.slane %v4060_v15, 7  ;;  %v728_v9 = vmul.f32 %v3324_v19, %v4056_v63  ;;  %v1477_v38 = vmul.f32 %v3353_v36, %v4040_v35 }
  0xa1   :  { %6615 = vst [vmem:[#allocation28_spill] sm:$0xff] %v4189_v39  ;;  %v1849_v43 = vsel %vm1722_vm2, %v4189_v39, 0.0  ;;  %v1408_v7 = vadd.f32 %v1346_v13, %v1279_v40  ;;  %v1609_v12 = vmul.f32 %v3361_v41, %v4184_v16  ;;  %v986_v58 = vmul.f32 %v3330_v23, %v3790_v11 }
  0xa2   :  { %v4200_v30 = vsel %vm169_vm0, %v6616_v62, %v237_v32  ;;  %1850 = vadd.xlane.f32.xlu0 %v1849_v43  ;;  %v1151_v1 = vadd.f32 %v1087_v47, %v1019_v4  ;;  %v792_v28 = vadd.f32 %v728_v9, %v599_v42  ;;  %v6617_v62 = vrot.slane %v4079_v14, 1 }
  0xa3   :  { %v859_v45 = vmul.f32 %v3326_v20, %v4200_v30  ;;  %v1540_v32 = vadd.f32 %v1476_v3, %v1408_v7  ;;  %v1118_v40 = vmul.f32 %v3332_v24, %v3935_v57  ;;  %v6486_v47 = vrot.slane %v4204_v2, 7 }
  0xa4   :  { %v4219_v13 = vsel %vm362_vm1, %v6617_v62, 0.0  ;;  %v1280_v4 = vadd.f32 %v1219_v54, %v1151_v1  ;;  %v432_v42 = vrot.slane %v4204_v2, 1  ;;  %v6488_v9 = vrot.slane %v4223_v31, 1 }
  0xa5   :  { %v921_v43 = vadd.f32 %v859_v45, %v792_v28  ;;  %v4228_v11 = vadd.f32 %v1608_v0, %v1540_v32  ;;  %v4233_v3 = vsel %vm169_vm0, 0.0, %v6486_v47  ;;  %v600_v7 = vmul.f32 %v3322_v18, %v3945_v8 }
  0xa6   :  { %v729_v62 = vmul.f32 %v3324_v19, %v4089_v50  ;;  %v1409_v39 = vadd.f32 %v1347_v27, %v1280_v4  ;;  %v1249_v45 = vmul.f32 %v3342_v29, %v4079_v14  ;;  %v860_v0 = vmul.f32 %v3326_v20, %v4233_v3 }
  0xa7   :  { %6618 = vst [vmem:[#allocation29_spill] sm:$0xff] %v4228_v11  ;;  %v1050_v54 = vadd.f32 %v986_v58, %v921_v43  ;;  %v1756_v1 = vsel %vm1722_vm2, %v4228_v11, 0.0  ;;  %v1376_v28 = vmul.f32 %v3347_v33, %v3931_v61  ;;  %v987_v8 = vmul.f32 %v3330_v23, %v3916_v22 }
  0xa8   :  { %v793_v32 = vadd.f32 %v729_v62, %v600_v7  ;;  %1757 = vadd.xlane.f32.xlu1 %v1756_v1  ;;  %v1541_v47 = vadd.f32 %v1477_v38, %v1409_v39  ;;  %v1508_v58 = vmul.f32 %v3353_v36, %v4075_v26  ;;  %v1639_v4 = vmul.f32 %v3361_v41, %v4219_v13 }
  0xa9   :  { %v1182_v27 = vadd.f32 %v1118_v40, %v1050_v54  ;;  %v4256_v43 = vsel %vm362_vm1, %v432_v42, %v6488_v9  ;;  %v1119_v61 = vmul.f32 %v3332_v24, %v4060_v15  ;;  %v192_v22 = vrot.slane %v4151_v51, 7  ;;  %v4295_v9 = vld [vmem:[#allocation2 + $0x88] sm:$0xff] }
  0xaa   :  { %v922_v11 = vadd.f32 %v860_v0, %v793_v32  ;;  %v4261_v7 = vadd.f32 %v1609_v12, %v1541_v47  ;;  %v1250_v38 = vmul.f32 %v3342_v29, %v4204_v2  ;;  %v571_v40 = vmul.f32 %v3322_v18, %v3984_v60  ;;  %v4276_v47 = vld [vmem:[#allocation2 + $0x80] sm:$0xff] }
  0xab   :  { %v1311_v39 = vadd.f32 %v1249_v45, %v1182_v27  ;;  %v1377_v42 = vmul.f32 %v3347_v33, %v3968_v48  ;;  %v6620_v54 = vrot.slane %v4132_v34, 7  ;;  %v698_v12 = vmul.f32 %v3324_v19, %v4128_v25 }
  0xac   :  { %6619 = vst [vmem:[#allocation30_spill] sm:$0xff] %v4261_v7  ;;  %v1051_v62 = vadd.f32 %v987_v8, %v922_v11  ;;  %v1759_v45 = vsel %vm1722_vm2, %v4261_v7, 0.0  ;;  %v1509_v60 = vmul.f32 %v3353_v36, %v4112_v52  ;;  %v1640_v32 = vmul.f32 %v3361_v41, %v4256_v43 }
  0xad   :  { %v4272_v0 = vsel %vm169_vm0, %v6620_v54, %v192_v22  ;;  %v1440_v1 = vadd.f32 %v1376_v28, %v1311_v39  ;;  %1760 = vadd.xlane.f32.xlu0 %v1759_v45  ;;  %v762_v8 = vadd.f32 %v698_v12, %v571_v40  ;;  %v958_v27 = vmul.f32 %v3330_v23, %v3863_v17 }
  0xae   :  { %v830_v48 = vmul.f32 %v3326_v20, %v4272_v0  ;;  %v1183_v11 = vadd.f32 %v1119_v61, %v1051_v62  ;;  %v6621_v54 = vrot.slane %v4151_v51, 1  ;;  %v1088_v39 = vmul.f32 %v3332_v24, %v4007_v55 }
  0xaf   :  { %v1572_v22 = vadd.f32 %v1508_v58, %v1440_v1  ;;  %v6490_v61 = vrot.slane %v4276_v47, 7  ;;  %v387_v40 = vrot.slane %v4276_v47, 1  ;;  %v6492_v12 = vrot.slane %v4295_v9, 1 }
  0xb0   :  { %v4291_v28 = vsel %vm362_vm1, %v6621_v54, 0.0  ;;  %v1312_v62 = vadd.f32 %v1250_v38, %v1183_v11  ;;  %v891_v45 = vadd.f32 %v830_v48, %v762_v8  ;;  %v572_v1 = vmul.f32 %v3322_v18, %v4017_v21 }
  0xb1   :  { %v4300_v17 = vadd.f32 %v1639_v4, %v1572_v22  ;;  %v4305_v58 = vsel %vm169_vm0, 0.0, %v6490_v61  ;;  %v699_v54 = vmul.f32 %v3324_v19, %v4161_v10  ;;  %v1220_v48 = vmul.f32 %v3342_v29, %v4151_v51 }
  0xb2   :  { %v1441_v7 = vadd.f32 %v1377_v42, %v1312_v62  ;;  %v1020_v38 = vadd.f32 %v958_v27, %v891_v45  ;;  %v831_v4 = vmul.f32 %v3326_v20, %v4305_v58  ;;  %v1348_v8 = vmul.f32 %v3347_v33, %v4003_v5 }
  0xb3   :  { %6622 = vst [vmem:[#allocation31_spill] sm:$0xff] %v4300_v17  ;;  %v1852_v11 = vsel %vm1722_vm2, %v4300_v17, 0.0  ;;  %v763_v22 = vadd.f32 %v699_v54, %v572_v1  ;;  %v959_v21 = vmul.f32 %v3330_v23, %v3988_v59  ;;  %v1478_v27 = vmul.f32 %v3353_v36, %v4147_v44 }
  0xb4   :  { %1853 = vadd.xlane.f32.xlu1 %v1852_v11  ;;  %v1573_v61 = vadd.f32 %v1509_v60, %v1441_v7  ;;  %v1152_v42 = vadd.f32 %v1088_v39, %v1020_v38  ;;  %v1610_v62 = vmul.f32 %v3361_v41, %v4291_v28  ;;  %v4328_v45 = vsel %vm362_vm1, %v387_v40, %v6492_v12  ;;  %v4367_v12 = vld [vmem:[#allocation2 + $0x188] sm:$0xff] }
  0xb5   :  { %v892_v17 = vadd.f32 %v831_v4, %v763_v22  ;;  %v1089_v5 = vmul.f32 %v3332_v24, %v4132_v34  ;;  %v240_v59 = vrot.slane %v4223_v31, 7  ;;  %v1221_v60 = vmul.f32 %v3342_v29, %v4276_v47 }
  0xb6   :  { %v4333_v1 = vadd.f32 %v1640_v32, %v1573_v61  ;;  %v1281_v7 = vadd.f32 %v1220_v48, %v1152_v42  ;;  %v601_v39 = vmul.f32 %v3322_v18, %v4056_v63  ;;  %v1349_v40 = vmul.f32 %v3347_v33, %v4040_v35  ;;  %v4348_v61 = vld [vmem:[#allocation2 + $0x180] sm:$0xff] }
  0xb7   :  { %v1021_v54 = vadd.f32 %v959_v21, %v892_v17  ;;  %v6624_v38 = vrot.slane %v4204_v2, 7  ;;  %v730_v32 = vmul.f32 %v3324_v19, %v4200_v30  ;;  %v1479_v63 = vmul.f32 %v3353_v36, %v4184_v16 }
  0xb8   :  { %6623 = vst [vmem:[#allocation32_spill] sm:$0xff] %v4333_v1  ;;  %v1855_v48 = vsel %vm1722_vm2, %v4333_v1, 0.0  ;;  %v1410_v11 = vadd.f32 %v1348_v8, %v1281_v7  ;;  %v1611_v22 = vmul.f32 %v3361_v41, %v4328_v45  ;;  %v988_v42 = vmul.f32 %v3330_v23, %v3935_v57 }
  0xb9   :  { %v4344_v4 = vsel %vm169_vm0, %v6624_v38, %v240_v59  ;;  %1856 = vadd.xlane.f32.xlu0 %v1855_v48  ;;  %v1153_v17 = vadd.f32 %v1089_v5, %v1021_v54  ;;  %v794_v21 = vadd.f32 %v730_v32, %v601_v39  ;;  %v6625_v38 = vrot.slane %v4223_v31, 1 }
  0xba   :  { %v861_v35 = vmul.f32 %v3326_v20, %v4344_v4  ;;  %v1542_v59 = vadd.f32 %v1478_v27, %v1410_v11  ;;  %v1120_v7 = vmul.f32 %v3332_v24, %v4079_v14  ;;  %v6494_v5 = vrot.slane %v4348_v61, 7 }
  0xbb   :  { %v4363_v8 = vsel %vm362_vm1, %v6625_v38, 0.0  ;;  %v1282_v54 = vadd.f32 %v1221_v60, %v1153_v17  ;;  %v435_v39 = vrot.slane %v4348_v61, 1  ;;  %v6496_v32 = vrot.slane %v4367_v12, 1 }
  0xbc   :  { %v923_v48 = vadd.f32 %v861_v35, %v794_v21  ;;  %v4372_v57 = vadd.f32 %v1610_v62, %v1542_v59  ;;  %v4377_v27 = vsel %vm169_vm0, 0.0, %v6494_v5  ;;  %v602_v11 = vmul.f32 %v3322_v18, %v4089_v50 }
  0xbd   :  { %v731_v38 = vmul.f32 %v3324_v19, %v4233_v3  ;;  %v1411_v1 = vadd.f32 %v1349_v40, %v1282_v54  ;;  %v1251_v35 = vmul.f32 %v3342_v29, %v4223_v31  ;;  %v862_v62 = vmul.f32 %v3326_v20, %v4377_v27 }
  0xbe   :  { %6626 = vst [vmem:[#allocation33_spill] sm:$0xff] %v4372_v57  ;;  %v1052_v60 = vadd.f32 %v988_v42, %v923_v48  ;;  %v1762_v17 = vsel %vm1722_vm2, %v4372_v57, 0.0  ;;  %v1378_v21 = vmul.f32 %v3347_v33, %v4075_v26  ;;  %v989_v50 = vmul.f32 %v3330_v23, %v4060_v15 }
  0xbf   :  { %v795_v59 = vadd.f32 %v731_v38, %v602_v11  ;;  %1763 = vadd.xlane.f32.xlu1 %v1762_v17  ;;  %v1543_v5 = vadd.f32 %v1479_v63, %v1411_v1  ;;  %v1510_v42 = vmul.f32 %v3353_v36, %v4219_v13  ;;  %v1641_v54 = vmul.f32 %v3361_v41, %v4363_v8 }
  0xc0   :  { %v1184_v40 = vadd.f32 %v1120_v7, %v1052_v60  ;;  %v4400_v48 = vsel %vm362_vm1, %v435_v39, %v6496_v32  ;;  %v1121_v26 = vmul.f32 %v3332_v24, %v4204_v2  ;;  %v195_v15 = vrot.slane %v4295_v9, 7  ;;  %v4439_v32 = vld [vmem:[#allocation2 + $0x98] sm:$0xff] }
  0xc1   :  { %v924_v57 = vadd.f32 %v862_v62, %v795_v59  ;;  %v4405_v11 = vadd.f32 %v1611_v22, %v1543_v5  ;;  %v1252_v63 = vmul.f32 %v3342_v29, %v4348_v61  ;;  %v573_v7 = vmul.f32 %v3322_v18, %v4128_v25  ;;  %v4420_v5 = vld [vmem:[#allocation2 + $0x90] sm:$0xff] }
  0xc2   :  { %v1313_v1 = vadd.f32 %v1251_v35, %v1184_v40  ;;  %v1379_v39 = vmul.f32 %v3347_v33, %v4112_v52  ;;  %v6628_v60 = vrot.slane %v4276_v47, 7  ;;  %v700_v22 = vmul.f32 %v3324_v19, %v4272_v0 }
  0xc3   :  { %6627 = vst [vmem:[#allocation34_spill] sm:$0xff] %v4405_v11  ;;  %v1053_v38 = vadd.f32 %v989_v50, %v924_v57  ;;  %v1765_v35 = vsel %vm1722_vm2, %v4405_v11, 0.0  ;;  %v1511_v25 = vmul.f32 %v3353_v36, %v4256_v43  ;;  %v1642_v59 = vmul.f32 %v3361_v41, %v4400_v48 }
  0xc4   :  { %v4416_v62 = vsel %vm169_vm0, %v6628_v60, %v195_v15  ;;  %v1442_v17 = vadd.f32 %v1378_v21, %v1313_v1  ;;  %1766 = vadd.xlane.f32.xlu0 %v1765_v35  ;;  %v764_v50 = vadd.f32 %v700_v22, %v573_v7  ;;  %v960_v40 = vmul.f32 %v3330_v23, %v4007_v55 }
  0xc5   :  { %v832_v52 = vmul.f32 %v3326_v20, %v4416_v62  ;;  %v1185_v57 = vadd.f32 %v1121_v26, %v1053_v38  ;;  %v6629_v60 = vrot.slane %v4295_v9, 1  ;;  %v1090_v1 = vmul.f32 %v3332_v24, %v4151_v51 }
  0xc6   :  { %v1574_v15 = vadd.f32 %v1510_v42, %v1442_v17  ;;  %v6498_v26 = vrot.slane %v4420_v5, 7  ;;  %v390_v7 = vrot.slane %v4420_v5, 1  ;;  %v6500_v22 = vrot.slane %v4439_v32, 1 }
  0xc7   :  { %v4435_v21 = vsel %vm362_vm1, %v6629_v60, 0.0  ;;  %v1314_v38 = vadd.f32 %v1252_v63, %v1185_v57  ;;  %v893_v35 = vadd.f32 %v832_v52, %v764_v50  ;;  %v574_v17 = vmul.f32 %v3322_v18, %v4161_v10 }
  0xc8   :  { %v4444_v55 = vadd.f32 %v1641_v54, %v1574_v15  ;;  %v4449_v42 = vsel %vm169_vm0, 0.0, %v6498_v26  ;;  %v701_v60 = vmul.f32 %v3324_v19, %v4305_v58  ;;  %v1222_v52 = vmul.f32 %v3342_v29, %v4295_v9 }
  0xc9   :  { %v1443_v11 = vadd.f32 %v1379_v39, %v1314_v38  ;;  %v1022_v63 = vadd.f32 %v960_v40, %v893_v35  ;;  %v833_v54 = vmul.f32 %v3326_v20, %v4449_v42  ;;  %v1350_v50 = vmul.f32 %v3347_v33, %v4147_v44 }
  0xca   :  { %6630 = vst [vmem:[#allocation35_spill] sm:$0xff] %v4444_v55  ;;  %v1858_v57 = vsel %vm1722_vm2, %v4444_v55, 0.0  ;;  %v765_v15 = vadd.f32 %v701_v60, %v574_v17  ;;  %v961_v10 = vmul.f32 %v3330_v23, %v4132_v34  ;;  %v1480_v40 = vmul.f32 %v3353_v36, %v4291_v28 }
  0xcb   :  { %1859 = vadd.xlane.f32.xlu1 %v1858_v57  ;;  %v1575_v26 = vadd.f32 %v1511_v25, %v1443_v11  ;;  %v1154_v39 = vadd.f32 %v1090_v1, %v1022_v63  ;;  %v1612_v38 = vmul.f32 %v3361_v41, %v4435_v21  ;;  %v4472_v35 = vsel %vm362_vm1, %v390_v7, %v6500_v22  ;;  %v4511_v22 = vld [vmem:[#allocation2 + $0x198] sm:$0xff] }
  0xcc   :  { %v894_v55 = vadd.f32 %v833_v54, %v765_v15  ;;  %v1091_v44 = vmul.f32 %v3332_v24, %v4276_v47  ;;  %v243_v34 = vrot.slane %v4367_v12, 7  ;;  %v1223_v25 = vmul.f32 %v3342_v29, %v4420_v5 }
  0xcd   :  { %v4477_v17 = vadd.f32 %v1642_v59, %v1575_v26  ;;  %v1283_v11 = vadd.f32 %v1222_v52, %v1154_v39  ;;  %v603_v1 = vmul.f32 %v3322_v18, %v4200_v30  ;;  %v1351_v7 = vmul.f32 %v3347_v33, %v4184_v16  ;;  %v4492_v26 = vld [vmem:[#allocation2 + $0x190] sm:$0xff] }
  0xce   :  { %v1023_v60 = vadd.f32 %v961_v10, %v894_v55  ;;  %v6632_v63 = vrot.slane %v4348_v61, 7  ;;  %v732_v59 = vmul.f32 %v3324_v19, %v4344_v4  ;;  %v1481_v30 = vmul.f32 %v3353_v36, %v4328_v45 }
  0xcf   :  { %6631 = vst [vmem:[#allocation36_spill] sm:$0xff] %v4477_v17  ;;  %v1861_v52 = vsel %vm1722_vm2, %v4477_v17, 0.0  ;;  %v1412_v57 = vadd.f32 %v1350_v50, %v1283_v11  ;;  %v1613_v15 = vmul.f32 %v3361_v41, %v4472_v35  ;;  %v990_v39 = vmul.f32 %v3330_v23, %v4079_v14 }
  0xd0   :  { %v4488_v54 = vsel %vm169_vm0, %v6632_v63, %v243_v34  ;;  %1862 = vadd.xlane.f32.xlu0 %v1861_v52  ;;  %v1155_v55 = vadd.f32 %v1091_v44, %v1023_v60  ;;  %v796_v10 = vadd.f32 %v732_v59, %v603_v1  ;;  %v6633_v63 = vrot.slane %v4367_v12, 1 }
  0xd1   :  { %v863_v16 = vmul.f32 %v3326_v20, %v4488_v54  ;;  %v1544_v34 = vadd.f32 %v1480_v40, %v1412_v57  ;;  %v1122_v11 = vmul.f32 %v3332_v24, %v4223_v31  ;;  %v6502_v44 = vrot.slane %v4492_v26, 7 }
  0xd2   :  { %v4507_v50 = vsel %vm362_vm1, %v6633_v63, 0.0  ;;  %v1284_v60 = vadd.f32 %v1223_v25, %v1155_v55  ;;  %v438_v1 = vrot.slane %v4492_v26, 1  ;;  %v6504_v59 = vrot.slane %v4511_v22, 1 }
  0xd3   :  { %v925_v52 = vadd.f32 %v863_v16, %v796_v10  ;;  %v4516_v14 = vadd.f32 %v1612_v38, %v1544_v34  ;;  %v4521_v40 = vsel %vm169_vm0, 0.0, %v6502_v44  ;;  %v604_v57 = vmul.f32 %v3322_v18, %v4233_v3 }
  0xd4   :  { %v733_v63 = vmul.f32 %v3324_v19, %v4377_v27  ;;  %v1413_v17 = vadd.f32 %v1351_v7, %v1284_v60  ;;  %v1253_v16 = vmul.f32 %v3342_v29, %v4367_v12  ;;  %v864_v38 = vmul.f32 %v3326_v20, %v4521_v40 }
  0xd5   :  { %6634 = vst [vmem:[#allocation37_spill] sm:$0xff] %v4516_v14  ;;  %v1054_v25 = vadd.f32 %v990_v39, %v925_v52  ;;  %v1768_v55 = vsel %vm1722_vm2, %v4516_v14, 0.0  ;;  %v1380_v10 = vmul.f32 %v3347_v33, %v4219_v13  ;;  %v991_v3 = vmul.f32 %v3330_v23, %v4204_v2 }
  0xd6   :  { %v797_v34 = vadd.f32 %v733_v63, %v604_v57  ;;  %1769 = vadd.xlane.f32.xlu1 %v1768_v55  ;;  %v1545_v44 = vadd.f32 %v1481_v30, %v1413_v17  ;;  %v1512_v39 = vmul.f32 %v3353_v36, %v4363_v8  ;;  %v1643_v60 = vmul.f32 %v3361_v41, %v4507_v50 }
  0xd7   :  { %v1186_v7 = vadd.f32 %v1122_v11, %v1054_v25  ;;  %v4544_v52 = vsel %vm362_vm1, %v438_v1, %v6504_v59  ;;  %v1123_v13 = vmul.f32 %v3332_v24, %v4348_v61  ;;  %v198_v2 = vrot.slane %v4439_v32, 7  ;;  %v4583_v59 = vld [vmem:[#allocation2 + $0xa8] sm:$0xff] }
  0xd8   :  { %v926_v14 = vadd.f32 %v864_v38, %v797_v34  ;;  %v4549_v57 = vadd.f32 %v1613_v15, %v1545_v44  ;;  %v1254_v30 = vmul.f32 %v3342_v29, %v4492_v26  ;;  %v575_v11 = vmul.f32 %v3322_v18, %v4272_v0  ;;  %v4564_v44 = vld [vmem:[#allocation2 + $0xa0] sm:$0xff] }
  0xd9   :  { %v1315_v17 = vadd.f32 %v1253_v16, %v1186_v7  ;;  %v1381_v1 = vmul.f32 %v3347_v33, %v4256_v43  ;;  %v6636_v25 = vrot.slane %v4420_v5, 7  ;;  %v702_v15 = vmul.f32 %v3324_v19, %v4416_v62 }
  0xda   :  { %6635 = vst [vmem:[#allocation38_spill] sm:$0xff] %v4549_v57  ;;  %v1055_v63 = vadd.f32 %v991_v3, %v926_v14  ;;  %v1771_v16 = vsel %vm1722_vm2, %v4549_v57, 0.0  ;;  %v1513_v0 = vmul.f32 %v3353_v36, %v4400_v48  ;;  %v1644_v34 = vmul.f32 %v3361_v41, %v4544_v52 }
  0xdb   :  { %v4560_v38 = vsel %vm169_vm0, %v6636_v25, %v198_v2  ;;  %v1444_v55 = vadd.f32 %v1380_v10, %v1315_v17  ;;  %1772 = vadd.xlane.f32.xlu0 %v1771_v16  ;;  %v766_v3 = vadd.f32 %v702_v15, %v575_v11  ;;  %v962_v7 = vmul.f32 %v3330_v23, %v4151_v51 }
  0xdc   :  { %v834_v43 = vmul.f32 %v3326_v20, %v4560_v38  ;;  %v1187_v14 = vadd.f32 %v1123_v13, %v1055_v63  ;;  %v6637_v25 = vrot.slane %v4439_v32, 1  ;;  %v1092_v17 = vmul.f32 %v3332_v24, %v4295_v9 }
  0xdd   :  { %v1576_v2 = vadd.f32 %v1512_v39, %v1444_v55  ;;  %v6506_v13 = vrot.slane %v4564_v44, 7  ;;  %v393_v11 = vrot.slane %v4564_v44, 1  ;;  %v6508_v15 = vrot.slane %v4583_v59, 1 }
  0xde   :  { %v4579_v10 = vsel %vm362_vm1, %v6637_v25, 0.0  ;;  %v1316_v63 = vadd.f32 %v1254_v30, %v1187_v14  ;;  %v895_v16 = vadd.f32 %v834_v43, %v766_v3  ;;  %v576_v55 = vmul.f32 %v3322_v18, %v4305_v58 }
  0xdf   :  { %v4588_v51 = vadd.f32 %v1643_v60, %v1576_v2  ;;  %v4593_v39 = vsel %vm169_vm0, 0.0, %v6506_v13  ;;  %v703_v25 = vmul.f32 %v3324_v19, %v4449_v42  ;;  %v1224_v43 = vmul.f32 %v3342_v29, %v4439_v32 }
  0xe0   :  { %v1445_v57 = vadd.f32 %v1381_v1, %v1316_v63  ;;  %v1024_v30 = vadd.f32 %v962_v7, %v895_v16  ;;  %v835_v60 = vmul.f32 %v3326_v20, %v4593_v39  ;;  %v1352_v3 = vmul.f32 %v3347_v33, %v4291_v28 }
  0xe1   :  { %6638 = vst [vmem:[#allocation39_spill] sm:$0xff] %v4588_v51  ;;  %v1864_v14 = vsel %vm1722_vm2, %v4588_v51, 0.0  ;;  %v767_v2 = vadd.f32 %v703_v25, %v576_v55  ;;  %v963_v58 = vmul.f32 %v3330_v23, %v4276_v47  ;;  %v1482_v7 = vmul.f32 %v3353_v36, %v4435_v21 }
  0xe2   :  { %1865 = vadd.xlane.f32.xlu1 %v1864_v14  ;;  %v1577_v13 = vadd.f32 %v1513_v0, %v1445_v57  ;;  %v1156_v1 = vadd.f32 %v1092_v17, %v1024_v30  ;;  %v1614_v63 = vmul.f32 %v3361_v41, %v4579_v10  ;;  %v4616_v16 = vsel %vm362_vm1, %v393_v11, %v6508_v15  ;;  %v4655_v15 = vld [vmem:[#allocation2 + $0x1a8] sm:$0xff] }
  0xe3   :  { %v896_v51 = vadd.f32 %v835_v60, %v767_v2  ;;  %v1093_v28 = vmul.f32 %v3332_v24, %v4420_v5  ;;  %v246_v47 = vrot.slane %v4511_v22, 7  ;;  %v1225_v0 = vmul.f32 %v3342_v29, %v4564_v44 }
  0xe4   :  { %v4621_v55 = vadd.f32 %v1644_v34, %v1577_v13  ;;  %v1285_v57 = vadd.f32 %v1224_v43, %v1156_v1  ;;  %v605_v17 = vmul.f32 %v3322_v18, %v4344_v4  ;;  %v1353_v11 = vmul.f32 %v3347_v33, %v4328_v45  ;;  %v4636_v13 = vld [vmem:[#allocation2 + $0x1a0] sm:$0xff] }
  0xe5   :  { %v1025_v25 = vadd.f32 %v963_v58, %v896_v51  ;;  %v6640_v30 = vrot.slane %v4492_v26, 7  ;;  %v734_v34 = vmul.f32 %v3324_v19, %v4488_v54  ;;  %v1483_v4 = vmul.f32 %v3353_v36, %v4472_v35 }
  0xe6   :  { %6639 = vst [vmem:[#allocation40_spill] sm:$0xff] %v4621_v55  ;;  %v1867_v43 = vsel %vm1722_vm2, %v4621_v55, 0.0  ;;  %v1414_v14 = vadd.f32 %v1352_v3, %v1285_v57  ;;  %v1615_v2 = vmul.f32 %v3361_v41, %v4616_v16  ;;  %v992_v1 = vmul.f32 %v3330_v23, %v4223_v31 }
  0xe7   :  { %v4632_v60 = vsel %vm169_vm0, %v6640_v30, %v246_v47  ;;  %1868 = vadd.xlane.f32.xlu0 %v1867_v43  ;;  %v1157_v51 = vadd.f32 %v1093_v28, %v1025_v25  ;;  %v798_v58 = vadd.f32 %v734_v34, %v605_v17  ;;  %v6641_v30 = vrot.slane %v4511_v22, 1 }
  0xe8   :  { %v865_v45 = vmul.f32 %v3326_v20, %v4632_v60  ;;  %v1546_v47 = vadd.f32 %v1482_v7, %v1414_v14  ;;  %v1124_v57 = vmul.f32 %v3332_v24, %v4367_v12  ;;  %v6510_v28 = vrot.slane %v4636_v13, 7 }
  0xe9   :  { %v4651_v3 = vsel %vm362_vm1, %v6641_v30, 0.0  ;;  %v1286_v25 = vadd.f32 %v1225_v0, %v1157_v51  ;;  %v441_v17 = vrot.slane %v4636_v13, 1  ;;  %v6512_v34 = vrot.slane %v4655_v15, 1 }
  0xea   :  { %v927_v43 = vadd.f32 %v865_v45, %v798_v58  ;;  %v4660_v31 = vadd.f32 %v1614_v63, %v1546_v47  ;;  %v4665_v7 = vsel %vm169_vm0, 0.0, %v6510_v28  ;;  %v606_v14 = vmul.f32 %v3322_v18, %v4377_v27 }
  0xeb   :  { %v735_v30 = vmul.f32 %v3324_v19, %v4521_v40  ;;  %v1415_v55 = vadd.f32 %v1353_v11, %v1286_v25  ;;  %v1255_v45 = vmul.f32 %v3342_v29, %v4511_v22  ;;  %v866_v63 = vmul.f32 %v3326_v20, %v4665_v7 }
  0xec   :  { %6642 = vst [vmem:[#allocation41_spill] sm:$0xff] %v4660_v31  ;;  %v1056_v0 = vadd.f32 %v992_v1, %v927_v43  ;;  %v1774_v51 = vsel %vm1722_vm2, %v4660_v31, 0.0  ;;  %v1382_v58 = vmul.f32 %v3347_v33, %v4363_v8  ;;  %v993_v27 = vmul.f32 %v3330_v23, %v4348_v61 }
  0xed   :  { %v799_v47 = vadd.f32 %v735_v30, %v606_v14  ;;  %1775 = vadd.xlane.f32.xlu1 %v1774_v51  ;;  %v1547_v28 = vadd.f32 %v1483_v4, %v1415_v55  ;;  %v1514_v1 = vmul.f32 %v3353_v36, %v4507_v50  ;;  %v1645_v25 = vmul.f32 %v3361_v41, %v4651_v3 }
  0xee   :  { %v1188_v11 = vadd.f32 %v1124_v57, %v1056_v0  ;;  %v4688_v43 = vsel %vm362_vm1, %v441_v17, %v6512_v34  ;;  %v1125_v8 = vmul.f32 %v3332_v24, %v4492_v26  ;;  %v201_v61 = vrot.slane %v4583_v59, 7  ;;  %v4727_v34 = vld [vmem:[#allocation2 + $0xb8] sm:$0xff] }
  0xef   :  { %v928_v31 = vadd.f32 %v866_v63, %v799_v47  ;;  %v4693_v14 = vadd.f32 %v1615_v2, %v1547_v28  ;;  %v1256_v4 = vmul.f32 %v3342_v29, %v4636_v13  ;;  %v577_v57 = vmul.f32 %v3322_v18, %v4416_v62  ;;  %v4708_v28 = vld [vmem:[#allocation2 + $0xb0] sm:$0xff] }
  0xf0   :  { %v1317_v55 = vadd.f32 %v1255_v45, %v1188_v11  ;;  %v1383_v17 = vmul.f32 %v3347_v33, %v4400_v48  ;;  %v6644_v0 = vrot.slane %v4564_v44, 7  ;;  %v704_v2 = vmul.f32 %v3324_v19, %v4560_v38 }
  0xf1   :  { %6643 = vst [vmem:[#allocation42_spill] sm:$0xff] %v4693_v14  ;;  %v1057_v30 = vadd.f32 %v993_v27, %v928_v31  ;;  %v1777_v45 = vsel %vm1722_vm2, %v4693_v14, 0.0  ;;  %v1515_v62 = vmul.f32 %v3353_v36, %v4544_v52  ;;  %v1646_v47 = vmul.f32 %v3361_v41, %v4688_v43 }
  0xf2   :  { %v4704_v63 = vsel %vm169_vm0, %v6644_v0, %v201_v61  ;;  %v1446_v51 = vadd.f32 %v1382_v58, %v1317_v55  ;;  %1778 = vadd.xlane.f32.xlu0 %v1777_v45  ;;  %v768_v27 = vadd.f32 %v704_v2, %v577_v57  ;;  %v964_v11 = vmul.f32 %v3330_v23, %v4295_v9 }
  0xf3   :  { %v836_v48 = vmul.f32 %v3326_v20, %v4704_v63  ;;  %v1189_v31 = vadd.f32 %v1125_v8, %v1057_v30  ;;  %v6645_v0 = vrot.slane %v4583_v59, 1  ;;  %v1094_v55 = vmul.f32 %v3332_v24, %v4439_v32 }
  0xf4   :  { %v1578_v61 = vadd.f32 %v1514_v1, %v1446_v51  ;;  %v6514_v8 = vrot.slane %v4708_v28, 7  ;;  %v396_v57 = vrot.slane %v4708_v28, 1  ;;  %v6516_v2 = vrot.slane %v4727_v34, 1 }
  0xf5   :  { %v4723_v58 = vsel %vm362_vm1, %v6645_v0, 0.0  ;;  %v1318_v30 = vadd.f32 %v1256_v4, %v1189_v31  ;;  %v897_v45 = vadd.f32 %v836_v48, %v768_v27  ;;  %v578_v51 = vmul.f32 %v3322_v18, %v4449_v42 }
  0xf6   :  { %v4732_v9 = vadd.f32 %v1645_v25, %v1578_v61  ;;  %v4737_v1 = vsel %vm169_vm0, 0.0, %v6514_v8  ;;  %v705_v0 = vmul.f32 %v3324_v19, %v4593_v39  ;;  %v1226_v48 = vmul.f32 %v3342_v29, %v4583_v59 }
  0xf7   :  { %v1447_v14 = vadd.f32 %v1383_v17, %v1318_v30  ;;  %v1026_v4 = vadd.f32 %v964_v11, %v897_v45  ;;  %v837_v25 = vmul.f32 %v3326_v20, %v4737_v1  ;;  %v1354_v27 = vmul.f32 %v3347_v33, %v4435_v21 }
  0xf8   :  { %6646 = vst [vmem:[#allocation43_spill] sm:$0xff] %v4732_v9  ;;  %v1870_v31 = vsel %vm1722_vm2, %v4732_v9, 0.0  ;;  %v769_v61 = vadd.f32 %v705_v0, %v578_v51  ;;  %v965_v42 = vmul.f32 %v3330_v23, %v4420_v5  ;;  %v1484_v11 = vmul.f32 %v3353_v36, %v4579_v10 }
  0xf9   :  { %1871 = vadd.xlane.f32.xlu1 %v1870_v31  ;;  %v1579_v8 = vadd.f32 %v1515_v62, %v1447_v14  ;;  %v1158_v17 = vadd.f32 %v1094_v55, %v1026_v4  ;;  %v1616_v30 = vmul.f32 %v3361_v41, %v4723_v58  ;;  %v4760_v45 = vsel %vm362_vm1, %v396_v57, %v6516_v2  ;;  %v4799_v2 = vld [vmem:[#allocation2 + $0x1b8] sm:$0xff] }
  0xfa   :  { %v898_v9 = vadd.f32 %v837_v25, %v769_v61  ;;  %v1095_v21 = vmul.f32 %v3332_v24, %v4564_v44  ;;  %v249_v5 = vrot.slane %v4655_v15, 7  ;;  %v1227_v62 = vmul.f32 %v3342_v29, %v4708_v28 }
  0xfb   :  { %v4765_v51 = vadd.f32 %v1646_v47, %v1579_v8  ;;  %v1287_v14 = vadd.f32 %v1226_v48, %v1158_v17  ;;  %v607_v55 = vmul.f32 %v3322_v18, %v4488_v54  ;;  %v1355_v57 = vmul.f32 %v3347_v33, %v4472_v35  ;;  %v4780_v8 = vld [vmem:[#allocation2 + $0x1b0] sm:$0xff] }
  0xfc   :  { %v1027_v0 = vadd.f32 %v965_v42, %v898_v9  ;;  %v6648_v4 = vrot.slane %v4636_v13, 7  ;;  %v736_v47 = vmul.f32 %v3324_v19, %v4632_v60  ;;  %v1485_v54 = vmul.f32 %v3353_v36, %v4616_v16 }
  0xfd   :  { %6647 = vst [vmem:[#allocation44_spill] sm:$0xff] %v4765_v51  ;;  %v1873_v48 = vsel %vm1722_vm2, %v4765_v51, 0.0  ;;  %v1416_v31 = vadd.f32 %v1354_v27, %v1287_v14  ;;  %v1617_v61 = vmul.f32 %v3361_v41, %v4760_v45  ;;  %v994_v17 = vmul.f32 %v3330_v23, %v4367_v12 }
  0xfe   :  { %v4776_v25 = vsel %vm169_vm0, %v6648_v4, %v249_v5  ;;  %1874 = vadd.xlane.f32.xlu0 %v1873_v48  ;;  %v1159_v9 = vadd.f32 %v1095_v21, %v1027_v0  ;;  %v800_v42 = vadd.f32 %v736_v47, %v607_v55  ;;  %v6649_v4 = vrot.slane %v4655_v15, 1 }
  0xff   :  { %v867_v35 = vmul.f32 %v3326_v20, %v4776_v25  ;;  %v1548_v5 = vadd.f32 %v1484_v11, %v1416_v31  ;;  %v1126_v14 = vmul.f32 %v3332_v24, %v4511_v22  ;;  %v6518_v21 = vrot.slane %v4780_v8, 7 }
 0x100   :  { %v4795_v27 = vsel %vm362_vm1, %v6649_v4, 0.0  ;;  %v1288_v0 = vadd.f32 %v1227_v62, %v1159_v9  ;;  %v444_v55 = vrot.slane %v4780_v8, 1  ;;  %v6520_v47 = vrot.slane %v4799_v2, 1 }
 0x101   :  { %v929_v48 = vadd.f32 %v867_v35, %v800_v42  ;;  %v4804_v12 = vadd.f32 %v1616_v30, %v1548_v5  ;;  %v4809_v11 = vsel %vm169_vm0, 0.0, %v6518_v21  ;;  %v608_v31 = vmul.f32 %v3322_v18, %v4521_v40 }
 0x102   :  { %v737_v4 = vmul.f32 %v3324_v19, %v4665_v7  ;;  %v1417_v51 = vadd.f32 %v1355_v57, %v1288_v0  ;;  %v1257_v35 = vmul.f32 %v3342_v29, %v4655_v15  ;;  %v868_v30 = vmul.f32 %v3326_v20, %v4809_v11 }
 0x103   :  { %6650 = vst [vmem:[#allocation45_spill] sm:$0xff] %v4804_v12  ;;  %v1058_v62 = vadd.f32 %v994_v17, %v929_v48  ;;  %v1780_v9 = vsel %vm1722_vm2, %v4804_v12, 0.0  ;;  %v1384_v42 = vmul.f32 %v3347_v33, %v4507_v50  ;;  %v995_v40 = vmul.f32 %v3330_v23, %v4492_v26 }
 0x104   :  { %v801_v5 = vadd.f32 %v737_v4, %v608_v31  ;;  %1781 = vadd.xlane.f32.xlu1 %v1780_v9  ;;  %v1549_v21 = vadd.f32 %v1485_v54, %v1417_v51  ;;  %v1516_v17 = vmul.f32 %v3353_v36, %v4651_v3  ;;  %v1647_v0 = vmul.f32 %v3361_v41, %v4795_v27 }
 0x105   :  { %v1190_v57 = vadd.f32 %v1126_v14, %v1058_v62  ;;  %v4832_v48 = vsel %vm362_vm1, %v444_v55, %v6520_v47  ;;  %v1127_v50 = vmul.f32 %v3332_v24, %v4636_v13  ;;  %v204_v26 = vrot.slane %v4727_v34, 7  ;;  %v4871_v47 = vld [vmem:[#allocation2 + $0xc8] sm:$0xff] }
 0x106   :  { %v930_v12 = vadd.f32 %v868_v30, %v801_v5  ;;  %v4837_v31 = vadd.f32 %v1617_v61, %v1549_v21  ;;  %v1258_v54 = vmul.f32 %v3342_v29, %v4780_v8  ;;  %v579_v14 = vmul.f32 %v3322_v18, %v4560_v38  ;;  %v4852_v21 = vld [vmem:[#allocation2 + $0xc0] sm:$0xff] }
 0x107   :  { %v1319_v51 = vadd.f32 %v1257_v35, %v1190_v57  ;;  %v1385_v55 = vmul.f32 %v3347_v33, %v4544_v52  ;;  %v6652_v62 = vrot.slane %v4708_v28, 7  ;;  %v706_v61 = vmul.f32 %v3324_v19, %v4704_v63 }
 0x108   :  { %6651 = vst [vmem:[#allocation46_spill] sm:$0xff] %v4837_v31  ;;  %v1059_v4 = vadd.f32 %v995_v40, %v930_v12  ;;  %v1783_v35 = vsel %vm1722_vm2, %v4837_v31, 0.0  ;;  %v1517_v38 = vmul.f32 %v3353_v36, %v4688_v43  ;;  %v1648_v5 = vmul.f32 %v3361_v41, %v4832_v48 }
 0x109   :  { %v4848_v30 = vsel %vm169_vm0, %v6652_v62, %v204_v26  ;;  %v1448_v9 = vadd.f32 %v1384_v42, %v1319_v51  ;;  %1784 = vadd.xlane.f32.xlu0 %v1783_v35  ;;  %v770_v40 = vadd.f32 %v706_v61, %v579_v14  ;;  %v966_v57 = vmul.f32 %v3330_v23, %v4439_v32 }
 0x10a   :  { %v838_v52 = vmul.f32 %v3326_v20, %v4848_v30  ;;  %v1191_v12 = vadd.f32 %v1127_v50, %v1059_v4  ;;  %v6653_v62 = vrot.slane %v4727_v34, 1  ;;  %v1096_v51 = vmul.f32 %v3332_v24, %v4583_v59 }
 0x10b   :  { %v1580_v26 = vadd.f32 %v1516_v17, %v1448_v9  ;;  %v6522_v50 = vrot.slane %v4852_v21, 7  ;;  %v399_v14 = vrot.slane %v4852_v21, 1  ;;  %v6524_v61 = vrot.slane %v4871_v47, 1 }
 0x10c   :  { %v4867_v42 = vsel %vm362_vm1, %v6653_v62, 0.0  ;;  %v1320_v4 = vadd.f32 %v1258_v54, %v1191_v12  ;;  %v899_v35 = vadd.f32 %v838_v52, %v770_v40  ;;  %v580_v9 = vmul.f32 %v3322_v18, %v4593_v39 }
 0x10d   :  { %v4876_v32 = vadd.f32 %v1647_v0, %v1580_v26  ;;  %v4881_v17 = vsel %vm169_vm0, 0.0, %v6522_v50  ;;  %v707_v62 = vmul.f32 %v3324_v19, %v4737_v1  ;;  %v1228_v52 = vmul.f32 %v3342_v29, %v4727_v34 }
 0x10e   :  { %v1449_v31 = vadd.f32 %v1385_v55, %v1320_v4  ;;  %v1028_v54 = vadd.f32 %v966_v57, %v899_v35  ;;  %v839_v0 = vmul.f32 %v3326_v20, %v4881_v17  ;;  %v1356_v40 = vmul.f32 %v3347_v33, %v4579_v10 }
 0x10f   :  { %6654 = vst [vmem:[#allocation47_spill] sm:$0xff] %v4876_v32  ;;  %v1876_v12 = vsel %vm1722_vm2, %v4876_v32, 0.0  ;;  %v771_v26 = vadd.f32 %v707_v62, %v580_v9  ;;  %v967_v39 = vmul.f32 %v3330_v23, %v4564_v44  ;;  %v1486_v57 = vmul.f32 %v3353_v36, %v4723_v58 }
 0x110   :  { %1877 = vadd.xlane.f32.xlu1 %v1876_v12  ;;  %v1581_v50 = vadd.f32 %v1517_v38, %v1449_v31  ;;  %v1160_v55 = vadd.f32 %v1096_v51, %v1028_v54  ;;  %v1618_v4 = vmul.f32 %v3361_v41, %v4867_v42  ;;  %v4904_v35 = vsel %vm362_vm1, %v399_v14, %v6524_v61  ;;  %v4943_v61 = vld [vmem:[#allocation2 + $0x1c8] sm:$0xff] }
 0x111   :  { %v900_v32 = vadd.f32 %v839_v0, %v771_v26  ;;  %v1097_v10 = vmul.f32 %v3332_v24, %v4708_v28  ;;  %v252_v44 = vrot.slane %v4799_v2, 7  ;;  %v1229_v38 = vmul.f32 %v3342_v29, %v4852_v21 }
 0x112   :  { %v4909_v9 = vadd.f32 %v1648_v5, %v1581_v50  ;;  %v1289_v31 = vadd.f32 %v1228_v52, %v1160_v55  ;;  %v609_v51 = vmul.f32 %v3322_v18, %v4632_v60  ;;  %v1357_v14 = vmul.f32 %v3347_v33, %v4616_v16  ;;  %v4924_v50 = vld [vmem:[#allocation2 + $0x1c0] sm:$0xff] }
 0x113   :  { %v1029_v62 = vadd.f32 %v967_v39, %v900_v32  ;;  %v6656_v54 = vrot.slane %v4780_v8, 7  ;;  %v738_v5 = vmul.f32 %v3324_v19, %v4776_v25  ;;  %v1487_v60 = vmul.f32 %v3353_v36, %v4760_v45 }
 0x114   :  { %6655 = vst [vmem:[#allocation48_spill] sm:$0xff] %v4909_v9  ;;  %v1879_v52 = vsel %vm1722_vm2, %v4909_v9, 0.0  ;;  %v1418_v12 = vadd.f32 %v1356_v40, %v1289_v31  ;;  %v1619_v26 = vmul.f32 %v3361_v41, %v4904_v35  ;;  %v996_v55 = vmul.f32 %v3330_v23, %v4511_v22 }
 0x115   :  { %v4920_v0 = vsel %vm169_vm0, %v6656_v54, %v252_v44  ;;  %1880 = vadd.xlane.f32.xlu0 %v1879_v52  ;;  %v1161_v32 = vadd.f32 %v1097_v10, %v1029_v62  ;;  %v802_v39 = vadd.f32 %v738_v5, %v609_v51  ;;  %v6657_v54 = vrot.slane %v4799_v2, 1 }
 0x116   :  { %v869_v16 = vmul.f32 %v3326_v20, %v4920_v0  ;;  %v1550_v44 = vadd.f32 %v1486_v57, %v1418_v12  ;;  %v1128_v31 = vmul.f32 %v3332_v24, %v4655_v15  ;;  %v6526_v10 = vrot.slane %v4924_v50, 7 }
 0x117   :  { %v4939_v40 = vsel %vm362_vm1, %v6657_v54, 0.0  ;;  %v1290_v62 = vadd.f32 %v1229_v38, %v1161_v32  ;;  %v447_v51 = vrot.slane %v4924_v50, 1  ;;  %v6528_v5 = vrot.slane %v4943_v61, 1 }
 0x118   :  { %v931_v52 = vadd.f32 %v869_v16, %v802_v39  ;;  %v4948_v22 = vadd.f32 %v1618_v4, %v1550_v44  ;;  %v4953_v57 = vsel %vm169_vm0, 0.0, %v6526_v10  ;;  %v610_v12 = vmul.f32 %v3322_v18, %v4665_v7 }
 0x119   :  { %v739_v54 = vmul.f32 %v3324_v19, %v4809_v11  ;;  %v1419_v9 = vadd.f32 %v1357_v14, %v1290_v62  ;;  %v1259_v16 = vmul.f32 %v3342_v29, %v4799_v2  ;;  %v870_v4 = vmul.f32 %v3326_v20, %v4953_v57 }
 0x11a   :  { %6658 = vst [vmem:[#allocation49_spill] sm:$0xff] %v4948_v22  ;;  %v1060_v38 = vadd.f32 %v996_v55, %v931_v52  ;;  %v1786_v32 = vsel %vm1722_vm2, %v4948_v22, 0.0  ;;  %v1386_v39 = vmul.f32 %v3347_v33, %v4651_v3  ;;  %v997_v7 = vmul.f32 %v3330_v23, %v4636_v13 }
 0x11b   :  { %v803_v44 = vadd.f32 %v739_v54, %v610_v12  ;;  %1787 = vadd.xlane.f32.xlu1 %v1786_v32  ;;  %v1551_v10 = vadd.f32 %v1487_v60, %v1419_v9  ;;  %v1518_v55 = vmul.f32 %v3353_v36, %v4795_v27  ;;  %v1649_v62 = vmul.f32 %v3361_v41, %v4939_v40 }
 0x11c   :  { %v1192_v14 = vadd.f32 %v1128_v31, %v1060_v38  ;;  %v4976_v52 = vsel %vm362_vm1, %v447_v51, %v6528_v5  ;;  %v1129_v3 = vmul.f32 %v3332_v24, %v4780_v8  ;;  %v207_v13 = vrot.slane %v4871_v47, 7  ;;  %v5015_v5 = vld [vmem:[#allocation2 + $0xd8] sm:$0xff] }
 0x11d   :  { %v932_v22 = vadd.f32 %v870_v4, %v803_v44  ;;  %v4981_v12 = vadd.f32 %v1619_v26, %v1551_v10  ;;  %v1260_v60 = vmul.f32 %v3342_v29, %v4924_v50  ;;  %v581_v31 = vmul.f32 %v3322_v18, %v4704_v63  ;;  %v4996_v10 = vld [vmem:[#allocation2 + $0xd0] sm:$0xff] }
 0x11e   :  { %v1321_v9 = vadd.f32 %v1259_v16, %v1192_v14  ;;  %v1387_v51 = vmul.f32 %v3347_v33, %v4688_v43  ;;  %v6660_v38 = vrot.slane %v4852_v21, 7  ;;  %v708_v26 = vmul.f32 %v3324_v19, %v4848_v30 }
 0x11f   :  { %6659 = vst [vmem:[#allocation50_spill] sm:$0xff] %v4981_v12  ;;  %v1061_v54 = vadd.f32 %v997_v7, %v932_v22  ;;  %v1789_v16 = vsel %vm1722_vm2, %v4981_v12, 0.0  ;;  %v1519_v63 = vmul.f32 %v3353_v36, %v4832_v48  ;;  %v1650_v44 = vmul.f32 %v3361_v41, %v4976_v52 }
 0x120   :  { %v4992_v4 = vsel %vm169_vm0, %v6660_v38, %v207_v13  ;;  %v1450_v32 = vadd.f32 %v1386_v39, %v1321_v9  ;;  %1790 = vadd.xlane.f32.xlu0 %v1789_v16  ;;  %v772_v7 = vadd.f32 %v708_v26, %v581_v31  ;;  %v968_v14 = vmul.f32 %v3330_v23, %v4583_v59 }
 0x121   :  { %v840_v43 = vmul.f32 %v3326_v20, %v4992_v4  ;;  %v1193_v22 = vadd.f32 %v1129_v3, %v1061_v54  ;;  %v6661_v38 = vrot.slane %v4871_v47, 1  ;;  %v1098_v9 = vmul.f32 %v3332_v24, %v4727_v34 }
 0x122   :  { %v1582_v13 = vadd.f32 %v1518_v55, %v1450_v32  ;;  %v6530_v3 = vrot.slane %v4996_v10, 7  ;;  %v402_v31 = vrot.slane %v4996_v10, 1  ;;  %v6532_v26 = vrot.slane %v5015_v5, 1 }
 0x123   :  { %v5011_v39 = vsel %vm362_vm1, %v6661_v38, 0.0  ;;  %v1322_v54 = vadd.f32 %v1260_v60, %v1193_v22  ;;  %v901_v16 = vadd.f32 %v840_v43, %v772_v7  ;;  %v582_v32 = vmul.f32 %v3322_v18, %v4737_v1 }
 0x124   :  { %v5020_v59 = vadd.f32 %v1649_v62, %v1582_v13  ;;  %v5025_v55 = vsel %vm169_vm0, 0.0, %v6530_v3  ;;  %v709_v38 = vmul.f32 %v3324_v19, %v4881_v17  ;;  %v1230_v43 = vmul.f32 %v3342_v29, %v4871_v47 }
 0x125   :  { %v1451_v12 = vadd.f32 %v1387_v51, %v1322_v54  ;;  %v1030_v60 = vadd.f32 %v968_v14, %v901_v16  ;;  %v841_v62 = vmul.f32 %v3326_v20, %v5025_v55  ;;  %v1358_v7 = vmul.f32 %v3347_v33, %v4723_v58 }
 0x126   :  { %6662 = vst [vmem:[#allocation51_spill] sm:$0xff] %v5020_v59  ;;  %v1882_v22 = vsel %vm1722_vm2, %v5020_v59, 0.0  ;;  %v773_v13 = vadd.f32 %v709_v38, %v582_v32  ;;  %v969_v1 = vmul.f32 %v3330_v23, %v4708_v28  ;;  %v1488_v14 = vmul.f32 %v3353_v36, %v4867_v42 }
 0x127   :  { %1883 = vadd.xlane.f32.xlu1 %v1882_v22  ;;  %v1583_v3 = vadd.f32 %v1519_v63, %v1451_v12  ;;  %v1162_v51 = vadd.f32 %v1098_v9, %v1030_v60  ;;  %v1620_v54 = vmul.f32 %v3361_v41, %v5011_v39  ;;  %v5048_v16 = vsel %vm362_vm1, %v402_v31, %v6532_v26  ;;  %v5087_v26 = vld [vmem:[#allocation2 + $0x1d8] sm:$0xff] }
 0x128   :  { %v902_v59 = vadd.f32 %v841_v62, %v773_v13  ;;  %v1099_v58 = vmul.f32 %v3332_v24, %v4852_v21  ;;  %v255_v28 = vrot.slane %v4943_v61, 7  ;;  %v1231_v63 = vmul.f32 %v3342_v29, %v4996_v10 }
 0x129   :  { %v5053_v32 = vadd.f32 %v1650_v44, %v1583_v3  ;;  %v1291_v12 = vadd.f32 %v1230_v43, %v1162_v51  ;;  %v611_v9 = vmul.f32 %v3322_v18, %v4776_v25  ;;  %v1359_v31 = vmul.f32 %v3347_v33, %v4760_v45  ;;  %v5068_v3 = vld [vmem:[#allocation2 + $0x1d0] sm:$0xff] }
 0x12a   :  { %v1031_v38 = vadd.f32 %v969_v1, %v902_v59  ;;  %v6664_v60 = vrot.slane %v4924_v50, 7  ;;  %v740_v44 = vmul.f32 %v3324_v19, %v4920_v0  ;;  %v1489_v25 = vmul.f32 %v3353_v36, %v4904_v35 }
 0x12b   :  { %6663 = vst [vmem:[#allocation52_spill] sm:$0xff] %v5053_v32  ;;  %v1885_v43 = vsel %vm1722_vm2, %v5053_v32, 0.0  ;;  %v1420_v22 = vadd.f32 %v1358_v7, %v1291_v12  ;;  %v1621_v13 = vmul.f32 %v3361_v41, %v5048_v16  ;;  %v998_v51 = vmul.f32 %v3330_v23, %v4655_v15 }
 0x12c   :  { %v5064_v62 = vsel %vm169_vm0, %v6664_v60, %v255_v28  ;;  %1886 = vadd.xlane.f32.xlu0 %v1885_v43  ;;  %v1163_v59 = vadd.f32 %v1099_v58, %v1031_v38  ;;  %v804_v1 = vadd.f32 %v740_v44, %v611_v9  ;;  %v6665_v60 = vrot.slane %v4943_v61, 1 }
 0x12d   :  { %v871_v45 = vmul.f32 %v3326_v20, %v5064_v62  ;;  %v1552_v28 = vadd.f32 %v1488_v14, %v1420_v22  ;;  %v1130_v12 = vmul.f32 %v3332_v24, %v4799_v2  ;;  %v6534_v58 = vrot.slane %v5068_v3, 7 }
 0x12e   :  { %v5083_v7 = vsel %vm362_vm1, %v6665_v60, 0.0  ;;  %v1292_v38 = vadd.f32 %v1231_v63, %v1163_v59  ;;  %v450_v9 = vrot.slane %v5068_v3, 1  ;;  %v6536_v44 = vrot.slane %v5087_v26, 1 }
 0x12f   :  { %v933_v43 = vadd.f32 %v871_v45, %v804_v1  ;;  %v5092_v15 = vadd.f32 %v1620_v54, %v1552_v28  ;;  %v5097_v14 = vsel %vm169_vm0, 0.0, %v6534_v58  ;;  %v612_v22 = vmul.f32 %v3322_v18, %v4809_v11 }
 0x130   :  { %v741_v60 = vmul.f32 %v3324_v19, %v4953_v57  ;;  %v1421_v32 = vadd.f32 %v1359_v31, %v1292_v38  ;;  %v1261_v45 = vmul.f32 %v3342_v29, %v4943_v61  ;;  %v872_v54 = vmul.f32 %v3326_v20, %v5097_v14 }
 0x131   :  { %6666 = vst [vmem:[#allocation53_spill] sm:$0xff] %v5092_v15  ;;  %v1062_v63 = vadd.f32 %v998_v51, %v933_v43  ;;  %v1792_v59 = vsel %vm1722_vm2, %v5092_v15, 0.0  ;;  %v1388_v1 = vmul.f32 %v3347_v33, %v4795_v27  ;;  %v999_v11 = vmul.f32 %v3330_v23, %v4780_v8 }
 0x132   :  { %v805_v28 = vadd.f32 %v741_v60, %v612_v22  ;;  %1793 = vadd.xlane.f32.xlu1 %v1792_v59  ;;  %v1553_v58 = vadd.f32 %v1489_v25, %v1421_v32  ;;  %v1520_v51 = vmul.f32 %v3353_v36, %v4939_v40  ;;  %v1651_v38 = vmul.f32 %v3361_v41, %v5083_v7 }
 0x133   :  { %v1194_v31 = vadd.f32 %v1130_v12, %v1062_v63  ;;  %v5120_v43 = vsel %vm362_vm1, %v450_v9, %v6536_v44  ;;  %v1131_v27 = vmul.f32 %v3332_v24, %v4924_v50  ;;  %v210_v8 = vrot.slane %v5015_v5, 7  ;;  %v5159_v44 = vld [vmem:[#allocation2 + $0xe8] sm:$0xff] }
 0x134   :  { %v934_v15 = vadd.f32 %v872_v54, %v805_v28  ;;  %v5125_v22 = vadd.f32 %v1621_v13, %v1553_v58  ;;  %v1262_v25 = vmul.f32 %v3342_v29, %v5068_v3  ;;  %v583_v12 = vmul.f32 %v3322_v18, %v4848_v30  ;;  %v5140_v58 = vld [vmem:[#allocation2 + $0xe0] sm:$0xff] }
 0x135   :  { %v1323_v32 = vadd.f32 %v1261_v45, %v1194_v31  ;;  %v1389_v9 = vmul.f32 %v3347_v33, %v4832_v48  ;;  %v6668_v63 = vrot.slane %v4996_v10, 7  ;;  %v710_v13 = vmul.f32 %v3324_v19, %v4992_v4 }
 0x136   :  { %6667 = vst [vmem:[#allocation54_spill] sm:$0xff] %v5125_v22  ;;  %v1063_v60 = vadd.f32 %v999_v11, %v934_v15  ;;  %v1795_v45 = vsel %vm1722_vm2, %v5125_v22, 0.0  ;;  %v1521_v30 = vmul.f32 %v3353_v36, %v4976_v52  ;;  %v1652_v28 = vmul.f32 %v3361_v41, %v5120_v43 }
 0x137   :  { %v5136_v54 = vsel %vm169_vm0, %v6668_v63, %v210_v8  ;;  %v1452_v59 = vadd.f32 %v1388_v1, %v1323_v32  ;;  %1796 = vadd.xlane.f32.xlu0 %v1795_v45  ;;  %v774_v11 = vadd.f32 %v710_v13, %v583_v12  ;;  %v970_v31 = vmul.f32 %v3330_v23, %v4727_v34 }
 0x138   :  { %v842_v48 = vmul.f32 %v3326_v20, %v5136_v54  ;;  %v1195_v15 = vadd.f32 %v1131_v27, %v1063_v60  ;;  %v6669_v63 = vrot.slane %v5015_v5, 1  ;;  %v1100_v32 = vmul.f32 %v3332_v24, %v4871_v47 }
 0x139   :  { %v1584_v8 = vadd.f32 %v1520_v51, %v1452_v59  ;;  %v6538_v27 = vrot.slane %v5140_v58, 7  ;;  %v405_v12 = vrot.slane %v5140_v58, 1  ;;  %v6540_v13 = vrot.slane %v5159_v44, 1 }
 0x13a   :  { %v5155_v1 = vsel %vm362_vm1, %v6669_v63, 0.0  ;;  %v1324_v60 = vadd.f32 %v1262_v25, %v1195_v15  ;;  %v903_v45 = vadd.f32 %v842_v48, %v774_v11  ;;  %v584_v59 = vmul.f32 %v3322_v18, %v4881_v17 }
 0x13b   :  { %v5164_v34 = vadd.f32 %v1651_v38, %v1584_v8  ;;  %v5169_v51 = vsel %vm169_vm0, 0.0, %v6538_v27  ;;  %v711_v63 = vmul.f32 %v3324_v19, %v5025_v55  ;;  %v1232_v48 = vmul.f32 %v3342_v29, %v5015_v5 }
 0x13c   :  { %v1453_v22 = vadd.f32 %v1389_v9, %v1324_v60  ;;  %v1032_v25 = vadd.f32 %v970_v31, %v903_v45  ;;  %v843_v38 = vmul.f32 %v3326_v20, %v5169_v51  ;;  %v1360_v11 = vmul.f32 %v3347_v33, %v4867_v42 }
 0x13d   :  { %6670 = vst [vmem:[#allocation55_spill] sm:$0xff] %v5164_v34  ;;  %v1888_v15 = vsel %vm1722_vm2, %v5164_v34, 0.0  ;;  %v775_v8 = vadd.f32 %v711_v63, %v584_v59  ;;  %v971_v17 = vmul.f32 %v3330_v23, %v4852_v21  ;;  %v1490_v31 = vmul.f32 %v3353_v36, %v5011_v39  ;;  %v5203_v63 = vpop.xlane.xlu0 %1724 }
 0x13e   :  { %1889 = vadd.xlane.f32.xlu1 %v1888_v15  ;;  %v1585_v27 = vadd.f32 %v1521_v30, %v1453_v22  ;;  %v1164_v9 = vadd.f32 %v1100_v32, %v1032_v25  ;;  %v1622_v60 = vmul.f32 %v3361_v41, %v5155_v1  ;;  %v5192_v45 = vsel %vm362_vm1, %v405_v12, %v6540_v13 }
 0x13f   :  { %v904_v34 = vadd.f32 %v843_v38, %v775_v8  ;;  %v1101_v42 = vmul.f32 %v3332_v24, %v4996_v10  ;;  %v258_v21 = vrot.slane %v5087_v26, 7  ;;  %v1233_v30 = vmul.f32 %v3342_v29, %v5140_v58 }
 0x140   :  { %v5197_v59 = vadd.f32 %v1652_v28, %v1585_v27  ;;  %v1293_v22 = vadd.f32 %v1232_v48, %v1164_v9  ;;  %v613_v32 = vmul.f32 %v3322_v18, %v4920_v0  ;;  %v1361_v12 = vmul.f32 %v3347_v33, %v4904_v35  ;;  %v5214_v27 = vld [vmem:[#allocation2 + $0x1e0] sm:$0xff] }
 0x141   :  { %v1033_v25 = vadd.f32 %v971_v17, %v904_v34  ;;  %v6672_v38 = vrot.slane %v5068_v3, 7  ;;  %v742_v28 = vmul.f32 %v3324_v19, %v5064_v62  ;;  %v1491_v34 = vmul.f32 %v3353_v36, %v5048_v16  ;;  %v5249_v46 = vpop.xlane.xlu0 %1727 }
 0x142   :  { %6671 = vst [vmem:[#allocation56_spill] sm:$0xff] %v5197_v59  ;;  %v1891_v48 = vsel %vm1722_vm2, %v5197_v59, 0.0  ;;  %v1422_v0 = vadd.f32 %v1360_v11, %v1293_v22  ;;  %v1623_v17 = vmul.f32 %v3361_v41, %v5192_v45  ;;  %v6673_v13 = vrot.slane %v5087_v26, 1  ;;  %v5233_v59 = vld [vmem:[#allocation2 + $0x1e8] sm:$0xff] }
 0x143   :  { %v5210_v15 = vsel %vm169_vm0, %v6672_v38, %v258_v21  ;;  %1892 = vadd.xlane.f32.xlu0 %v1891_v48  ;;  %v1165_v8 = vadd.f32 %v1101_v42, %v1033_v25  ;;  %v806_v9 = vadd.f32 %v742_v28, %v613_v32  ;;  %v1000_v21 = vmul.f32 %v3330_v23, %v4799_v2 }
 0x144   :  { %v873_v35 = vmul.f32 %v3326_v20, %v5210_v15  ;;  %v1554_v38 = vadd.f32 %v1490_v31, %v1422_v0  ;;  %v5229_v11 = vsel %vm362_vm1, %v6673_v13, 0.0  ;;  %v1132_v22 = vmul.f32 %v3332_v24, %v4943_v61 }
 0x145   :  { %v6543_v42 = vrot.slane %v5214_v27, 7  ;;  %v1294_v25 = vadd.f32 %v1233_v30, %v1165_v8  ;;  %v453_v32 = vrot.slane %v5214_v27, 1  ;;  %v614_v31 = vmul.f32 %v3322_v18, %v4953_v57 }
 0x146   :  { %v935_v48 = vadd.f32 %v873_v35, %v806_v9  ;;  %v5238_v2 = vadd.f32 %v1622_v60, %v1554_v38  ;;  %v743_v0 = vmul.f32 %v3324_v19, %v5097_v14  ;;  %v1263_v8 = vmul.f32 %v3342_v29, %v5087_v26 }
 0x147   :  { %v5243_v13 = vsel %vm169_vm0, 0.0, %v6543_v42  ;;  %v1423_v30 = vadd.f32 %v1361_v12, %v1294_v25  ;;  %v1390_v38 = vmul.f32 %v3347_v33, %v4939_v40  ;;  %v1001_v42 = vmul.f32 %v3330_v23, %v4924_v50 }
 0x148   :  { %6674 = vst [vmem:[#allocation57_spill] sm:$0xff] %v5238_v2  ;;  %v1064_v35 = vadd.f32 %v1000_v21, %v935_v48  ;;  %v874_v60 = vmul.f32 %v3326_v20, %v5243_v13  ;;  %v1798_v9 = vsel %vm1722_vm2, %v5238_v2, 0.0  ;;  %v807_v57 = vadd.f32 %v743_v0, %v614_v31 }
 0x149   :  { %1799 = vadd.xlane.f32.xlu1 %v1798_v9  ;;  %v1555_v28 = vadd.f32 %v1491_v34, %v1423_v30  ;;  %v1522_v21 = vmul.f32 %v3353_v36, %v5083_v7  ;;  %v1653_v25 = vmul.f32 %v3361_v41, %v5229_v11  ;;  %v6675_v48 = vrot.slane %v5233_v59, 1  ;;  %v5279_v30 = vpop.xlane.xlu1 %1730 }
 0x14a   :  { %v1196_v12 = vadd.f32 %v1132_v22, %v1064_v35  ;;  %v936_v37 = vadd.f32 %v874_v60, %v807_v57  ;;  %v1133_v40 = vmul.f32 %v3332_v24, %v5068_v3  ;;  %v213_v50 = vrot.slane %v5159_v44, 7 }
 0x14b   :  { %v5268_v2 = vsel %vm362_vm1, %v453_v32, %v6675_v48  ;;  %v5273_v31 = vadd.f32 %v1623_v17, %v1555_v28  ;;  %v1264_v22 = vmul.f32 %v3342_v29, %v5214_v27  ;;  %v585_v0 = vmul.f32 %v3322_v18, %v4992_v4  ;;  %v5290_v28 = vld [vmem:[#allocation2 + $0xf0] sm:$0xff] }
 0x14c   :  { %v1325_v34 = vadd.f32 %v1263_v8, %v1196_v12  ;;  %v1065_v35 = vadd.f32 %v1001_v42, %v936_v37  ;;  %v1391_v32 = vmul.f32 %v3347_v33, %v4976_v52  ;;  %v6677_v60 = vrot.slane %v5140_v58, 7  ;;  %v5292_v8 = vpop.xlane.xlu0 %1820 }
 0x14d   :  { %6676 = vst [vmem:[#allocation58_spill] sm:$0xff] %v5273_v31  ;;  %v712_v17 = vmul.f32 %v3324_v19, %v5136_v54  ;;  %6678 = vst [vmem:[#allocation59_spill] sm:$0xff] %v5292_v8  ;;  %v1801_v4 = vsel %vm1722_vm2, %v5273_v31, 0.0  ;;  %v1523_v37 = vmul.f32 %v3353_v36, %v5120_v43  ;;  %v1654_v12 = vmul.f32 %v3361_v41, %v5268_v2 }
 0x14e   :  { %v5286_v9 = vsel %vm169_vm0, %v6677_v60, %v213_v50  ;;  %v1454_v57 = vadd.f32 %v1390_v38, %v1325_v34  ;;  %1802 = vadd.xlane.f32.xlu0 %v1801_v4  ;;  %v1197_v42 = vadd.f32 %v1133_v40, %v1065_v35  ;;  %v972_v50 = vmul.f32 %v3330_v23, %v4871_v47 }
 0x14f   :  { %v844_v52 = vmul.f32 %v3326_v20, %v5286_v9  ;;  %v776_v48 = vadd.f32 %v712_v17, %v585_v0  ;;  %v6679_v6 = vrot.slane %v5159_v44, 1  ;;  %v1102_v34 = vmul.f32 %v3332_v24, %v5015_v5  ;;  %v5314_v0 = vld [vmem:[#allocation2 + $0xf8] sm:$0xff] }
 0x150   :  { %v1586_v60 = vadd.f32 %v1522_v21, %v1454_v57  ;;  %v6548_v31 = vrot.slane %v5290_v28, 7  ;;  %v1326_v4 = vadd.f32 %v1264_v22, %v1197_v42  ;;  %v1234_v35 = vmul.f32 %v3342_v29, %v5159_v44  ;;  %v5327_v57 = vpop.xlane.xlu1 %1733 }
 0x151   :  { %v5307_v38 = vsel %vm362_vm1, %v6679_v6, 0.0  ;;  %v905_v40 = vadd.f32 %v844_v52, %v776_v48  ;;  %v408_v47 = vrot.slane %v5290_v28, 1  ;;  %v586_v22 = vmul.f32 %v3322_v18, %v5025_v55  ;;  %6681 = vst [vmem:[#allocation61_spill] sm:$0xff] %v5327_v57 }
 0x152   :  { %v5317_v21 = vadd.f32 %v1653_v25, %v1586_v60  ;;  %v5322_v6 = vsel %vm169_vm0, 0.0, %v6548_v31  ;;  %v1455_v52 = vadd.f32 %v1391_v32, %v1326_v4  ;;  %v713_v48 = vmul.f32 %v3324_v19, %v5169_v51  ;;  %v5333_v60 = vpop.xlane.xlu0 %1826 }
 0x153   :  { %v1034_v42 = vadd.f32 %v972_v50, %v905_v40  ;;  %v845_v25 = vmul.f32 %v3326_v20, %v5322_v6  ;;  %6682 = vst [vmem:[#allocation62_spill] sm:$0xff] %v5333_v60  ;;  %v1362_v17 = vmul.f32 %v3347_v33, %v5011_v39  ;;  %v973_v32 = vmul.f32 %v3330_v23, %v4996_v10 }
 0x154   :  { %6680 = vst [vmem:[#allocation60_spill] sm:$0xff] %v5317_v21  ;;  %v1894_v31 = vsel %vm1722_vm2, %v5317_v21, 0.0  ;;  %v1587_v55 = vadd.f32 %v1523_v37, %v1455_v52  ;;  %v777_v57 = vadd.f32 %v713_v48, %v586_v22  ;;  %v1492_v50 = vmul.f32 %v3353_v36, %v5155_v1  ;;  %v5366_v48 = vpop.xlane.xlu1 %1823 }
 0x155   :  { %1895 = vadd.xlane.f32.xlu1 %v1894_v31  ;;  %v1166_v56 = vadd.f32 %v1102_v34, %v1034_v42  ;;  %v1624_v4 = vmul.f32 %v3361_v41, %v5307_v38  ;;  %v6683_v40 = vrot.slane %v5314_v0, 1  ;;  %v261_v39 = vrot.slane %v5233_v59, 7  ;;  %6686 = vst [vmem:[#allocation64_spill] sm:$0xff] %v5366_v48 }
 0x156   :  { %v5351_v31 = vadd.f32 %v1654_v12, %v1587_v55  ;;  %v906_v34 = vadd.f32 %v845_v25, %v777_v57  ;;  %v1103_v10 = vmul.f32 %v3332_v24, %v5140_v58  ;;  %v1235_v22 = vmul.f32 %v3342_v29, %v5290_v28  ;;  %v5372_v55 = vld [vmem:[#allocation2 + $0x1f0] sm:$0xff] }
 0x157   :  { %v5348_v21 = vsel %vm362_vm1, %v408_v47, %v6683_v40  ;;  %v1295_v37 = vadd.f32 %v1234_v35, %v1166_v56  ;;  %v6685_v52 = vrot.slane %v5214_v27, 7  ;;  %v615_v47 = vmul.f32 %v3322_v18, %v5064_v62  ;;  %v5374_v40 = vpop.xlane.xlu0 %1736 }
 0x158   :  { %6684 = vst [vmem:[#allocation63_spill] sm:$0xff] %v5351_v31  ;;  %v744_v12 = vmul.f32 %v3324_v19, %v5210_v15  ;;  %v1897_v56 = vsel %vm1722_vm2, %v5351_v31, 0.0  ;;  %v1035_v57 = vadd.f32 %v973_v32, %v906_v34  ;;  %6687 = vst [vmem:[#allocation65_spill] sm:$0xff] %v5374_v40  ;;  %v216_v62 = vrot.slane %v5314_v0, 7 }
 0x159   :  { %v5360_v42 = vsel %vm169_vm0, %v6685_v52, %v261_v39  ;;  %v1424_v35 = vadd.f32 %v1362_v17, %v1295_v37  ;;  %1898 = vadd.xlane.f32.xlu0 %v1897_v56  ;;  %v1363_v39 = vmul.f32 %v3347_v33, %v5048_v16  ;;  %v1002_v48 = vmul.f32 %v3330_v23, %v4943_v61 }
 0x15a   :  { %v875_v25 = vmul.f32 %v3326_v20, %v5360_v42  ;;  %v808_v52 = vadd.f32 %v744_v12, %v615_v47  ;;  %v1167_v17 = vadd.f32 %v1103_v10, %v1035_v57  ;;  %v1493_v32 = vmul.f32 %v3353_v36, %v5192_v45 }
 0x15b   :  { %v1556_v31 = vadd.f32 %v1492_v50, %v1424_v35  ;;  %v1625_v37 = vmul.f32 %v3361_v41, %v5348_v21  ;;  %v6688_v34 = vrot.slane %v5233_v59, 1  ;;  %v1134_v16 = vmul.f32 %v3332_v24, %v5087_v26 }
 0x15c   :  { %v937_v40 = vadd.f32 %v875_v25, %v808_v52  ;;  %v6552_v47 = vrot.slane %v5372_v55, 7  ;;  %v1296_v50 = vadd.f32 %v1235_v22, %v1167_v17  ;;  %v1265_v10 = vmul.f32 %v3342_v29, %v5233_v59 }
 0x15d   :  { %v5388_v56 = vsel %vm362_vm1, %v6688_v34, 0.0  ;;  %v5393_v61 = vadd.f32 %v1624_v4, %v1556_v31  ;;  %v616_v12 = vmul.f32 %v3322_v18, %v5097_v14  ;;  %v1392_v57 = vmul.f32 %v3347_v33, %v5083_v7  ;;  %v5401_v34 = vld [vmem:[#allocation2 + $0x1f8] sm:$0xff]  ;;  %v5410_v31 = vpop.xlane.xlu1 %1829 }
 0x15e   :  { %v1066_v35 = vadd.f32 %v1002_v48, %v937_v40  ;;  %v5406_v25 = vsel %vm169_vm0, 0.0, %v6552_v47  ;;  %v745_v4 = vmul.f32 %v3324_v19, %v5243_v13  ;;  %6690 = vst [vmem:[#allocation67_spill] sm:$0xff] %v5410_v31  ;;  %v1425_v14 = vadd.f32 %v1363_v39, %v1296_v50  ;;  %v5417_v40 = vpop.xlane.xlu0 %1832 }
 0x15f   :  { %6689 = vst [vmem:[#allocation66_spill] sm:$0xff] %v5393_v61  ;;  %v1804_v22 = vsel %vm1722_vm2, %v5393_v61, 0.0  ;;  %v456_v48 = vrot.slane %v5372_v55, 1  ;;  %v876_v7 = vmul.f32 %v3326_v20, %v5406_v25  ;;  %v6555_v17 = vrot.slane %v5401_v34, 1 }
 0x160   :  { %1805 = vadd.xlane.f32.xlu1 %v1804_v22  ;;  %v1198_v52 = vadd.f32 %v1134_v16, %v1066_v35  ;;  %v809_v47 = vadd.f32 %v745_v4, %v616_v12  ;;  %v1003_v60 = vmul.f32 %v3330_v23, %v5068_v3  ;;  %v1557_v31 = vadd.f32 %v1493_v32, %v1425_v14 }
 0x161   :  { %v1524_v61 = vmul.f32 %v3353_v36, %v5229_v11  ;;  %v1655_v39 = vmul.f32 %v3361_v41, %v5388_v56  ;;  %v264_v50 = vrot.slane %v5401_v34, 7  ;;  %v1135_v16 = vmul.f32 %v3332_v24, %v5214_v27 }
 0x162   :  { %v1327_v8 = vadd.f32 %v1265_v10, %v1198_v52  ;;  %v938_v49 = vadd.f32 %v876_v7, %v809_v47  ;;  %v6691_v35 = vrot.slane %v5290_v28, 7  ;;  %v5434_v3 = vadd.f32 %v1625_v37, %v1557_v31  ;;  %v5449_v37 = vpop.xlane.xlu1 %1739 }
 0x163   :  { %v587_v32 = vmul.f32 %v3322_v18, %v5136_v54  ;;  %v714_v4 = vmul.f32 %v3324_v19, %v5286_v9  ;;  %v5445_v22 = vsel %vm362_vm1, %v456_v48, %v6555_v17  ;;  %v1393_v31 = vmul.f32 %v3347_v33, %v5120_v43 }
 0x164   :  { %v5432_v12 = vsel %vm169_vm0, %v6691_v35, %v216_v62  ;;  %v1456_v47 = vadd.f32 %v1392_v57, %v1327_v8  ;;  %v1067_v14 = vadd.f32 %v1003_v60, %v938_v49  ;;  %v1266_v62 = vmul.f32 %v3342_v29, %v5372_v55  ;;  %v5457_v57 = vpop.xlane.xlu0 %1742 }
 0x165   :  { %v846_v10 = vmul.f32 %v3326_v20, %v5432_v12  ;;  %v1807_v54 = vsel %vm1722_vm2, %v5434_v3, 0.0  ;;  %v778_v7 = vadd.f32 %v714_v4, %v587_v32  ;;  %v974_v8 = vmul.f32 %v3330_v23, %v5015_v5 }
 0x166   :  { %1808 = vadd.xlane.f32.xlu0 %v1807_v54  ;;  %v1588_v48 = vadd.f32 %v1524_v61, %v1456_v47  ;;  %v1199_v49 = vadd.f32 %v1135_v16, %v1067_v14  ;;  %v1525_v60 = vmul.f32 %v3353_v36, %v5268_v2  ;;  %v1104_v52 = vmul.f32 %v3332_v24, %v5159_v44 }
 0x167   :  { %v907_v35 = vadd.f32 %v846_v10, %v778_v7  ;;  %v588_v17 = vmul.f32 %v3322_v18, %v5169_v51  ;;  %v715_v43 = vmul.f32 %v3324_v19, %v5322_v6  ;;  %v5468_v5 = vmul.f32 0.0, %v3326_v20 }
 0x168   :  { %v5470_v32 = vadd.f32 %v1655_v39, %v1588_v48  ;;  %v1328_v61 = vadd.f32 %v1266_v62, %v1199_v49  ;;  %v1656_v16 = vmul.f32 %v3361_v41, %v5445_v22  ;;  %v6692_v4 = vrot.slane %v5314_v0, 1  ;;  %v5489_v48 = vpop.xlane.xlu1 %1835 }
 0x169   :  { %v1036_v10 = vadd.f32 %v974_v8, %v907_v35  ;;  %v1236_v51 = vmul.f32 %v3342_v29, %v5314_v0  ;;  %v779_v14 = vadd.f32 %v715_v43, %v588_v17  ;;  %v975_v6 = vmul.f32 %v3330_v23, %v5140_v58 }
 0x16a   :  { %v5477_v47 = vsel %vm362_vm1, %v6692_v4, 0.0  ;;  %v1900_v39 = vsel %vm1722_vm2, %v5470_v32, 0.0  ;;  %v1457_v62 = vadd.f32 %v1393_v31, %v1328_v61  ;;  %v1364_v54 = vmul.f32 %v3347_v33, %v5155_v1  ;;  %v5497_v31 = vpop.xlane.xlu0 %1838 }
 0x16b   :  { %v1494_v7 = vmul.f32 %v3353_v36, %v5307_v38  ;;  %1901 = vadd.xlane.f32.xlu1 %v1900_v39  ;;  %v1168_v8 = vadd.f32 %v1104_v52, %v1036_v10  ;;  %v908_v49 = vadd.f32 %v5468_v5, %v779_v14  ;;  %v1105_v17 = vmul.f32 %v3332_v24, %v5290_v28 }
 0x16c   :  { %v6693_v58 = vrot.slane %v5372_v55, 7  ;;  %v1589_v43 = vadd.f32 %v1525_v60, %v1457_v62  ;;  %v617_v1 = vmul.f32 %v3322_v18, %v5210_v15  ;;  %v746_v61 = vmul.f32 %v3324_v19, %v5360_v42 }
 0x16d   :  { %v1297_v4 = vadd.f32 %v1236_v51, %v1168_v8  ;;  %v1626_v10 = vmul.f32 %v3361_v41, %v5477_v47  ;;  %v1037_v28 = vadd.f32 %v975_v6, %v908_v49  ;;  %v5507_v14 = vmul.f32 0.0, %v3342_v29  ;;  %v5525_v49 = vpop.xlane.xlu1 %1745 }
 0x16e   :  { %v265_v35 = vsel %vm169_vm0, %v6693_v58, %v264_v50  ;;  %v5509_v50 = vadd.f32 %v1656_v16, %v1589_v43  ;;  %v1365_v60 = vmul.f32 %v3347_v33, %v5192_v45  ;;  %v810_v39 = vadd.f32 %v746_v61, %v617_v1  ;;  %v5536_v1 = vpop.xlane.xlu0 %1748 }
 0x16f   :  { %v877_v52 = vmul.f32 %v3326_v20, %v265_v35  ;;  %v1004_v15 = vmul.f32 %v3330_v23, %v5087_v26  ;;  %v1426_v62 = vadd.f32 %v1364_v54, %v1297_v4  ;;  %v1169_v58 = vadd.f32 %v1105_v17, %v1037_v28 }
 0x170   :  { %v1495_v20 = vmul.f32 %v3353_v36, %v5348_v21  ;;  %v1136_v51 = vmul.f32 %v3332_v24, %v5233_v59  ;;  %v1903_v6 = vsel %vm1722_vm2, %v5509_v50, 0.0  ;;  %v618_v8 = vmul.f32 %v3322_v18, %v5243_v13 }
 0x171   :  { %v939_v16 = vadd.f32 %v877_v52, %v810_v39  ;;  %v747_v45 = vmul.f32 %v3324_v19, %v5406_v25  ;;  %1904 = vadd.xlane.f32.xlu0 %v1903_v6  ;;  %v1558_v26 = vadd.f32 %v1494_v7, %v1426_v62  ;;  %v1298_v54 = vadd.f32 %v5507_v14, %v1169_v58 }
 0x172   :  { %v5529_v21 = vmul.f32 0.0, %v3361_v41  ;;  %v6694_v17 = vrot.slane %v5401_v34, 1  ;;  %v1267_v25 = vmul.f32 %v3342_v29, %v5401_v34  ;;  %v1005_v7 = vmul.f32 %v3330_v23, %v5214_v27 }
 0x173   :  { %v1068_v13 = vadd.f32 %v1004_v15, %v939_v16  ;;  %v811_v61 = vadd.f32 %v747_v45, %v618_v8  ;;  %v5542_v52 = vadd.f32 %v1626_v10, %v1558_v26  ;;  %v1427_v4 = vadd.f32 %v1365_v60, %v1298_v54  ;;  %v5561_v16 = vpop.xlane.xlu1 %1841  ;;  %v5570_v45 = vpop.xlane.xlu0 %1844 }
 0x174   :  { %v5534_v43 = vsel %vm362_vm1, %v6694_v17, 0.0  ;;  %v589_v28 = vmul.f32 %v3322_v18, %v5286_v9  ;;  %v716_v39 = vmul.f32 %v3324_v19, %v5432_v12  ;;  %v1394_v15 = vmul.f32 %v3347_v33, %v5229_v11 }
 0x175   :  { %v1200_v62 = vadd.f32 %v1136_v51, %v1068_v13  ;;  %v940_v58 = vadd.f32 %v5468_v5, %v811_v61  ;;  %v1137_v29 = vmul.f32 %v3332_v24, %v5372_v55  ;;  %v1810_v27 = vsel %vm1722_vm2, %v5542_v52, 0.0 }
 0x176   :  { %v1559_v10 = vadd.f32 %v1495_v20, %v1427_v4  ;;  %v780_v60 = vadd.f32 %v716_v39, %v589_v28  ;;  %v976_v9 = vmul.f32 %v3330_v23, %v5159_v44  ;;  %1811 = vadd.xlane.f32.xlu1 %v1810_v27  ;;  %v1526_v12 = vmul.f32 %v3353_v36, %v5388_v56 }
 0x177   :  { %v1329_v6 = vadd.f32 %v1267_v25, %v1200_v62  ;;  %v1069_v51 = vadd.f32 %v1005_v7, %v940_v58  ;;  %v619_v11 = vmul.f32 %v3322_v18, %v5360_v42  ;;  %v1106_v8 = vmul.f32 %v3332_v24, %v5314_v0 }
 0x178   :  { %v5564_v55 = vadd.f32 %v5529_v21, %v1559_v10  ;;  %v909_v20 = vadd.f32 %v5468_v5, %v780_v60  ;;  %v748_v44 = vmul.f32 %v3324_v19, %v265_v35  ;;  %v1657_v54 = vmul.f32 %v3361_v41, %v5534_v43  ;;  %v6695_v10 = vld [vmem:[#allocation8_spill] sm:$0xff] }
 0x179   :  { %v1458_v26 = vadd.f32 %v1394_v15, %v1329_v6  ;;  %v1201_v17 = vadd.f32 %v1137_v29, %v1069_v51  ;;  %v1395_v18 = vmul.f32 %v3347_v33, %v5268_v2  ;;  %v1006_v0 = vmul.f32 %v3330_v23, %v5233_v59 }
 0x17a   :  { %v1813_v42 = vsel %vm1722_vm2, %v5564_v55, 0.0  ;;  %v1038_v13 = vadd.f32 %v976_v9, %v909_v20  ;;  %v812_v25 = vadd.f32 %v748_v44, %v619_v11  ;;  %v1527_v61 = vmul.f32 %v3353_v36, %v5445_v22  ;;  %v5595_v22 = vpop.xlane.xlu1 %1751  ;;  %v6696_v9 = vld [vmem:[#allocation59_spill] sm:$0xff] }
 0x17b   :  { %1814 = vadd.xlane.f32.xlu0 %v1813_v42  ;;  %v1590_v19 = vadd.f32 %v1526_v12, %v1458_v26  ;;  %v1330_v35 = vadd.f32 %v5507_v14, %v1201_v17  ;;  %v1916_v41 = vmul.f32 0.03125, %v5203_v63  ;;  %v1366_v2 = vmul.f32 %v3347_v33, %v5307_v38  ;;  %v6698_v26 = vld [vmem:[#allocation61_spill] sm:$0xff]  ;;  %v6700_v42 = vld [vmem:[#allocation62_spill] sm:$0xff] }
 0x17c   :  { %v1170_v7 = vadd.f32 %v1106_v8, %v1038_v13  ;;  %v941_v4 = vadd.f32 %v5468_v5, %v812_v25  ;;  %v1138_v28 = vmul.f32 %v3332_v24, %v5401_v34  ;;  %v1918_v62 = vmul.f32 0.03125, %v5279_v30  ;;  %v5600_v5 = vpop.xlane.xlu0 %1754  ;;  %v6697_v8 = vld [vmem:[#allocation9_spill] sm:$0xff] }
 0x17d   :  { %v5589_v39 = vadd.f32 %v1657_v54, %v1590_v19  ;;  %v1459_v23 = vadd.f32 %v1395_v18, %v1330_v35  ;;  %v5592_v59 = vsub.f32 %v3447_v53, %v1916_v41  ;;  %v1496_v38 = vmul.f32 %v3353_v36, %v5477_v47  ;;  %v6701_v35 = vld [vmem:[#allocation11_spill] sm:$0xff] }
 0x17e   :  { %v1299_v63 = vadd.f32 %v5507_v14, %v1170_v7  ;;  %v1070_v15 = vadd.f32 %v1006_v0, %v941_v4  ;;  %v1396_v30 = vmul.f32 %v3347_v33, %v5388_v56  ;;  %v1917_v29 = vmul.f32 0.03125, %v5249_v46  ;;  %v5621_v46 = vpop.xlane.xlu1 %1847  ;;  %v6702_v7 = vld [vmem:[#allocation64_spill] sm:$0xff] }
 0x17f   :  { %v1906_v24 = vsel %vm1722_vm2, %v5589_v39, 0.0  ;;  %v1591_v34 = vadd.f32 %v1527_v61, %v1459_v23  ;;  %v5611_v47 = vsub.f32 %v6695_v10, %v1918_v62  ;;  %v2044_v60 = vmul.f32 %v5592_v59, %v5592_v59 }
 0x180   :  { %1907 = vadd.xlane.f32.xlu1 %v1906_v24  ;;  %v1428_v58 = vadd.f32 %v1366_v2, %v1299_v63  ;;  %v1202_v53 = vadd.f32 %v1138_v28, %v1070_v15  ;;  %v1948_v6 = vmul.f32 0.03125, %v6696_v9  ;;  %v1528_v11 = vmul.f32 %v3353_v36, %v5534_v43  ;;  %v5630_v17 = vpop.xlane.xlu0 %1850  ;;  %v6699_v36 = vld [vmem:[#allocation10_spill] sm:$0xff]  ;;  %v6703_v28 = vld [vmem:[#allocation12_spill] sm:$0xff]  ;;  %v6704_v63 = vld [vmem:[#allocation65_spill] sm:$0xff] }
 0x181   :  { %v5608_v27 = vadd.f32 %v5529_v21, %v1591_v34  ;;  %v5627_v44 = vsub.f32 %v6697_v8, %v1917_v29  ;;  %v1919_v54 = vmul.f32 0.03125, %v6698_v26  ;;  %v2046_v18 = vmul.f32 %v5611_v47, %v5611_v47  ;;  %v6706_v29 = vld [vmem:[#allocation67_spill] sm:$0xff]  ;;  %v6707_v9 = vld [vmem:[#allocation14_spill] sm:$0xff] }
 0x182   :  { %v1560_v12 = vadd.f32 %v1496_v38, %v1428_v58  ;;  %v1331_v51 = vadd.f32 %v5507_v14, %v1202_v53  ;;  %v2108_v14 = vsel %vm1722_vm2, %v2044_v60, 0.0  ;;  %v5634_v43 = vsub.f32 %v6699_v36, %v1948_v6  ;;  %v5657_v38 = vpop.xlane.xlu1 %1757  ;;  %v6705_v58 = vld [vmem:[#allocation13_spill] sm:$0xff] }
 0x183   :  { %v1909_v33 = vsel %vm1722_vm2, %v5608_v27, 0.0  ;;  %v1950_v13 = vmul.f32 0.03125, %v6700_v42  ;;  %v5645_v61 = vsub.f32 %v6701_v35, %v1919_v54  ;;  %v2045_v41 = vmul.f32 %v5627_v44, %v5627_v44 }
 0x184   :  { %1910 = vadd.xlane.f32.xlu0 %v1909_v33  ;;  %v5624_v56 = vadd.f32 %v5529_v21, %v1560_v12  ;;  %v1460_v20 = vadd.f32 %v1396_v30, %v1331_v51  ;;  %v1949_v2 = vmul.f32 0.03125, %v6702_v7  ;;  %v2114_v4 = vsel %vm1722_vm2, %v2046_v18, 0.0  ;;  %v5661_v24 = vpop.xlane.xlu0 %1760  ;;  %v6709_v18 = vld [vmem:[#allocation16_spill] sm:$0xff] }
 0x185   :  { %v5652_v23 = vsub.f32 %v6703_v28, %v1950_v13  ;;  %v2076_v62 = vmul.f32 %v5634_v43, %v5634_v43  ;;  %v2111_v34 = vsel %vm1722_vm2, %v2045_v41, 0.0  ;;  %v2047_v30 = vmul.f32 %v5645_v61, %v5645_v61 }
 0x186   :  { %v1816_v25 = vsel %vm1722_vm2, %v5624_v56, 0.0  ;;  %v1592_v0 = vadd.f32 %v1528_v11, %v1460_v20  ;;  %v5665_v53 = vsub.f32 %v6705_v58, %v1949_v2  ;;  %v1951_v10 = vmul.f32 0.03125, %v6706_v29  ;;  %v5677_v11 = vpop.xlane.xlu1 %1853  ;;  %v6708_v20 = vld [vmem:[#allocation15_spill] sm:$0xff]  ;;  %v6711_v2 = vld [vmem:[#allocation18_spill] sm:$0xff]  ;;  %v6713_v29 = vld [vmem:[#allocation20_spill] sm:$0xff] }
 0x187   :  { %1817 = vadd.xlane.f32.xlu1 %v1816_v25  ;;  %v2204_v60 = vsel %vm1722_vm2, %v2076_v62, 0.0  ;;  %v2078_v12 = vmul.f32 %v5652_v23, %v5652_v23  ;;  %v1952_v51 = vmul.f32 0.03125, %v5417_v40  ;;  %v2117_v33 = vsel %vm1722_vm2, %v2047_v30, 0.0 }
 0x188   :  { %v5642_v19 = vadd.f32 %v5529_v21, %v1592_v0  ;;  %2109 = vadd.xlane.f32.xlu0 %v2108_v14  ;;  %v1920_v21 = vmul.f32 0.03125, %v6704_v63  ;;  %v5681_v8 = vsub.f32 %v6708_v20, %v1951_v10  ;;  %v2077_v26 = vmul.f32 %v5665_v53, %v5665_v53  ;;  %v5686_v14 = vpop.xlane.xlu0 %1856  ;;  %v6710_v0 = vld [vmem:[#allocation17_spill] sm:$0xff] }
 0x189   :  { %v1921_v54 = vmul.f32 0.03125, %v5449_v37  ;;  %v2210_v36 = vsel %vm1722_vm2, %v2078_v12, 0.0  ;;  %v5690_v40 = vsub.f32 %v6709_v18, %v1952_v51  ;;  %v1922_v13 = vmul.f32 0.03125, %v5457_v57  ;;  %v6714_v51 = vld [vmem:[#allocation21_spill] sm:$0xff] }
 0x18a   :  { %v1912_v15 = vsel %vm1722_vm2, %v5642_v19, 0.0  ;;  %v5672_v6 = vsub.f32 %v6707_v9, %v1920_v21  ;;  %v2207_v25 = vsel %vm1722_vm2, %v2077_v26, 0.0  ;;  %v2079_v37 = vmul.f32 %v5681_v8, %v5681_v8  ;;  %v5709_v62 = vpop.xlane.xlu1 %1763 }
 0x18b   :  { %1913 = vadd.xlane.f32.xlu1 %v1912_v15  ;;  %v5697_v35 = vsub.f32 %v6710_v0, %v1921_v54  ;;  %v1953_v41 = vmul.f32 0.03125, %v5489_v48  ;;  %v2080_v57 = vmul.f32 %v5690_v40, %v5690_v40  ;;  %v1954_v28 = vmul.f32 0.03125, %v5497_v31  ;;  %v6712_v15 = vld [vmem:[#allocation19_spill] sm:$0xff] }
 0x18c   :  { %2115 = vadd.xlane.f32.xlu0 %v2114_v4  ;;  %v2048_v42 = vmul.f32 %v5672_v6, %v5672_v6  ;;  %v5704_v4 = vsub.f32 %v6711_v2, %v1922_v13  ;;  %v5711_v63 = vpop.xlane.xlu0 %1766  ;;  %v2213_v21 = vsel %vm1722_vm2, %v2079_v37, 0.0  ;;  %v1923_v58 = vmul.f32 0.03125, %v5525_v49 }
 0x18d   :  { %v5715_v48 = vsub.f32 %v6712_v15, %v1953_v41  ;;  %v2216_v30 = vsel %vm1722_vm2, %v2080_v57, 0.0  ;;  %v5722_v31 = vsub.f32 %v6713_v29, %v1954_v28  ;;  %v1955_v20 = vmul.f32 0.03125, %v5561_v16 }
 0x18e   :  { %v2120_v7 = vsel %vm1722_vm2, %v2048_v42, 0.0  ;;  %v2050_v10 = vmul.f32 %v5704_v4, %v5704_v4  ;;  %v5727_v9 = vpop.xlane.xlu1 %1859  ;;  %v1956_v42 = vmul.f32 0.03125, %v5570_v45  ;;  %v1925_v37 = vmul.f32 0.03125, %v5595_v22 }
 0x18f   :  { %2112 = vadd.xlane.f32.xlu1 %v2111_v34  ;;  %v2049_v34 = vmul.f32 %v5697_v35, %v5697_v35  ;;  %v2081_v49 = vmul.f32 %v5715_v48, %v5715_v48  ;;  %v2082_v18 = vmul.f32 %v5722_v31, %v5722_v31  ;;  %v1926_v57 = vmul.f32 0.03125, %v5600_v5 }
 0x190   :  { %2205 = vadd.xlane.f32.xlu0 %v2204_v60  ;;  %v1924_v60 = vmul.f32 0.03125, %v5536_v1  ;;  %v5736_v26 = vpop.xlane.xlu0 %1862  ;;  %v2126_v54 = vsel %vm1722_vm2, %v2050_v10, 0.0  ;;  %v6719_v10 = vld [vmem:[#allocation26_spill] sm:$0xff]  ;;  %vm3246_vm3 = vmmov 0   ;;  %vm2919_vm4 = vcmask 1041409  }
 0x191   :  { %v2123_v12 = vsel %vm1722_vm2, %v2049_v34, 0.0  ;;  %v2219_v13 = vsel %vm1722_vm2, %v2081_v49, 0.0  ;;  %v2222_v41 = vsel %vm1722_vm2, %v2082_v18, 0.0  ;;  %v6718_v34 = vld [vmem:[#allocation25_spill] sm:$0xff]  ;;  %v5772_v5 = vsub.f32 %v6719_v10, %v1926_v57 }
 0x192   :  { %v5759_v28 = vpop.xlane.xlu1 %1769  ;;  %v5765_v22 = vsub.f32 %v6718_v34, %v1925_v37  ;;  %vm3008_vm6 = vcmask 123904  }
 0x193   :  { %2118 = vadd.xlane.f32.xlu1 %v2117_v33  ;;  %v5731_v33 = vsub.f32 %v6714_v51, %v1923_v58 }
 0x194   :  { %2211 = vadd.xlane.f32.xlu0 %v2210_v36  ;;  %v6715_v36 = vld [vmem:[#allocation22_spill] sm:$0xff] }
 0x195   :  { %v5740_v1 = vsub.f32 %v6715_v36, %v1924_v60  ;;  %v2051_v16 = vmul.f32 %v5731_v33, %v5731_v33  ;;  %v1927_v36 = vmul.f32 0.03125, %v5657_v38 }
 0x196   :  { %v1866_v51 = vpop.xlane.xlu1 %1865 }
 0x197   :  { %2208 = vadd.xlane.f32.xlu1 %v2207_v25  ;;  %v6716_v25 = vld [vmem:[#allocation23_spill] sm:$0xff]  ;;  %v2052_v45 = vmul.f32 %v5740_v1, %v5740_v1  ;;  %v2129_v15 = vsel %vm1722_vm2, %v2051_v16, 0.0  ;;  %v1928_v16 = vmul.f32 0.03125, %v5661_v24 }
 0x198   :  { %2121 = vadd.xlane.f32.xlu0 %v2120_v7  ;;  %v5747_v0 = vsub.f32 %v6716_v25, %v1955_v20  ;;  %v6717_v7 = vld [vmem:[#allocation24_spill] sm:$0xff]  ;;  %v6720_v20 = vld [vmem:[#allocation27_spill] sm:$0xff] }
 0x199   :  { %v5754_v2 = vsub.f32 %v6717_v7, %v1956_v42  ;;  %v2132_v29 = vsel %vm1722_vm2, %v2052_v45, 0.0  ;;  %v1959_v45 = vmul.f32 0.03125, %v5677_v11 }
 0x19a   :  { %v2083_v58 = vmul.f32 %v5747_v0, %v5747_v0 }
 0x19b   :  { %2214 = vadd.xlane.f32.xlu1 %v2213_v21  ;;  %v5761_v21 = vpop.xlane.xlu0 %1772  ;;  %v2084_v60 = vmul.f32 %v5754_v2, %v5754_v2 }
 0x19c   :  { %2217 = vadd.xlane.f32.xlu0 %v2216_v30  ;;  %v1957_v30 = vmul.f32 0.03125, %v5621_v46  ;;  %v2225_v49 = vsel %vm1722_vm2, %v2083_v58, 0.0  ;;  %v2053_v46 = vmul.f32 %v5765_v22, %v5765_v22  ;;  %v1960_v58 = vmul.f32 0.03125, %v5686_v14 }
 0x19d   :  { %v2228_v42 = vsel %vm1722_vm2, %v2084_v60, 0.0  ;;  %v6724_v60 = vld [vmem:[#allocation31_spill] sm:$0xff] }
 0x19e   :  { %v2135_v37 = vsel %vm1722_vm2, %v2053_v46, 0.0  ;;  %v6725_v46 = vld [vmem:[#allocation32_spill] sm:$0xff] }
 0x19f   :  { %2124 = vadd.xlane.f32.xlu1 %v2123_v12  ;;  %v1958_v12 = vmul.f32 0.03125, %v5630_v17  ;;  %v1869_v18 = vpop.xlane.xlu0 %1868  ;;  %v2054_v17 = vmul.f32 %v5772_v5, %v5772_v5 }
 0x1a0   :  { %2127 = vadd.xlane.f32.xlu0 %v2126_v54  ;;  %v5779_v54 = vsub.f32 %v6720_v20, %v1957_v30  ;;  %v1776_v30 = vpop.xlane.xlu1 %1775 }
 0x1a1   :  { %v2138_v57 = vsel %vm1722_vm2, %v2054_v17, 0.0 }
 0x1a2   :  { %v2085_v38 = vmul.f32 %v5779_v54, %v5779_v54 }
 0x1a3   :  { %2220 = vadd.xlane.f32.xlu1 %v2219_v13  ;;  %v6721_v13 = vld [vmem:[#allocation28_spill] sm:$0xff] }
 0x1a4   :  { %2223 = vadd.xlane.f32.xlu0 %v2222_v41  ;;  %v5786_v25 = vsub.f32 %v6721_v13, %v1958_v12  ;;  %v6722_v41 = vld [vmem:[#allocation29_spill] sm:$0xff]  ;;  %v2231_v10 = vsel %vm1722_vm2, %v2085_v38, 0.0  ;;  %v5807_v12 = vsub.f32 %v6724_v60, %v1959_v45  ;;  %v1872_v13 = vpop.xlane.xlu1 %1871 }
 0x1a5   :  { %v5793_v7 = vsub.f32 %v6722_v41, %v1927_v36  ;;  %v5814_v36 = vsub.f32 %v6725_v46, %v1960_v58  ;;  %v1961_v41 = vmul.f32 0.03125, %v5727_v9 }
 0x1a6   :  { %v2086_v24 = vmul.f32 %v5786_v25, %v5786_v25 }
 0x1a7   :  { %2130 = vadd.xlane.f32.xlu1 %v2129_v15  ;;  %v6723_v15 = vld [vmem:[#allocation30_spill] sm:$0xff]  ;;  %v2055_v11 = vmul.f32 %v5793_v7, %v5793_v7 }
 0x1a8   :  { %2133 = vadd.xlane.f32.xlu0 %v2132_v29  ;;  %v5800_v34 = vsub.f32 %v6723_v15, %v1928_v16  ;;  %v1779_v29 = vpop.xlane.xlu0 %1778  ;;  %v2234_v20 = vsel %vm1722_vm2, %v2086_v24, 0.0  ;;  %v6726_v16 = vld [vmem:[#allocation33_spill] sm:$0xff]  ;;  %v1962_v24 = vmul.f32 0.03125, %v5736_v26 }
 0x1a9   :  { %v2141_v17 = vsel %vm1722_vm2, %v2055_v11, 0.0  ;;  %v1931_v11 = vmul.f32 0.03125, %v5759_v28 }
 0x1aa   :  { %v2056_v14 = vmul.f32 %v5800_v34, %v5800_v34 }
 0x1ab   :  { %2226 = vadd.xlane.f32.xlu1 %v2225_v49  ;;  %v1929_v49 = vmul.f32 0.03125, %v5709_v62  ;;  %v2087_v62 = vmul.f32 %v5807_v12, %v5807_v12 }
 0x1ac   :  { %2229 = vadd.xlane.f32.xlu0 %v2228_v42  ;;  %v1930_v42 = vmul.f32 0.03125, %v5711_v63  ;;  %v1875_v38 = vpop.xlane.xlu0 %1874  ;;  %v2144_v45 = vsel %vm1722_vm2, %v2056_v14, 0.0  ;;  %v2088_v63 = vmul.f32 %v5814_v36, %v5814_v36  ;;  %v1932_v14 = vmul.f32 0.03125, %v5761_v21 }
 0x1ad   :  { %v2237_v58 = vsel %vm1722_vm2, %v2087_v62, 0.0  ;;  %v6730_v62 = vld [vmem:[#allocation37_spill] sm:$0xff] }
 0x1af   :  { %2136 = vadd.xlane.f32.xlu1 %v2135_v37  ;;  %v5821_v37 = vsub.f32 %v6726_v16, %v1929_v49  ;;  %v2240_v49 = vsel %vm1722_vm2, %v2088_v63, 0.0  ;;  %v6732_v63 = vld [vmem:[#allocation38_spill] sm:$0xff] }
 0x1b0   :  { %2139 = vadd.xlane.f32.xlu0 %v2138_v57  ;;  %v6727_v57 = vld [vmem:[#allocation34_spill] sm:$0xff] }
 0x1b1   :  { %v5828_v15 = vsub.f32 %v6727_v57, %v1930_v42  ;;  %v2057_v9 = vmul.f32 %v5821_v37, %v5821_v37  ;;  %v1782_v42 = vpop.xlane.xlu1 %1781 }
 0x1b3   :  { %2232 = vadd.xlane.f32.xlu1 %v2231_v10  ;;  %v6728_v10 = vld [vmem:[#allocation35_spill] sm:$0xff]  ;;  %v2058_v26 = vmul.f32 %v5828_v15, %v5828_v15  ;;  %v2147_v16 = vsel %vm1722_vm2, %v2057_v9, 0.0 }
 0x1b4   :  { %2235 = vadd.xlane.f32.xlu0 %v2234_v20  ;;  %v5835_v60 = vsub.f32 %v6728_v10, %v1961_v41  ;;  %v6729_v20 = vld [vmem:[#allocation36_spill] sm:$0xff]  ;;  %v5849_v41 = vsub.f32 %v6730_v62, %v1931_v11  ;;  %v1964_v10 = vmul.f32 0.03125, %v1869_v18  ;;  %v6733_v11 = vld [vmem:[#allocation39_spill] sm:$0xff] }
 0x1b5   :  { %v5842_v46 = vsub.f32 %v6729_v20, %v1962_v24  ;;  %v2150_v57 = vsel %vm1722_vm2, %v2058_v26, 0.0  ;;  %v5855_v24 = vsub.f32 %v6732_v63, %v1932_v14  ;;  %v1933_v20 = vmul.f32 0.03125, %v1776_v30  ;;  %v6735_v62 = vld [vmem:[#allocation40_spill] sm:$0xff] }
 0x1b6   :  { %6731 = vst [vmem:[#allocation8_spill] sm:$0xff] %v5849_v41  ;;  %v2089_v28 = vmul.f32 %v5835_v60, %v5835_v60  ;;  %v5867_v63 = vsub.f32 %v6735_v62, %v1964_v10 }
 0x1b7   :  { %2142 = vadd.xlane.f32.xlu1 %v2141_v17  ;;  %v1785_v17 = vpop.xlane.xlu0 %1784  ;;  %v2090_v21 = vmul.f32 %v5842_v46, %v5842_v46  ;;  %v2060_v18 = vmul.f32 %v5855_v24, %v5855_v24 }
 0x1b8   :  { %2145 = vadd.xlane.f32.xlu0 %v2144_v45  ;;  %v1963_v45 = vmul.f32 0.03125, %v1866_v51  ;;  %v2243_v9 = vsel %vm1722_vm2, %v2089_v28, 0.0  ;;  %v2059_v51 = vmul.f32 %v5849_v41, %v5849_v41  ;;  %6736 = vst [vmem:[#allocation9_spill] sm:$0xff] %v5867_v63  ;;  %v6739_v41 = vld [vmem:[#allocation42_spill] sm:$0xff]  ;;  %v2092_v62 = vmul.f32 %v5867_v63, %v5867_v63 }
 0x1b9   :  { %v2246_v14 = vsel %vm1722_vm2, %v2090_v21, 0.0  ;;  %v2156_v21 = vsel %vm1722_vm2, %v2060_v18, 0.0  ;;  %v1935_v18 = vmul.f32 0.03125, %v1782_v42  ;;  %v1936_v63 = vmul.f32 0.03125, %v1785_v17 }
 0x1ba   :  { %v2153_v28 = vsel %vm1722_vm2, %v2059_v51, 0.0 }
 0x1bb   :  { %2238 = vadd.xlane.f32.xlu1 %v2237_v58  ;;  %v1878_v58 = vpop.xlane.xlu1 %1877  ;;  %v1881_v26 = vpop.xlane.xlu0 %1880 }
 0x1bc   :  { %2241 = vadd.xlane.f32.xlu0 %v2240_v49  ;;  %v5861_v49 = vsub.f32 %v6733_v11, %v1963_v45  ;;  %v6737_v45 = vld [vmem:[#allocation41_spill] sm:$0xff]  ;;  %v1965_v11 = vmul.f32 0.03125, %v1872_v13 }
 0x1be   :  { %6734 = vst [vmem:[#allocation59_spill] sm:$0xff] %v5861_v49  ;;  %v2091_v30 = vmul.f32 %v5861_v49, %v5861_v49 }
 0x1bf   :  { %2148 = vadd.xlane.f32.xlu1 %v2147_v16  ;;  %v1934_v16 = vmul.f32 0.03125, %v1779_v29  ;;  %v1966_v29 = vmul.f32 0.03125, %v1875_v38 }
 0x1c0   :  { %2151 = vadd.xlane.f32.xlu0 %v2150_v57  ;;  %v5873_v57 = vsub.f32 %v6737_v45, %v1933_v20  ;;  %v2249_v51 = vsel %vm1722_vm2, %v2091_v30, 0.0  ;;  %v6740_v20 = vld [vmem:[#allocation43_spill] sm:$0xff] }
 0x1c1   :  { %v5879_v10 = vsub.f32 %v6739_v41, %v1934_v16  ;;  %v5885_v45 = vsub.f32 %v6740_v20, %v1965_v11  ;;  %v2252_v41 = vsel %vm1722_vm2, %v2092_v62, 0.0  ;;  %v6742_v16 = vld [vmem:[#allocation44_spill] sm:$0xff]  ;;  %v6743_v11 = vld [vmem:[#allocation45_spill] sm:$0xff]  ;;  %v1967_v20 = vmul.f32 0.03125, %v1878_v58 }
 0x1c2   :  { %6738 = vst [vmem:[#allocation61_spill] sm:$0xff] %v5873_v57  ;;  %v2061_v13 = vmul.f32 %v5873_v57, %v5873_v57  ;;  %v5891_v49 = vsub.f32 %v6742_v16, %v1966_v29  ;;  %v6745_v16 = vld [vmem:[#allocation46_spill] sm:$0xff] }
 0x1c3   :  { %2244 = vadd.xlane.f32.xlu1 %v2243_v9  ;;  %v1788_v9 = vpop.xlane.xlu1 %1787  ;;  %6741 = vst [vmem:[#allocation10_spill] sm:$0xff] %v5885_v45  ;;  %v2062_v38 = vmul.f32 %v5879_v10, %v5879_v10  ;;  %v2093_v42 = vmul.f32 %v5885_v45, %v5885_v45  ;;  %v5903_v57 = vsub.f32 %v6745_v16, %v1936_v63  ;;  %v6749_v45 = vld [vmem:[#allocation48_spill] sm:$0xff] }
 0x1c4   :  { %2247 = vadd.xlane.f32.xlu0 %v2246_v14  ;;  %v1791_v14 = vpop.xlane.xlu0 %1790  ;;  %v2159_v30 = vsel %vm1722_vm2, %v2061_v13, 0.0  ;;  %v2094_v17 = vmul.f32 %v5891_v49, %v5891_v49 }
 0x1c5   :  { %v2162_v29 = vsel %vm1722_vm2, %v2062_v38, 0.0  ;;  %6746 = vst [vmem:[#allocation11_spill] sm:$0xff] %v5903_v57  ;;  %v2255_v13 = vsel %vm1722_vm2, %v2093_v42, 0.0  ;;  %v2064_v16 = vmul.f32 %v5903_v57, %v5903_v57 }
 0x1c6   :  { %v2258_v38 = vsel %vm1722_vm2, %v2094_v17, 0.0 }
 0x1c7   :  { %2154 = vadd.xlane.f32.xlu1 %v2153_v28  ;;  %v1884_v28 = vpop.xlane.xlu1 %1883 }
 0x1c8   :  { %2157 = vadd.xlane.f32.xlu0 %v2156_v21  ;;  %v5897_v21 = vsub.f32 %v6743_v11, %v1935_v18  ;;  %v1887_v62 = vpop.xlane.xlu0 %1886  ;;  %v6747_v18 = vld [vmem:[#allocation47_spill] sm:$0xff]  ;;  %v1937_v11 = vmul.f32 0.03125, %v1788_v9  ;;  %v1969_v17 = vmul.f32 0.03125, %v1884_v28 }
 0x1c9   :  { %v1970_v57 = vmul.f32 0.03125, %v1887_v62 }
 0x1ca   :  { %6744 = vst [vmem:[#allocation62_spill] sm:$0xff] %v5897_v21  ;;  %v2063_v58 = vmul.f32 %v5897_v21, %v5897_v21 }
 0x1cb   :  { %2250 = vadd.xlane.f32.xlu1 %v2249_v51  ;;  %v1968_v51 = vmul.f32 0.03125, %v1881_v26  ;;  %v1938_v26 = vmul.f32 0.03125, %v1791_v14 }
 0x1cc   :  { %2253 = vadd.xlane.f32.xlu0 %v2252_v41  ;;  %v5909_v41 = vsub.f32 %v6747_v18, %v1967_v20  ;;  %v2165_v42 = vsel %vm1722_vm2, %v2063_v58, 0.0  ;;  %v6750_v20 = vld [vmem:[#allocation49_spill] sm:$0xff] }
 0x1cd   :  { %v5915_v63 = vsub.f32 %v6749_v45, %v1968_v51  ;;  %v5921_v18 = vsub.f32 %v6750_v20, %v1937_v11  ;;  %v2168_v45 = vsel %vm1722_vm2, %v2064_v16, 0.0  ;;  %v6752_v51 = vld [vmem:[#allocation50_spill] sm:$0xff]  ;;  %v6753_v11 = vld [vmem:[#allocation51_spill] sm:$0xff] }
 0x1ce   :  { %6748 = vst [vmem:[#allocation64_spill] sm:$0xff] %v5909_v41  ;;  %v2095_v9 = vmul.f32 %v5909_v41, %v5909_v41  ;;  %v5927_v21 = vsub.f32 %v6752_v51, %v1938_v26  ;;  %v6755_v51 = vld [vmem:[#allocation52_spill] sm:$0xff] }
 0x1cf   :  { %2160 = vadd.xlane.f32.xlu1 %v2159_v30  ;;  %v1794_v30 = vpop.xlane.xlu1 %1793  ;;  %6751 = vst [vmem:[#allocation12_spill] sm:$0xff] %v5921_v18  ;;  %v2096_v14 = vmul.f32 %v5915_v63, %v5915_v63  ;;  %v2065_v28 = vmul.f32 %v5921_v18, %v5921_v18  ;;  %v5939_v41 = vsub.f32 %v6755_v51, %v1970_v57  ;;  %v6758_v18 = vld [vmem:[#allocation54_spill] sm:$0xff] }
 0x1d0   :  { %2163 = vadd.xlane.f32.xlu0 %v2162_v29  ;;  %v1797_v29 = vpop.xlane.xlu0 %1796  ;;  %v2261_v58 = vsel %vm1722_vm2, %v2095_v9, 0.0  ;;  %v1939_v20 = vmul.f32 0.03125, %v1794_v30  ;;  %v2066_v62 = vmul.f32 %v5927_v21, %v5927_v21 }
 0x1d1   :  { %v2264_v26 = vsel %vm1722_vm2, %v2096_v14, 0.0  ;;  %6756 = vst [vmem:[#allocation13_spill] sm:$0xff] %v5939_v41  ;;  %v2171_v9 = vsel %vm1722_vm2, %v2065_v28, 0.0  ;;  %v2098_v51 = vmul.f32 %v5939_v41, %v5939_v41 }
 0x1d2   :  { %v2174_v14 = vsel %vm1722_vm2, %v2066_v62, 0.0 }
 0x1d3   :  { %2256 = vadd.xlane.f32.xlu1 %v2255_v13  ;;  %v1890_v13 = vpop.xlane.xlu1 %1889 }
 0x1d4   :  { %2259 = vadd.xlane.f32.xlu0 %v2258_v38  ;;  %v5933_v38 = vsub.f32 %v6753_v11, %v1969_v17  ;;  %v1893_v16 = vpop.xlane.xlu0 %1892  ;;  %v6757_v17 = vld [vmem:[#allocation53_spill] sm:$0xff]  ;;  %v1971_v11 = vmul.f32 0.03125, %v1890_v13 }
 0x1d6   :  { %6754 = vst [vmem:[#allocation65_spill] sm:$0xff] %v5933_v38  ;;  %v2097_v30 = vmul.f32 %v5933_v38, %v5933_v38 }
 0x1d7   :  { %2166 = vadd.xlane.f32.xlu1 %v2165_v42  ;;  %v1940_v42 = vmul.f32 0.03125, %v1797_v29  ;;  %v1972_v29 = vmul.f32 0.03125, %v1893_v16 }
 0x1d8   :  { %2169 = vadd.xlane.f32.xlu0 %v2168_v45  ;;  %v5945_v45 = vsub.f32 %v6757_v17, %v1939_v20  ;;  %v2267_v28 = vsel %vm1722_vm2, %v2097_v30, 0.0  ;;  %v6759_v20 = vld [vmem:[#allocation55_spill] sm:$0xff] }
 0x1d9   :  { %v5951_v57 = vsub.f32 %v6758_v18, %v1940_v42  ;;  %v5957_v17 = vsub.f32 %v6759_v20, %v1971_v11  ;;  %v2270_v18 = vsel %vm1722_vm2, %v2098_v51, 0.0  ;;  %v6760_v42 = vld [vmem:[#allocation56_spill] sm:$0xff]  ;;  %v6762_v11 = vld [vmem:[#allocation57_spill] sm:$0xff] }
 0x1da   :  { %v2067_v13 = vmul.f32 %v5945_v45, %v5945_v45  ;;  %v5963_v38 = vsub.f32 %v6760_v42, %v1972_v29  ;;  %v6763_v29 = vld [vmem:[#allocation58_spill] sm:$0xff] }
 0x1db   :  { %2262 = vadd.xlane.f32.xlu1 %v2261_v58  ;;  %v1800_v58 = vpop.xlane.xlu1 %1799  ;;  %v2068_v16 = vmul.f32 %v5951_v57, %v5951_v57 }
 0x1dc   :  { %2265 = vadd.xlane.f32.xlu0 %v2264_v26  ;;  %v1803_v26 = vpop.xlane.xlu0 %1802  ;;  %v1941_v62 = vmul.f32 0.03125, %v1800_v58  ;;  %6761 = vst [vmem:[#allocation67_spill] sm:$0xff] %v5963_v38  ;;  %v2177_v30 = vsel %vm1722_vm2, %v2067_v13, 0.0  ;;  %v2099_v58 = vmul.f32 %v5957_v17, %v5957_v17  ;;  %v6764_v13 = vld [vmem:[#allocation60_spill] sm:$0xff] }
 0x1dd   :  { %v1942_v41 = vmul.f32 0.03125, %v1803_v26  ;;  %v2180_v51 = vsel %vm1722_vm2, %v2068_v16, 0.0  ;;  %v2100_v26 = vmul.f32 %v5963_v38, %v5963_v38 }
 0x1df   :  { %2172 = vadd.xlane.f32.xlu1 %v2171_v9  ;;  %v5975_v42 = vsub.f32 %v6763_v29, %v1942_v41  ;;  %v6765_v29 = vld [vmem:[#allocation63_spill] sm:$0xff] }
 0x1e0   :  { %2175 = vadd.xlane.f32.xlu0 %v2174_v14  ;;  %v5969_v14 = vsub.f32 %v6762_v11, %v1941_v62 }
 0x1e1   :  { %v2070_v41 = vmul.f32 %v5975_v42, %v5975_v42 }
 0x1e2   :  { %v1896_v9 = vpop.xlane.xlu1 %1895  ;;  %v2069_v11 = vmul.f32 %v5969_v14, %v5969_v14 }
 0x1e3   :  { %2268 = vadd.xlane.f32.xlu1 %v2267_v28  ;;  %v1973_v20 = vmul.f32 0.03125, %v1896_v9  ;;  %v2273_v28 = vsel %vm1722_vm2, %v2099_v58, 0.0  ;;  %v2276_v9 = vsel %vm1722_vm2, %v2100_v26, 0.0 }
 0x1e4   :  { %2271 = vadd.xlane.f32.xlu0 %v2270_v18 }
 0x1e5   :  { %v5981_v18 = vsub.f32 %v6764_v13, %v1973_v20  ;;  %v2186_v20 = vsel %vm1722_vm2, %v2070_v41, 0.0 }
 0x1e6   :  { %v1899_v62 = vpop.xlane.xlu0 %1898 }
 0x1e7   :  { %2178 = vadd.xlane.f32.xlu1 %v2177_v30  ;;  %v1974_v16 = vmul.f32 0.03125, %v1899_v62  ;;  %v2183_v30 = vsel %vm1722_vm2, %v2069_v11, 0.0  ;;  %v2101_v58 = vmul.f32 %v5981_v18, %v5981_v18  ;;  %v6767_v62 = vld [vmem:[#allocation66_spill] sm:$0xff] }
 0x1e8   :  { %2181 = vadd.xlane.f32.xlu0 %v2180_v51 }
 0x1e9   :  { %v5989_v38 = vsub.f32 %v6765_v29, %v1974_v16 }
 0x1eb   :  { %2274 = vadd.xlane.f32.xlu1 %v2273_v28  ;;  %6766 = vst [vmem:[#allocation14_spill] sm:$0xff] %v5989_v38  ;;  %v2102_v51 = vmul.f32 %v5989_v38, %v5989_v38  ;;  %v2279_v28 = vsel %vm1722_vm2, %v2101_v58, 0.0 }
 0x1ec   :  { %2277 = vadd.xlane.f32.xlu0 %v2276_v9 }
 0x1ed   :  { %v1806_v26 = vpop.xlane.xlu1 %1805  ;;  %v2282_v9 = vsel %vm1722_vm2, %v2102_v51, 0.0 }
 0x1ee   :  { %v1943_v13 = vmul.f32 0.03125, %v1806_v26 }
 0x1ef   :  { %2184 = vadd.xlane.f32.xlu1 %v2183_v30 }
 0x1f0   :  { %2187 = vadd.xlane.f32.xlu0 %v2186_v20  ;;  %v5999_v16 = vsub.f32 %v6767_v62, %v1943_v13 }
 0x1f2   :  { %v2071_v11 = vmul.f32 %v5999_v16, %v5999_v16 }
 0x1f3   :  { %2280 = vadd.xlane.f32.xlu1 %v2279_v28  ;;  %v1809_v29 = vpop.xlane.xlu0 %1808 }
 0x1f4   :  { %2283 = vadd.xlane.f32.xlu0 %v2282_v9  ;;  %v1944_v41 = vmul.f32 0.03125, %v1809_v29  ;;  %v2189_v38 = vsel %vm1722_vm2, %v2071_v11, 0.0 }
 0x1f6   :  { %v6006_v30 = vsub.f32 %v5434_v3, %v1944_v41 }
 0x1f7   :  { %2190 = vadd.xlane.f32.xlu1 %v2189_v38 }
 0x1f8   :  { %v1902_v20 = vpop.xlane.xlu1 %1901  ;;  %v2072_v58 = vmul.f32 %v6006_v30, %v6006_v30 }
 0x1f9   :  { %v1975_v26 = vmul.f32 0.03125, %v1902_v20 }
 0x1fa   :  { %v2192_v51 = vsel %vm1722_vm2, %v2072_v58, 0.0 }
 0x1fb   :  { %v6012_v13 = vsub.f32 %v5470_v32, %v1975_v26  ;;  %2193 = vadd.xlane.f32.xlu0 %v2192_v51 }
 0x1fd   :  { %v2103_v28 = vmul.f32 %v6012_v13, %v6012_v13 }
 0x1fe   :  { %v1905_v62 = vpop.xlane.xlu0 %1904 }
 0x1ff   :  { %v1976_v9 = vmul.f32 0.03125, %v1905_v62  ;;  %v2285_v3 = vsel %vm1722_vm2, %v2103_v28, 0.0 }
 0x200   :  { %2286 = vadd.xlane.f32.xlu1 %v2285_v3 }
 0x201   :  { %v6018_v38 = vsub.f32 %v5509_v50, %v1976_v9 }
 0x203   :  { %6768 = vst [vmem:[#allocation15_spill] sm:$0xff] %v6018_v38  ;;  %v1812_v11 = vpop.xlane.xlu1 %1811  ;;  %v2104_v29 = vmul.f32 %v6018_v38, %v6018_v38 }
 0x204   :  { %v1945_v41 = vmul.f32 0.03125, %v1812_v11 }
 0x205   :  { %v2288_v32 = vsel %vm1722_vm2, %v2104_v29, 0.0 }
 0x206   :  { %v6024_v20 = vsub.f32 %v5542_v52, %v1945_v41  ;;  %2289 = vadd.xlane.f32.xlu0 %v2288_v32 }
 0x208   :  { %6769 = vst [vmem:[#allocation16_spill] sm:$0xff] %v6024_v20  ;;  %v1815_v58 = vpop.xlane.xlu0 %1814  ;;  %v2073_v51 = vmul.f32 %v6024_v20, %v6024_v20 }
 0x209   :  { %v1946_v26 = vmul.f32 0.03125, %v1815_v58 }
 0x20a   :  { %v2195_v50 = vsel %vm1722_vm2, %v2073_v51, 0.0 }
 0x20b   :  { %v6029_v28 = vsub.f32 %v5564_v55, %v1946_v26  ;;  %2196 = vadd.xlane.f32.xlu1 %v2195_v50 }
 0x20d   :  { %6770 = vst [vmem:[#allocation17_spill] sm:$0xff] %v6029_v28  ;;  %v1908_v62 = vpop.xlane.xlu1 %1907  ;;  %v2074_v9 = vmul.f32 %v6029_v28, %v6029_v28 }
 0x20e   :  { %v1977_v3 = vmul.f32 0.03125, %v1908_v62 }
 0x20f   :  { %v2198_v52 = vsel %vm1722_vm2, %v2074_v9, 0.0 }
 0x210   :  { %v6036_v11 = vsub.f32 %v5589_v39, %v1977_v3  ;;  %2199 = vadd.xlane.f32.xlu0 %v2198_v52 }
 0x211   :  { %v1911_v29 = vpop.xlane.xlu0 %1910 }
 0x212   :  { %6771 = vst [vmem:[#allocation18_spill] sm:$0xff] %v6036_v11  ;;  %v1978_v41 = vmul.f32 0.03125, %v1911_v29  ;;  %v2105_v55 = vmul.f32 %v6036_v11, %v6036_v11 }
 0x214   :  { %v6041_v32 = vsub.f32 %v5608_v27, %v1978_v41  ;;  %v1818_v58 = vpop.xlane.xlu1 %1817  ;;  %v2291_v26 = vsel %vm1722_vm2, %v2105_v55, 0.0 }
 0x215   :  { %v1947_v51 = vmul.f32 0.03125, %v1818_v58  ;;  %2292 = vadd.xlane.f32.xlu1 %v2291_v26  ;;  %v2110_v50 = vpop.xlane.xlu0 %2109 }
 0x216   :  { %6772 = vst [vmem:[#allocation19_spill] sm:$0xff] %v6041_v32  ;;  %v2106_v62 = vmul.f32 %v6041_v32, %v6041_v32  ;;  %v2300_v39 = vmul.f32 0.03125, %v2110_v50 }
 0x217   :  { %v6047_v9 = vsub.f32 %v5624_v56, %v1947_v51 }
 0x218   :  { %v1914_v3 = vpop.xlane.xlu1 %1913  ;;  %v2294_v52 = vsel %vm1722_vm2, %v2106_v62, 0.0  ;;  %v2364_v29 = vadd.f32 1e-05, %v2300_v39 }
 0x219   :  { %6773 = vst [vmem:[#allocation20_spill] sm:$0xff] %v6047_v9  ;;  %v1979_v11 = vmul.f32 0.03125, %v1914_v3  ;;  %2295 = vadd.xlane.f32.xlu0 %v2294_v52  ;;  %v2075_v27 = vmul.f32 %v6047_v9, %v6047_v9  ;;  %v2116_v41 = vpop.xlane.xlu0 %2115 }
 0x21a   :  { %3058 = vrsqrt.f32 %v2364_v29  ;;  %v2302_v55 = vmul.f32 0.03125, %v2116_v41 }
 0x21b   :  { %v6053_v58 = vsub.f32 %v5642_v19, %v1979_v11  ;;  %v2201_v26 = vsel %vm1722_vm2, %v2075_v27, 0.0 }
 0x21c   :  { %2202 = vadd.xlane.f32.xlu1 %v2201_v26  ;;  %v2366_v56 = vadd.f32 1e-05, %v2302_v55  ;;  %v2113_v51 = vpop.xlane.xlu1 %2112 }
 0x21d   :  { %6774 = vst [vmem:[#allocation21_spill] sm:$0xff] %v6053_v58  ;;  %v2107_v50 = vmul.f32 %v6053_v58, %v6053_v58  ;;  %v2301_v62 = vmul.f32 0.03125, %v2113_v51  ;;  %v2206_v39 = vpop.xlane.xlu0 %2205  ;;  %v6062_v51 = vld [vmem:[%s6445_s2] ss:$0 sm:$0xff] }
 0x21e   :  { %3060 = vrsqrt.f32 %v2366_v56  ;;  %v2332_v3 = vmul.f32 0.03125, %v2206_v39 }
 0x21f   :  { %v2297_v52 = vsel %vm1722_vm2, %v2107_v50, 0.0  ;;  %v2365_v9 = vadd.f32 1e-05, %v2301_v62 }
 0x220   :  { %2298 = vadd.xlane.f32.xlu1 %v2297_v52  ;;  %v2396_v29 = vadd.f32 1e-05, %v2332_v3  ;;  %v2119_v41 = vpop.xlane.xlu1 %2118 }
 0x221   :  { %3062 = vrsqrt.f32 %v2365_v9  ;;  %v2303_v19 = vmul.f32 0.03125, %v2119_v41  ;;  %v2212_v11 = vpop.xlane.xlu0 %2211  ;;  %v6068_v9 = vld [vmem:[%s6446_s3] ss:$0 sm:$0xff] }
 0x222   :  { %3064 = vrsqrt.f32 %v2396_v29  ;;  %v2334_v27 = vmul.f32 0.03125, %v2212_v11 }
 0x223   :  { %v2367_v55 = vadd.f32 1e-05, %v2303_v19 }
 0x224   :  { %v3059_v26 = vpop.eup %3058  ;;  %v2398_v56 = vadd.f32 1e-05, %v2334_v27  ;;  %v2209_v39 = vpop.xlane.xlu1 %2208 }
 0x225   :  { %v2492_v50 = vmul.f32 %v3059_v26, %v5592_v59  ;;  %3066 = vrsqrt.f32 %v2367_v55  ;;  %v2333_v62 = vmul.f32 0.03125, %v2209_v39  ;;  %v2122_v3 = vpop.xlane.xlu0 %2121 }
 0x226   :  { %3068 = vrsqrt.f32 %v2398_v56  ;;  %v2304_v52 = vmul.f32 0.03125, %v2122_v3 }
 0x227   :  { %v2563_v29 = vmul.f32 %v6062_v51, %v2492_v50  ;;  %v2397_v41 = vadd.f32 1e-05, %v2333_v62 }
 0x228   :  { %v3061_v19 = vpop.eup %3060  ;;  %v2368_v11 = vadd.f32 1e-05, %v2304_v52  ;;  %v2215_v58 = vpop.xlane.xlu1 %2214 }
 0x229   :  { %v2634_v27 = vadd.f32 %v6068_v9, %v2563_v29  ;;  %v2494_v59 = vmul.f32 %v3061_v19, %v5611_v47  ;;  %3070 = vrsqrt.f32 %v2397_v41  ;;  %v2335_v55 = vmul.f32 0.03125, %v2215_v58  ;;  %v2218_v26 = vpop.xlane.xlu0 %2217 }
 0x22a   :  { %3072 = vrsqrt.f32 %v2368_v11  ;;  %v2336_v39 = vmul.f32 0.03125, %v2218_v26 }
 0x22b   :  { %v3063_v32 = vpop.eup %3062  ;;  %v2698_v28 = vmax.f32 %v2634_v27, 0.0  ;;  %v2565_v56 = vmul.f32 %v6062_v51, %v2494_v59  ;;  %v2399_v3 = vadd.f32 1e-05, %v2335_v55 }
 0x22c   :  { %v3065_v20 = vpop.eup %3064  ;;  %v2493_v50 = vmul.f32 %v3063_v32, %v5627_v44  ;;  %v2400_v62 = vadd.f32 1e-05, %v2336_v39  ;;  %v2125_v52 = vpop.xlane.xlu1 %2124 }
 0x22d   :  { %v2636_v38 = vadd.f32 %v6068_v9, %v2565_v56  ;;  %v2524_v29 = vmul.f32 %v3065_v20, %v5634_v43  ;;  %3074 = vrsqrt.f32 %v2399_v3  ;;  %v2128_v47 = vpop.xlane.xlu0 %2127  ;;  %v2305_v41 = vmul.f32 0.03125, %v2125_v52 }
 0x22e   :  { %v2564_v58 = vmul.f32 %v6062_v51, %v2493_v50  ;;  %3076 = vrsqrt.f32 %v2400_v62  ;;  %v2306_v19 = vmul.f32 0.03125, %v2128_v47  ;;  %v2762_v27 = vsel %vm1722_vm2, %v2698_v28, 0.0 }
 0x22f   :  { %v3067_v11 = vpop.eup %3066  ;;  %v2700_v59 = vmax.f32 %v2636_v38, 0.0  ;;  %v2595_v55 = vmul.f32 %v6062_v51, %v2524_v29  ;;  %v2369_v39 = vadd.f32 1e-05, %v2305_v41 }
 0x230   :  { %v3069_v44 = vpop.eup %3068  ;;  %v2635_v32 = vadd.f32 %v6068_v9, %v2564_v58  ;;  %v2495_v26 = vmul.f32 %v3067_v11, %v5645_v61  ;;  %v2370_v43 = vadd.f32 1e-05, %v2306_v19  ;;  %v2221_v20 = vpop.xlane.xlu1 %2220 }
 0x231   :  { %v2763_v56 = vsel %vm1722_vm2, %v2700_v59, 0.0  ;;  %v2666_v3 = vadd.f32 %v6068_v9, %v2595_v55  ;;  %v2526_v50 = vmul.f32 %v3069_v44, %v5652_v23  ;;  %v2337_v62 = vmul.f32 0.03125, %v2221_v20  ;;  %v2224_v52 = vpop.xlane.xlu0 %2223 }
 0x232   :  { %v2764_v28 = vadd.f32 %v2763_v56, %v2762_v27  ;;  %v2699_v38 = vmax.f32 %v2635_v32, 0.0  ;;  %v2566_v29 = vmul.f32 %v6062_v51, %v2495_v26  ;;  %3078 = vrsqrt.f32 %v2369_v39 }
 0x233   :  { %v3071_v47 = vpop.eup %3070  ;;  %v2730_v58 = vmax.f32 %v2666_v3, 0.0  ;;  %v2597_v61 = vmul.f32 %v6062_v51, %v2526_v50  ;;  %3080 = vrsqrt.f32 %v2370_v43  ;;  %v2401_v41 = vadd.f32 1e-05, %v2337_v62 }
 0x234   :  { %v3073_v19 = vpop.eup %3072  ;;  %v2637_v11 = vadd.f32 %v6068_v9, %v2566_v29  ;;  %v2525_v59 = vmul.f32 %v3071_v47, %v5665_v53  ;;  %v2338_v55 = vmul.f32 0.03125, %v2224_v52  ;;  %v2131_v23 = vpop.xlane.xlu1 %2130  ;;  %v2793_v44 = vsel %vm1722_vm2, %v2699_v38, 0.0 }
 0x235   :  { %v2668_v27 = vadd.f32 %v6068_v9, %v2597_v61  ;;  %v2496_v32 = vmul.f32 %v3073_v19, %v5672_v6  ;;  %3082 = vrsqrt.f32 %v2401_v41  ;;  %v2134_v26 = vpop.xlane.xlu0 %2133  ;;  %v2307_v56 = vmul.f32 0.03125, %v2131_v23 }
 0x236   :  { %v2701_v39 = vmax.f32 %v2637_v11, 0.0  ;;  %v2596_v20 = vmul.f32 %v6062_v51, %v2525_v59  ;;  %v2402_v43 = vadd.f32 1e-05, %v2338_v55  ;;  %v2824_v50 = vsel %vm1722_vm2, %v2730_v58, 0.0 }
 0x237   :  { %v3075_v3 = vpop.eup %3074  ;;  %v2732_v62 = vmax.f32 %v2668_v27, 0.0  ;;  %v2567_v53 = vmul.f32 %v6062_v51, %v2496_v32  ;;  %v2308_v52 = vmul.f32 0.03125, %v2134_v26  ;;  %v2371_v32 = vadd.f32 1e-05, %v2307_v56 }
 0x238   :  { %v3077_v29 = vpop.eup %3076  ;;  %v2794_v38 = vsel %vm1722_vm2, %v2701_v39, 0.0  ;;  %v2667_v47 = vadd.f32 %v6068_v9, %v2596_v20  ;;  %v2527_v6 = vmul.f32 %v3075_v3, %v5681_v8  ;;  %3084 = vrsqrt.f32 %v2402_v43  ;;  %v2227_v61 = vpop.xlane.xlu1 %2226 }
 0x239   :  { %v6098_v41 = vadd.f32 %v2794_v38, %v2793_v44  ;;  %v2825_v19 = vsel %vm1722_vm2, %v2732_v62, 0.0  ;;  %v2638_v11 = vadd.f32 %v6068_v9, %v2567_v53  ;;  %v2528_v58 = vmul.f32 %v3077_v29, %v5690_v40  ;;  %v2230_v59 = vpop.xlane.xlu0 %2229 }
 0x23a   :  { %v2826_v55 = vadd.f32 %v2825_v19, %v2824_v50  ;;  %v2731_v23 = vmax.f32 %v2667_v47, 0.0  ;;  %v2598_v27 = vmul.f32 %v6062_v51, %v2527_v6  ;;  %v2372_v8 = vadd.f32 1e-05, %v2308_v52 }
 0x23b   :  { %v2702_v26 = vmax.f32 %v2638_v11, 0.0  ;;  %v2599_v39 = vmul.f32 %v6062_v51, %v2528_v58  ;;  %v2339_v20 = vmul.f32 0.03125, %v2227_v61  ;;  %3086 = vrsqrt.f32 %v2371_v32 }
 0x23c   :  { %v3079_v43 = vpop.eup %3078  ;;  %v2855_v44 = vsel %vm1722_vm2, %v2731_v23, 0.0  ;;  %v2669_v3 = vadd.f32 %v6068_v9, %v2598_v27  ;;  %v2340_v62 = vmul.f32 0.03125, %v2230_v59  ;;  %v2137_v53 = vpop.xlane.xlu1 %2136  ;;  %3088 = vrsqrt.f32 %v2372_v8 }
 0x23d   :  { %v3081_v40 = vpop.eup %3080  ;;  %v2765_v50 = vsel %vm1722_vm2, %v2702_v26, 0.0  ;;  %v2670_v29 = vadd.f32 %v6068_v9, %v2599_v39  ;;  %v2497_v56 = vmul.f32 %v3079_v43, %v5697_v35  ;;  %v2140_v38 = vpop.xlane.xlu0 %2139  ;;  %v2403_v61 = vadd.f32 1e-05, %v2339_v20 }
 0x23e   :  { %v2766_v47 = vadd.f32 %v2765_v50, %v2764_v28  ;;  %v2733_v52 = vmax.f32 %v2669_v3, 0.0  ;;  %v2498_v6 = vmul.f32 %v3081_v40, %v5704_v4  ;;  %v2404_v59 = vadd.f32 1e-05, %v2340_v62 }
 0x23f   :  { %v3083_v19 = vpop.eup %3082  ;;  %v2734_v11 = vmax.f32 %v2670_v29, 0.0  ;;  %v2568_v58 = vmul.f32 %v6062_v51, %v2497_v56  ;;  %v2309_v23 = vmul.f32 0.03125, %v2137_v53  ;;  %3090 = vrsqrt.f32 %v2403_v61 }
 0x240   :  { %v2856_v27 = vsel %vm1722_vm2, %v2733_v52, 0.0  ;;  %v2569_v32 = vmul.f32 %v6062_v51, %v2498_v6  ;;  %v2529_v26 = vmul.f32 %v3083_v19, %v5715_v48  ;;  %v2233_v35 = vpop.xlane.xlu1 %2232  ;;  %3092 = vrsqrt.f32 %v2404_v59 }
 0x241   :  { %v2857_v39 = vadd.f32 %v2856_v27, %v2855_v44  ;;  %v2827_v28 = vsel %vm1722_vm2, %v2734_v11, 0.0  ;;  %v2639_v4 = vadd.f32 %v6068_v9, %v2568_v58  ;;  %v2236_v8 = vpop.xlane.xlu0 %2235  ;;  %v2373_v53 = vadd.f32 1e-05, %v2309_v23 }
 0x242   :  { %v3085_v20 = vpop.eup %3084  ;;  %v2828_v43 = vadd.f32 %v2827_v28, %v2826_v55  ;;  %v2640_v3 = vadd.f32 %v6068_v9, %v2569_v32  ;;  %v2600_v62 = vmul.f32 %v6062_v51, %v2529_v26  ;;  %v2310_v48 = vmul.f32 0.03125, %v2140_v38 }
 0x243   :  { %v2703_v40 = vmax.f32 %v2639_v4, 0.0  ;;  %v2530_v50 = vmul.f32 %v3085_v20, %v5722_v31  ;;  %v2341_v29 = vmul.f32 0.03125, %v2233_v35  ;;  %3094 = vrsqrt.f32 %v2373_v53 }
 0x244   :  { %v2704_v56 = vmax.f32 %v2640_v3, 0.0  ;;  %v2671_v44 = vadd.f32 %v6068_v9, %v2600_v62  ;;  %v2143_v52 = vpop.xlane.xlu1 %2142  ;;  %v2374_v55 = vadd.f32 1e-05, %v2310_v48 }
 0x245   :  { %v2796_v6 = vsel %vm1722_vm2, %v2703_v40, 0.0  ;;  %v2601_v61 = vmul.f32 %v6062_v51, %v2530_v50  ;;  %v2405_v19 = vadd.f32 1e-05, %v2341_v29  ;;  %v2146_v11 = vpop.xlane.xlu0 %2145  ;;  %v3087_v58 = vpop.eup %3086  ;;  %v2311_v4 = vmul.f32 0.03125, %v2143_v52 }
 0x246   :  { %v2797_v59 = vadd.f32 %v2796_v6, %v6098_v41  ;;  %v2767_v23 = vsel %vm1722_vm2, %v2704_v56, 0.0  ;;  %v2735_v31 = vmax.f32 %v2671_v44, 0.0  ;;  %v3089_v38 = vpop.eup %3088  ;;  %v2499_v26 = vmul.f32 %v3087_v58, %v5731_v33 }
 0x247   :  { %v2768_v27 = vadd.f32 %v2767_v23, %v2766_v47  ;;  %v2672_v32 = vadd.f32 %v6068_v9, %v2601_v61  ;;  %3096 = vrsqrt.f32 %v2374_v55  ;;  %v2500_v28 = vmul.f32 %v3089_v38, %v5740_v1 }
 0x248   :  { %v2858_v35 = vsel %vm1722_vm2, %v2735_v31, 0.0  ;;  %3098 = vrsqrt.f32 %v2405_v19  ;;  %v2239_v20 = vpop.xlane.xlu1 %2238  ;;  %v2570_v41 = vmul.f32 %v6062_v51, %v2499_v26  ;;  %v2375_v50 = vadd.f32 1e-05, %v2311_v4 }
 0x249   :  { %v2859_v3 = vadd.f32 %v2858_v35, %v2857_v39  ;;  %v2736_v62 = vmax.f32 %v2672_v32, 0.0  ;;  %v2242_v53 = vpop.xlane.xlu0 %2241  ;;  %v3091_v40 = vpop.eup %3090  ;;  %v2571_v47 = vmul.f32 %v6062_v51, %v2500_v28  ;;  %v2342_v31 = vmul.f32 0.03125, %v2236_v8 }
 0x24a   :  { %v3093_v48 = vpop.eup %3092  ;;  %v2641_v29 = vadd.f32 %v6068_v9, %v2570_v41  ;;  %v2531_v56 = vmul.f32 %v3091_v40, %v5747_v0  ;;  %3100 = vrsqrt.f32 %v2375_v50  ;;  %v2312_v32 = vmul.f32 0.03125, %v2146_v11 }
 0x24b   :  { %v2829_v33 = vsel %vm1722_vm2, %v2736_v62, 0.0  ;;  %v2642_v44 = vadd.f32 %v6068_v9, %v2571_v47  ;;  %v2532_v39 = vmul.f32 %v3093_v48, %v5754_v2  ;;  %v2343_v28 = vmul.f32 0.03125, %v2239_v20 }
 0x24c   :  { %v2830_v1 = vadd.f32 %v2829_v33, %v2828_v43  ;;  %v2149_v52 = vpop.xlane.xlu1 %2148  ;;  %v2705_v6 = vmax.f32 %v2641_v29, 0.0  ;;  %v2602_v61 = vmul.f32 %v6062_v51, %v2531_v56  ;;  %v2406_v29 = vadd.f32 1e-05, %v2342_v31 }
 0x24d   :  { %v2152_v55 = vpop.xlane.xlu0 %2151  ;;  %v3095_v19 = vpop.eup %3094  ;;  %v2706_v58 = vmax.f32 %v2642_v44, 0.0  ;;  %v2603_v23 = vmul.f32 %v6062_v51, %v2532_v39  ;;  %v2376_v20 = vadd.f32 1e-05, %v2312_v32 }
 0x24e   :  { %v2798_v38 = vsel %vm1722_vm2, %v2705_v6, 0.0  ;;  %v2673_v0 = vadd.f32 %v6068_v9, %v2602_v61  ;;  %v2501_v43 = vmul.f32 %v3095_v19, %v5765_v22  ;;  %v2344_v22 = vmul.f32 0.03125, %v2242_v53 }
 0x24f   :  { %v2799_v26 = vadd.f32 %v2798_v38, %v2797_v59  ;;  %v2769_v2 = vsel %vm1722_vm2, %v2706_v58, 0.0  ;;  %v2674_v35 = vadd.f32 %v6068_v9, %v2603_v23  ;;  %v2407_v6 = vadd.f32 1e-05, %v2343_v28 }
 0x250   :  { %v2245_v4 = vpop.xlane.xlu1 %2244  ;;  %v2770_v41 = vadd.f32 %v2769_v2, %v2768_v27  ;;  %v2737_v40 = vmax.f32 %v2673_v0, 0.0  ;;  %v2572_v47 = vmul.f32 %v6062_v51, %v2501_v43  ;;  %3102 = vrsqrt.f32 %v2406_v29 }
 0x251   :  { %v3097_v62 = vpop.eup %3096  ;;  %v2248_v8 = vpop.xlane.xlu0 %2247  ;;  %v2738_v48 = vmax.f32 %v2674_v35, 0.0  ;;  %v2408_v38 = vadd.f32 1e-05, %v2344_v22  ;;  %3104 = vrsqrt.f32 %v2376_v20 }
 0x252   :  { %v3099_v50 = vpop.eup %3098  ;;  %v2502_v33 = vmul.f32 %v3097_v62, %v5772_v5  ;;  %v2860_v11 = vsel %vm1722_vm2, %v2737_v40, 0.0  ;;  %v2643_v59 = vadd.f32 %v6068_v9, %v2572_v47  ;;  %3106 = vrsqrt.f32 %v2407_v6 }
 0x253   :  { %v2533_v56 = vmul.f32 %v3099_v50, %v5779_v54  ;;  %v2861_v44 = vadd.f32 %v2860_v11, %v2859_v3  ;;  %v2831_v27 = vsel %vm1722_vm2, %v2738_v48, 0.0  ;;  %v2313_v54 = vmul.f32 0.03125, %v2149_v52 }
 0x254   :  { %v2573_v39 = vmul.f32 %v6062_v51, %v2502_v33  ;;  %v2155_v61 = vpop.xlane.xlu1 %2154  ;;  %v6150_v19 = vadd.f32 %v2831_v27, %v2830_v1  ;;  %v2707_v58 = vmax.f32 %v2643_v59, 0.0  ;;  %v3101_v23 = vpop.eup %3100  ;;  %3108 = vrsqrt.f32 %v2408_v38 }
 0x255   :  { %v2604_v5 = vmul.f32 %v6062_v51, %v2533_v56  ;;  %v2158_v53 = vpop.xlane.xlu0 %2157  ;;  %v2503_v43 = vmul.f32 %v3101_v23, %v5793_v7  ;;  %v2377_v48 = vadd.f32 1e-05, %v2313_v54  ;;  %v2345_v59 = vmul.f32 0.03125, %v2245_v4 }
 0x256   :  { %v2644_v31 = vadd.f32 %v6068_v9, %v2573_v39  ;;  %v2800_v3 = vsel %vm1722_vm2, %v2707_v58, 0.0  ;;  %v2346_v27 = vmul.f32 0.03125, %v2248_v8  ;;  %v2315_v58 = vmul.f32 0.03125, %v2155_v61 }
 0x257   :  { %v2675_v0 = vadd.f32 %v6068_v9, %v2604_v5  ;;  %v2801_v32 = vadd.f32 %v2800_v3, %v2799_v26  ;;  %v2574_v28 = vmul.f32 %v6062_v51, %v2503_v43  ;;  %v2314_v26 = vmul.f32 0.03125, %v2152_v55 }
 0x258   :  { %v2708_v1 = vmax.f32 %v2644_v31, 0.0  ;;  %v2251_v2 = vpop.xlane.xlu1 %2250  ;;  %3110 = vrsqrt.f32 %v2377_v48  ;;  %v2409_v31 = vadd.f32 1e-05, %v2345_v59  ;;  %v2410_v54 = vadd.f32 1e-05, %v2346_v27 }
 0x259   :  { %v2739_v35 = vmax.f32 %v2675_v0, 0.0  ;;  %v2254_v62 = vpop.xlane.xlu0 %2253  ;;  %v2645_v50 = vadd.f32 %v6068_v9, %v2574_v28  ;;  %v2347_v3 = vmul.f32 0.03125, %v2251_v2 }
 0x25a   :  { %v2771_v40 = vsel %vm1722_vm2, %v2708_v1, 0.0  ;;  %v3103_v56 = vpop.eup %3102  ;;  %v2348_v8 = vmul.f32 0.03125, %v2254_v62 }
 0x25b   :  { %v6159_v47 = vadd.f32 %v2771_v40, %v2770_v41  ;;  %v2862_v52 = vsel %vm1722_vm2, %v2739_v35, 0.0  ;;  %v2709_v29 = vmax.f32 %v2645_v50, 0.0  ;;  %v2378_v41 = vadd.f32 1e-05, %v2314_v26  ;;  %v3105_v6 = vpop.eup %3104 }
 0x25c   :  { %v6163_v7 = vadd.f32 %v2862_v52, %v2861_v44  ;;  %v2161_v33 = vpop.xlane.xlu1 %2160  ;;  %v3107_v23 = vpop.eup %3106  ;;  %v2316_v44 = vmul.f32 0.03125, %v2158_v53  ;;  %v2534_v55 = vmul.f32 %v3103_v56, %v5786_v25  ;;  %v2504_v4 = vmul.f32 %v3105_v6, %v5800_v34 }
 0x25d   :  { %v2164_v22 = vpop.xlane.xlu0 %2163  ;;  %v2802_v11 = vsel %vm1722_vm2, %v2709_v29, 0.0  ;;  %3112 = vrsqrt.f32 %v2378_v41  ;;  %v2535_v43 = vmul.f32 %v3107_v23, %v5807_v12  ;;  %v2317_v53 = vmul.f32 0.03125, %v2161_v33 }
 0x25e   :  { %v6166_v20 = vadd.f32 %v2802_v11, %v2801_v32  ;;  %v3109_v38 = vpop.eup %3108  ;;  %v2379_v32 = vadd.f32 1e-05, %v2315_v58  ;;  %v2380_v35 = vadd.f32 1e-05, %v2316_v44  ;;  %v2605_v61 = vmul.f32 %v6062_v51, %v2534_v55 }
 0x25f   :  { %3114 = vrsqrt.f32 %v2409_v31  ;;  %v2536_v25 = vmul.f32 %v3109_v38, %v5814_v36  ;;  %v2411_v28 = vadd.f32 1e-05, %v2347_v3  ;;  %v2318_v40 = vmul.f32 0.03125, %v2164_v22 }
 0x260   :  { %v2257_v39 = vpop.xlane.xlu1 %2256  ;;  %3116 = vrsqrt.f32 %v2410_v54  ;;  %v2575_v34 = vmul.f32 %v6062_v51, %v2504_v4  ;;  %v2606_v12 = vmul.f32 %v6062_v51, %v2535_v43  ;;  %v2412_v62 = vadd.f32 1e-05, %v2348_v8 }
 0x261   :  { %v2260_v5 = vpop.xlane.xlu0 %2259  ;;  %3118 = vrsqrt.f32 %v2379_v32  ;;  %v2349_v48 = vmul.f32 0.03125, %v2257_v39  ;;  %v2676_v26 = vadd.f32 %v6068_v9, %v2605_v61  ;;  %v2381_v33 = vadd.f32 1e-05, %v2317_v53 }
 0x262   :  { %v3111_v2 = vpop.eup %3110  ;;  %3120 = vrsqrt.f32 %v2380_v35  ;;  %v2350_v36 = vmul.f32 0.03125, %v2260_v5  ;;  %v2607_v29 = vmul.f32 %v6062_v51, %v2536_v25  ;;  %v2382_v11 = vadd.f32 1e-05, %v2318_v40 }
 0x263   :  { %v2505_v22 = vmul.f32 %v3111_v2, %v5821_v37  ;;  %3122 = vrsqrt.f32 %v2411_v28  ;;  %v2646_v56 = vadd.f32 %v6068_v9, %v2575_v34  ;;  %v2677_v41 = vadd.f32 %v6068_v9, %v2606_v12 }
 0x264   :  { %v2167_v0 = vpop.xlane.xlu1 %2166  ;;  %3124 = vrsqrt.f32 %v2412_v62  ;;  %v2413_v58 = vadd.f32 1e-05, %v2349_v48  ;;  %v2414_v39 = vadd.f32 1e-05, %v2350_v36  ;;  %v2740_v23 = vmax.f32 %v2676_v26, 0.0  ;;  %v6775_v26 = vld [vmem:[#allocation8_spill] sm:$0xff] }
 0x265   :  { %v2170_v1 = vpop.xlane.xlu0 %2169  ;;  %3126 = vrsqrt.f32 %v2381_v33  ;;  %v2678_v5 = vadd.f32 %v6068_v9, %v2607_v29  ;;  %v2576_v44 = vmul.f32 %v6062_v51, %v2505_v22  ;;  %v2710_v55 = vmax.f32 %v2646_v56, 0.0 }
 0x266   :  { %3128 = vrsqrt.f32 %v2382_v11  ;;  %v2741_v31 = vmax.f32 %v2677_v41, 0.0  ;;  %v2319_v3 = vmul.f32 0.03125, %v2167_v0  ;;  %v2833_v35 = vsel %vm1722_vm2, %v2740_v23, 0.0  ;;  %v6776_v41 = vld [vmem:[#allocation59_spill] sm:$0xff] }
 0x267   :  { %v3113_v6 = vpop.eup %3112  ;;  %3130 = vrsqrt.f32 %v2413_v58  ;;  %v2742_v61 = vmax.f32 %v2678_v5, 0.0  ;;  %v2647_v53 = vadd.f32 %v6068_v9, %v2576_v44  ;;  %v2773_v25 = vsel %vm1722_vm2, %v2710_v55, 0.0 }
 0x268   :  { %v6173_v52 = vpop.xlane.xlu1 %2262  ;;  %v2506_v54 = vmul.f32 %v3113_v6, %v5828_v15  ;;  %3132 = vrsqrt.f32 %v2414_v39  ;;  %v2864_v28 = vsel %vm1722_vm2, %v2741_v31, 0.0  ;;  %v2320_v40 = vmul.f32 0.03125, %v2170_v1 }
 0x269   :  { %v6177_v50 = vpop.xlane.xlu0 %2265  ;;  %v3115_v37 = vpop.eup %3114  ;;  %v2383_v34 = vadd.f32 1e-05, %v2319_v3  ;;  %v2834_v62 = vadd.f32 %v2833_v35, %v6150_v19  ;;  %v6202_v29 = vadd.f32 %v2773_v25, %v6159_v47  ;;  %v6205_v22 = vadd.f32 %v2864_v28, %v6163_v7  ;;  %v6777_v7 = vld [vmem:[#allocation9_spill] sm:$0xff] }
 0x26a   :  { %v3117_v38 = vpop.eup %3116  ;;  %v2537_v15 = vmul.f32 %v3115_v37, %v5835_v60  ;;  %v2577_v2 = vmul.f32 %v6062_v51, %v2506_v54  ;;  %v2835_v60 = vsel %vm1722_vm2, %v2742_v61, 0.0  ;;  %v2711_v1 = vmax.f32 %v2647_v53, 0.0  ;;  %v6778_v3 = vld [vmem:[#allocation61_spill] sm:$0xff] }
 0x26b   :  { %v3119_v43 = vpop.eup %3118  ;;  %v2538_v48 = vmul.f32 %v3117_v38, %v5842_v46  ;;  %v2384_v6 = vadd.f32 1e-05, %v2320_v40  ;;  %v2351_v58 = vmul.f32 0.03125, %v6173_v52  ;;  %3134 = vrsqrt.f32 %v2383_v34 }
 0x26c   :  { %v2173_v59 = vpop.xlane.xlu1 %2172  ;;  %v3121_v8 = vpop.eup %3120  ;;  %v2507_v33 = vmul.f32 %v3119_v43, %v6775_v26  ;;  %v2608_v19 = vmul.f32 %v6062_v51, %v2537_v15  ;;  %v2648_v39 = vadd.f32 %v6068_v9, %v2577_v2  ;;  %v2352_v5 = vmul.f32 0.03125, %v6177_v50 }
 0x26d   :  { %v2176_v27 = vpop.xlane.xlu0 %2175  ;;  %v3123_v0 = vpop.eup %3122  ;;  %v2508_v36 = vmul.f32 %v3121_v8, %v5855_v24  ;;  %v2609_v44 = vmul.f32 %v6062_v51, %v2538_v48  ;;  %v2321_v31 = vmul.f32 0.03125, %v2173_v59  ;;  %v6221_v54 = vadd.f32 %v2835_v60, %v2834_v62  ;;  %v6779_v62 = vld [vmem:[#allocation10_spill] sm:$0xff] }
 0x26e   :  { %v3125_v12 = vpop.eup %3124  ;;  %v2539_v46 = vmul.f32 %v3123_v0, %v6776_v41  ;;  %v2578_v37 = vmul.f32 %v6062_v51, %v2507_v33  ;;  %v2804_v52 = vsel %vm1722_vm2, %v2711_v1, 0.0  ;;  %v2322_v8 = vmul.f32 0.03125, %v2176_v27 }
 0x26f   :  { %v3127_v56 = vpop.eup %3126  ;;  %v2540_v23 = vmul.f32 %v3125_v12, %v6777_v7  ;;  %v2579_v55 = vmul.f32 %v6062_v51, %v2508_v36  ;;  %3136 = vrsqrt.f32 %v2384_v6  ;;  %v2415_v53 = vadd.f32 1e-05, %v2351_v58 }
 0x270   :  { %v6187_v4 = vpop.xlane.xlu1 %2268  ;;  %v3129_v47 = vpop.eup %3128  ;;  %v2509_v43 = vmul.f32 %v3127_v56, %v6778_v3  ;;  %v2610_v61 = vmul.f32 %v6062_v51, %v2539_v46  ;;  %v2712_v25 = vmax.f32 %v2648_v39, 0.0  ;;  %v2679_v28 = vadd.f32 %v6068_v9, %v2608_v19 }
 0x271   :  { %v6189_v32 = vpop.xlane.xlu0 %2271  ;;  %v3131_v38 = vpop.eup %3130  ;;  %v2510_v50 = vmul.f32 %v3129_v47, %v5879_v10  ;;  %v2611_v59 = vmul.f32 %v6062_v51, %v2540_v23  ;;  %v2416_v15 = vadd.f32 1e-05, %v2352_v5  ;;  %v2680_v0 = vadd.f32 %v6068_v9, %v2609_v44 }
 0x272   :  { %v3133_v35 = vpop.eup %3132  ;;  %v2649_v2 = vadd.f32 %v6068_v9, %v2578_v37  ;;  %v2650_v27 = vadd.f32 %v6068_v9, %v2579_v55  ;;  %v2385_v34 = vadd.f32 1e-05, %v2321_v31  ;;  %v2580_v10 = vmul.f32 %v6062_v51, %v2509_v43 }
 0x273   :  { %v2541_v48 = vmul.f32 %v3131_v38, %v6779_v62  ;;  %v2542_v26 = vmul.f32 %v3133_v35, %v5891_v49  ;;  %v2386_v33 = vadd.f32 1e-05, %v2322_v8  ;;  %v2681_v36 = vadd.f32 %v6068_v9, %v2610_v61  ;;  %v6780_v61 = vld [vmem:[#allocation62_spill] sm:$0xff] }
 0x274   :  { %v6208_v11 = vpop.xlane.xlu1 %2178  ;;  %v2581_v60 = vmul.f32 %v6062_v51, %v2510_v50  ;;  %3138 = vrsqrt.f32 %v2415_v53  ;;  %v2353_v1 = vmul.f32 0.03125, %v6187_v4  ;;  %v2775_v56 = vsel %vm1722_vm2, %v2712_v25, 0.0 }
 0x275   :  { %v6213_v24 = vpop.xlane.xlu0 %2181  ;;  %v2743_v19 = vmax.f32 %v2679_v28, 0.0  ;;  %v2682_v41 = vadd.f32 %v6068_v9, %v2611_v59  ;;  %3140 = vrsqrt.f32 %v2416_v15  ;;  %v2744_v46 = vmax.f32 %v2680_v0, 0.0  ;;  %v3135_v49 = vpop.eup %3134  ;;  %v6781_v0 = vld [vmem:[#allocation11_spill] sm:$0xff] }
 0x276   :  { %v2713_v6 = vmax.f32 %v2649_v2, 0.0  ;;  %3142 = vrsqrt.f32 %v2385_v34  ;;  %v2354_v58 = vmul.f32 0.03125, %v6189_v32  ;;  %v2651_v47 = vadd.f32 %v6068_v9, %v2580_v10 }
 0x277   :  { %v2612_v39 = vmul.f32 %v6062_v51, %v2541_v48  ;;  %v2613_v7 = vmul.f32 %v6062_v51, %v2542_v26  ;;  %3144 = vrsqrt.f32 %v2386_v33  ;;  %v2714_v23 = vmax.f32 %v2650_v27, 0.0 }
 0x278   :  { %v6229_v40 = vpop.xlane.xlu1 %2274  ;;  %v2745_v5 = vmax.f32 %v2681_v36, 0.0  ;;  %v2652_v44 = vadd.f32 %v6068_v9, %v2581_v60  ;;  %v2417_v37 = vadd.f32 1e-05, %v2353_v1  ;;  %v2805_v31 = vadd.f32 %v2804_v52, %v6166_v20 }
 0x279   :  { %v6234_v12 = vpop.xlane.xlu0 %2277  ;;  %v2776_v38 = vadd.f32 %v2775_v56, %v6202_v29  ;;  %v2746_v32 = vmax.f32 %v2682_v41, 0.0  ;;  %v2323_v3 = vmul.f32 0.03125, %v6208_v11  ;;  %v3137_v43 = vpop.eup %3136  ;;  %v2866_v8 = vsel %vm1722_vm2, %v2743_v19, 0.0 }
 0x27a   :  { %v2837_v35 = vsel %vm1722_vm2, %v2744_v46, 0.0  ;;  %v2511_v50 = vmul.f32 %v3135_v49, %v6780_v61  ;;  %v2418_v53 = vadd.f32 1e-05, %v2354_v58  ;;  %v2806_v25 = vsel %vm1722_vm2, %v2713_v6, 0.0 }
 0x27b   :  { %v2715_v28 = vmax.f32 %v2651_v47, 0.0  ;;  %v2683_v59 = vadd.f32 %v6068_v9, %v2612_v39  ;;  %v2684_v20 = vadd.f32 %v6068_v9, %v2613_v7  ;;  %v2777_v29 = vsel %vm1722_vm2, %v2714_v23, 0.0 }
 0x27c   :  { %v2185_v4 = vpop.xlane.xlu1 %2184  ;;  %v2868_v52 = vsel %vm1722_vm2, %v2745_v5, 0.0  ;;  %v2716_v11 = vmax.f32 %v2652_v44, 0.0  ;;  %3146 = vrsqrt.f32 %v2417_v37  ;;  %v2839_v15 = vsel %vm1722_vm2, %v2746_v32, 0.0  ;;  %v6782_v5 = vld [vmem:[#allocation64_spill] sm:$0xff] }
 0x27d   :  { %v2188_v55 = vpop.xlane.xlu0 %2187  ;;  %v2512_v2 = vmul.f32 %v3137_v43, %v6781_v0  ;;  %v2387_v27 = vadd.f32 1e-05, %v2323_v3  ;;  %v2324_v34 = vmul.f32 0.03125, %v6213_v24  ;;  %v2867_v48 = vadd.f32 %v2866_v8, %v6205_v22 }
 0x27e   :  { %v3139_v62 = vpop.eup %3138  ;;  %v2838_v26 = vadd.f32 %v2837_v35, %v6221_v54  ;;  %v2582_v33 = vmul.f32 %v6062_v51, %v2511_v50  ;;  %3148 = vrsqrt.f32 %v2418_v53  ;;  %v2807_v1 = vadd.f32 %v2806_v25, %v2805_v31  ;;  %v2906_v31 = vld [vmem:[%s6447_s4] sm:$0xff]  ;;  %v2908_v25 = vld [vmem:[%s6447_s4 + $0x10] sm:$0xff] }
 0x27f   :  { %v3141_v60 = vpop.eup %3140  ;;  %v2808_v56 = vsel %vm1722_vm2, %v2715_v28, 0.0  ;;  %v2747_v19 = vmax.f32 %v2683_v59, 0.0  ;;  %v2748_v41 = vmax.f32 %v2684_v20, 0.0  ;;  %v2778_v6 = vadd.f32 %v2777_v29, %v2776_v38  ;;  %v2907_v38 = vld [vmem:[%s6447_s4 + $0x8] sm:$0xff]  ;;  %v2909_v28 = vld [vmem:[%s6447_s4 + $0x18] sm:$0xff] }
 0x280   :  { %v2281_v10 = vpop.xlane.xlu1 %2280  ;;  %v3143_v46 = vpop.eup %3142  ;;  %v6267_v58 = vadd.f32 %v2868_v52, %v2867_v48  ;;  %v6269_v24 = vadd.f32 %v2839_v15, %v2838_v26  ;;  %v2779_v22 = vsel %vm1722_vm2, %v2716_v11, 0.0  ;;  %v2583_v54 = vmul.f32 %v6062_v51, %v2512_v2  ;;  %v6783_v35 = vld [vmem:[#allocation12_spill] sm:$0xff] }
 0x281   :  { %v2284_v36 = vpop.xlane.xlu0 %2283  ;;  %v3145_v49 = vpop.eup %3144  ;;  %3150 = vrsqrt.f32 %v2387_v27  ;;  %v2388_v47 = vadd.f32 1e-05, %v2324_v34  ;;  %v2355_v39 = vmul.f32 0.03125, %v6229_v40  ;;  %v6274_v7 = vadd.f32 %v2808_v56, %v2807_v1 }
 0x282   :  { %v6277_v23 = vadd.f32 %v6068_v9, %v2582_v33  ;;  %v2543_v44 = vmul.f32 %v3139_v62, %v6782_v5  ;;  %v2325_v37 = vmul.f32 0.03125, %v2185_v4  ;;  %v6286_v32 = vadd.f32 %v2779_v22, %v2778_v6 }
 0x283   :  { %v6289_v40 = vsel %vm1722_vm2, %v2747_v19, 0.0  ;;  %v6292_v3 = vsel %vm1722_vm2, %v2748_v41, 0.0  ;;  %v2326_v43 = vmul.f32 0.03125, %v2188_v55  ;;  %v2544_v4 = vmul.f32 %v3141_v60, %v5915_v63  ;;  %v6784_v60 = vld [vmem:[#allocation65_spill] sm:$0xff] }
 0x284   :  { %v2191_v8 = vpop.xlane.xlu1 %2190  ;;  %v2513_v61 = vmul.f32 %v3143_v46, %v6783_v35  ;;  %v2514_v50 = vmul.f32 %v3145_v49, %v5927_v21  ;;  %v2654_v59 = vadd.f32 %v6068_v9, %v2583_v54  ;;  %3152 = vrsqrt.f32 %v2388_v47  ;;  %v6785_v54 = vld [vmem:[#allocation13_spill] sm:$0xff] }
 0x285   :  { %v2419_v55 = vadd.f32 1e-05, %v2355_v39  ;;  %v3245_v20 = vmov 0.0|0.0   ;;  %v3046_v63 = vpack.c.bf16 %v2907_v38, %v2906_v31  ;;  %v2717_v52 = vmax.f32 %v6277_v23, 0.0 }
 0x286   :  { %3045 = vmatprep.subr.bf16.mxu0 %v3245_v20  ;;  %v3147_v29 = vpop.eup %3146  ;;  %v2614_v21 = vmul.f32 %v6062_v51, %v2543_v44  ;;  %v2356_v11 = vmul.f32 0.03125, %v6234_v12  ;;  %v2389_v15 = vadd.f32 1e-05, %v2325_v37  ;;  %v2390_v0 = vadd.f32 1e-05, %v2326_v43 }
 0x287   :  { %v2357_v2 = vmul.f32 0.03125, %v2281_v10  ;;  %3047 = vmatpush3.bf16.msra.mxu0 %v3046_v63  ;;  %v3049_v27 = vpack.c.bf16 %v2909_v28, %v2908_v25  ;;  %v2615_v62 = vmul.f32 %v6062_v51, %v2544_v4  ;;  %v2584_v48 = vmul.f32 %v6062_v51, %v2513_v61  ;;  %v6323_v25 = vld [vmem:[%s6445_s2] ss:$0 sm:$0xff] }
 0x288   :  { %v2194_v53 = vpop.xlane.xlu0 %2193  ;;  %v3149_v34 = vpop.eup %3148  ;;  %v2585_v26 = vmul.f32 %v6062_v51, %v2514_v50  ;;  %v2327_v33 = vmul.f32 0.03125, %v2191_v8  ;;  %3048 = vmatprep.subr.bf16.mxu0 %v3245_v20  ;;  %v2545_v1 = vmul.f32 %v3147_v29, %v6784_v60  ;;  %3154 = vrsqrt.f32 %v2419_v55  ;;  %v6329_v20 = vld [vmem:[%s6446_s3] ss:$0 sm:$0xff] }
 0x289   :  { %v2328_v56 = vmul.f32 0.03125, %v2194_v53  ;;  %v2718_v12 = vmax.f32 %v2654_v59, 0.0  ;;  %v2420_v41 = vadd.f32 1e-05, %v2356_v11  ;;  %3156 = vrsqrt.f32 %v2389_v15 }
 0x28a   :  { %v2358_v10 = vmul.f32 0.03125, %v2284_v36  ;;  %v3247_v6 = vmov 0.0   ;;  %v2685_v49 = vadd.f32 %v6068_v9, %v2614_v21  ;;  %v2546_v47 = vmul.f32 %v3149_v34, %v6785_v54 }
 0x28b   :  { %3042 = vmatprep.mubr.msk.f32.mxu0 %vm3246_vm3, %v3247_v6  ;;  %v3151_v22 = vpop.eup %3150  ;;  %3158 = vrsqrt.f32 %v2390_v0  ;;  %v2421_v39 = vadd.f32 1e-05, %v2357_v2  ;;  %3050 = vmatpush3.bf16.msra.mxu0 %v3049_v27  ;;  %v2686_v23 = vadd.f32 %v6068_v9, %v2615_v62  ;;  %v2655_v5 = vadd.f32 %v6068_v9, %v2584_v48 }
 0x28c   :  { %v2391_v44 = vadd.f32 1e-05, %v2327_v33  ;;  %v2656_v36 = vadd.f32 %v6068_v9, %v2585_v26  ;;  %v2616_v31 = vmul.f32 %v6062_v51, %v2545_v1  ;;  %v2392_v38 = vadd.f32 1e-05, %v2328_v56 }
 0x28d   :  { %v2287_v19 = vpop.xlane.xlu1 %2286  ;;  %v2810_v8 = vsel %vm1722_vm2, %v2717_v52, 0.0  ;;  %v2515_v4 = vmul.f32 %v3151_v22, %v5945_v45  ;;  %3160 = vrsqrt.f32 %v2420_v41  ;;  %v2422_v35 = vadd.f32 1e-05, %v2358_v10 }
 0x28e   :  { %v2359_v37 = vmul.f32 0.03125, %v2287_v19  ;;  %v3153_v61 = vpop.eup %3152  ;;  %v2781_v50 = vsel %vm1722_vm2, %v2718_v12, 0.0  ;;  %v2749_v53 = vmax.f32 %v2685_v49, 0.0  ;;  %v2617_v9 = vmul.f32 %v6323_v25, %v2546_v47 }
 0x28f   :  { %3162 = vrsqrt.f32 %v2421_v39  ;;  %v2750_v28 = vmax.f32 %v2686_v23, 0.0  ;;  %v2719_v59 = vmax.f32 %v2655_v5, 0.0  ;;  %v2720_v45 = vmax.f32 %v2656_v36, 0.0 }
 0x290   :  { %3164 = vrsqrt.f32 %v2391_v44  ;;  %v2423_v55 = vadd.f32 1e-05, %v2359_v37  ;;  %v2687_v63 = vadd.f32 %v6329_v20, %v2616_v31  ;;  %v2586_v52 = vmul.f32 %v6323_v25, %v2515_v4 }
 0x291   :  { %3166 = vrsqrt.f32 %v2392_v38  ;;  %v2516_v21 = vmul.f32 %v3153_v61, %v5951_v57  ;;  %v2871_v0 = vadd.f32 %v6289_v40, %v6267_v58  ;;  %v2842_v2 = vadd.f32 %v6292_v3, %v6269_v24 }
 0x292   :  { %3168 = vrsqrt.f32 %v2422_v35  ;;  %v3155_v15 = vpop.eup %3154  ;;  %v2688_v27 = vadd.f32 %v6329_v20, %v2617_v9  ;;  %v2811_v48 = vadd.f32 %v2810_v8, %v6274_v7  ;;  %v2782_v26 = vadd.f32 %v2781_v50, %v6286_v32 }
 0x293   :  { %v2290_v46 = vpop.xlane.xlu0 %2289  ;;  %v3157_v62 = vpop.eup %3156  ;;  %v2872_v33 = vsel %vm1722_vm2, %v2749_v53, 0.0  ;;  %3170 = vrsqrt.f32 %v2423_v55  ;;  %v2843_v60 = vsel %vm1722_vm2, %v2750_v28, 0.0  ;;  %v2812_v1 = vsel %vm1722_vm2, %v2719_v59, 0.0 }
 0x294   :  { %v2360_v43 = vmul.f32 0.03125, %v2290_v46  ;;  %v2783_v58 = vsel %vm1722_vm2, %v2720_v45, 0.0  ;;  %v2751_v40 = vmax.f32 %v2687_v63, 0.0  ;;  %v2657_v3 = vadd.f32 %v6329_v20, %v2586_v52 }
 0x295   :  { %v3159_v57 = vpop.eup %3158  ;;  %v2587_v56 = vmul.f32 %v6323_v25, %v2516_v21  ;;  %v2873_v19 = vadd.f32 %v2872_v33, %v2871_v0  ;;  %v2752_v32 = vmax.f32 %v2688_v27, 0.0  ;;  %v2547_v12 = vmul.f32 %v3155_v15, %v5957_v17  ;;  %v6787_v15 = vld [vmem:[#allocation14_spill] sm:$0xff] }
 0x296   :  { %v2424_v29 = vadd.f32 1e-05, %v2360_v43  ;;  %v2517_v46 = vmul.f32 %v3157_v62, %v5969_v14  ;;  %v2518_v6 = vmul.f32 %v3159_v57, %v5975_v42  ;;  %v2844_v54 = vadd.f32 %v2843_v60, %v2842_v2  ;;  %v6786_v43 = vld [vmem:[#allocation67_spill] sm:$0xff] }
 0x297   :  { %v3161_v10 = vpop.eup %3160  ;;  %v2813_v47 = vadd.f32 %v2812_v1, %v2811_v48  ;;  %v2784_v39 = vadd.f32 %v2783_v58, %v2782_v26  ;;  %v2874_v37 = vsel %vm1722_vm2, %v2751_v40, 0.0  ;;  %v2721_v36 = vmax.f32 %v2657_v3, 0.0  ;;  %v6788_v58 = vld [vmem:[#allocation15_spill] sm:$0xff] }
 0x298   :  { %v2197_v51 = vpop.xlane.xlu1 %2196  ;;  %3172 = vrsqrt.f32 %v2424_v29  ;;  %v2658_v17 = vadd.f32 %v6329_v20, %v2587_v56  ;;  %v2845_v14 = vsel %vm1722_vm2, %v2752_v32, 0.0  ;;  %v2548_v42 = vmul.f32 %v3161_v10, %v6786_v43  ;;  %v6789_v56 = vld [vmem:[#allocation16_spill] sm:$0xff] }
 0x299   :  { %v2329_v11 = vmul.f32 0.03125, %v2197_v51  ;;  %v3163_v49 = vpop.eup %3162  ;;  %v2618_v35 = vmul.f32 %v6323_v25, %v2547_v12  ;;  %v2588_v61 = vmul.f32 %v6323_v25, %v2517_v46  ;;  %v2589_v50 = vmul.f32 %v6323_v25, %v2518_v6 }
 0x29a   :  { %v3165_v44 = vpop.eup %3164  ;;  %v6357_v9 = vadd.f32 %v2874_v37, %v2873_v19  ;;  %v6360_v45 = vadd.f32 %v2845_v14, %v2844_v54  ;;  %v2814_v63 = vsel %vm1722_vm2, %v2721_v36, 0.0  ;;  %v2722_v29 = vmax.f32 %v2658_v17, 0.0 }
 0x29b   :  { %v2393_v7 = vadd.f32 1e-05, %v2329_v11  ;;  %v3167_v38 = vpop.eup %3166  ;;  %v2519_v51 = vmul.f32 %v3165_v44, %v5999_v16  ;;  %v2549_v11 = vmul.f32 %v3163_v49, %v5981_v18  ;;  %v2689_v27 = vadd.f32 %v6329_v20, %v2618_v35 }
 0x29c   :  { %v3169_v4 = vpop.eup %3168  ;;  %v2520_v52 = vmul.f32 %v3167_v38, %v6006_v30  ;;  %v2619_v16 = vmul.f32 %v6323_v25, %v2548_v42  ;;  %v2660_v62 = vadd.f32 %v6329_v20, %v2589_v50  ;;  %v2815_v57 = vadd.f32 %v2814_v63, %v2813_v47 }
 0x29d   :  { %v2200_v34 = vpop.xlane.xlu0 %2199  ;;  %3174 = vrsqrt.f32 %v2393_v7  ;;  %v3171_v55 = vpop.eup %3170  ;;  %v2550_v0 = vmul.f32 %v3169_v4, %v6787_v15  ;;  %v2590_v26 = vmul.f32 %v6323_v25, %v2519_v51  ;;  %v2785_v60 = vsel %vm1722_vm2, %v2722_v29, 0.0 }
 0x29e   :  { %v2330_v41 = vmul.f32 0.03125, %v2200_v34  ;;  %v2659_v34 = vadd.f32 %v6329_v20, %v2588_v61  ;;  %v2551_v30 = vmul.f32 %v3171_v55, %v6012_v13  ;;  %v2591_v1 = vmul.f32 %v6323_v25, %v2520_v52 }
 0x29f   :  { %v2620_v40 = vmul.f32 %v6323_v25, %v2549_v11  ;;  %v2621_v3 = vmul.f32 %v6323_v25, %v2550_v0  ;;  %v2753_v32 = vmax.f32 %v2689_v27, 0.0  ;;  %v2690_v13 = vadd.f32 %v6329_v20, %v2619_v16  ;;  %v6793_v27 = vld [vmem:[#allocation20_spill] sm:$0xff] }
 0x2a0   :  { %v2394_v23 = vadd.f32 1e-05, %v2330_v41  ;;  %v2723_v12 = vmax.f32 %v2659_v34, 0.0  ;;  %v2724_v41 = vmax.f32 %v2660_v62, 0.0  ;;  %v2661_v46 = vadd.f32 %v6329_v20, %v2590_v26 }
 0x2a1   :  { %v2622_v6 = vmul.f32 %v6323_v25, %v2551_v30  ;;  %v2786_v54 = vadd.f32 %v2785_v60, %v2784_v39  ;;  %v2662_v47 = vadd.f32 %v6329_v20, %v2591_v1  ;;  %v2691_v37 = vadd.f32 %v6329_v20, %v2620_v40 }
 0x2a2   :  { %v2293_v24 = vpop.xlane.xlu1 %2292  ;;  %3176 = vrsqrt.f32 %v2394_v23  ;;  %v3173_v21 = vpop.eup %3172  ;;  %v2692_v36 = vadd.f32 %v6329_v20, %v2621_v3  ;;  %v2876_v14 = vsel %vm1722_vm2, %v2753_v32, 0.0  ;;  %v2754_v43 = vmax.f32 %v2690_v13, 0.0 }
 0x2a3   :  { %v2361_v22 = vmul.f32 0.03125, %v2293_v24  ;;  %v2552_v24 = vmul.f32 %v3173_v21, %v6788_v58  ;;  %v2816_v42 = vsel %vm1722_vm2, %v2723_v12, 0.0  ;;  %v2787_v4 = vsel %vm1722_vm2, %v2724_v41, 0.0 }
 0x2a4   :  { %v2725_v35 = vmax.f32 %v2661_v46, 0.0  ;;  %v2693_v61 = vadd.f32 %v6329_v20, %v2622_v6  ;;  %v2755_v29 = vmax.f32 %v2691_v37, 0.0  ;;  %v2756_v52 = vmax.f32 %v2692_v36, 0.0 }
 0x2a5   :  { %v2425_v31 = vadd.f32 1e-05, %v2361_v22  ;;  %v2623_v23 = vmul.f32 %v6323_v25, %v2552_v24  ;;  %v2847_v15 = vsel %vm1722_vm2, %v2754_v43, 0.0  ;;  %v2817_v34 = vadd.f32 %v2816_v42, %v2815_v57 }
 0x2a6   :  { %v2296_v5 = vpop.xlane.xlu0 %2295  ;;  %v2788_v62 = vadd.f32 %v2787_v4, %v2786_v54  ;;  %v2757_v26 = vmax.f32 %v2693_v61, 0.0  ;;  %v2878_v58 = vsel %vm1722_vm2, %v2755_v29, 0.0  ;;  %v2849_v24 = vsel %vm1722_vm2, %v2756_v52, 0.0 }
 0x2a7   :  { %v2362_v8 = vmul.f32 0.03125, %v2296_v5  ;;  %3178 = vrsqrt.f32 %v2425_v31  ;;  %v3175_v18 = vpop.eup %3174  ;;  %v6790_v5 = vld [vmem:[#allocation17_spill] sm:$0xff]  ;;  %v6791_v31 = vld [vmem:[#allocation18_spill] sm:$0xff]  ;;  %v2694_v51 = vadd.f32 %v6329_v20, %v2623_v23  ;;  %v2877_v13 = vadd.f32 %v2876_v14, %v6357_v9 }
 0x2a8   :  { %v2521_v7 = vmul.f32 %v3175_v18, %v6789_v56  ;;  %v2848_v12 = vadd.f32 %v2847_v15, %v6360_v45  ;;  %v2880_v46 = vsel %vm1722_vm2, %v2757_v26, 0.0 }
 0x2a9   :  { %v2203_v53 = vpop.xlane.xlu1 %2202  ;;  %v2426_v28 = vadd.f32 1e-05, %v2362_v8  ;;  %v2879_v54 = vadd.f32 %v2878_v58, %v2877_v13 }
 0x2aa   :  { %v2331_v59 = vmul.f32 0.03125, %v2203_v53  ;;  %v2592_v22 = vmul.f32 %v6323_v25, %v2521_v7  ;;  %v2726_v53 = vmax.f32 %v2662_v47, 0.0  ;;  %v6794_v7 = vld [vmem:[#allocation21_spill] sm:$0xff]  ;;  %v2850_v47 = vadd.f32 %v2849_v24, %v2848_v12 }
 0x2ab   :  { %3180 = vrsqrt.f32 %v2426_v28  ;;  %v2881_v36 = vadd.f32 %v2880_v46, %v2879_v54  ;;  %v6795_v24 = vlaneseq }
 0x2ac   :  { %v2395_v2 = vadd.f32 1e-05, %v2331_v59  ;;  %v3177_v10 = vpop.eup %3176  ;;  %v2663_v17 = vadd.f32 %v6329_v20, %v2592_v22  ;;  %v6792_v59 = vld [vmem:[#allocation19_spill] sm:$0xff]  ;;  %v2789_v30 = vsel %vm1722_vm2, %v2726_v53, 0.0 }
 0x2ad   :  { %v2299_v48 = vpop.xlane.xlu1 %2298  ;;  %v2522_v44 = vmul.f32 %v3177_v10, %v6790_v5  ;;  %v2790_v10 = vadd.f32 %v2789_v30, %v2788_v62 }
 0x2ae   :  { %3182 = vrsqrt.f32 %v2395_v2  ;;  %v2363_v33 = vmul.f32 0.03125, %v2299_v48  ;;  %v2727_v21 = vmax.f32 %v2663_v17, 0.0  ;;  %v2818_v48 = vsel %vm1722_vm2, %v2725_v35, 0.0 }
 0x2af   :  { %v2593_v39 = vmul.f32 %v6323_v25, %v2522_v44  ;;  %v2819_v41 = vadd.f32 %v2818_v48, %v2817_v34 }
 0x2b0   :  { %v2427_v19 = vadd.f32 1e-05, %v2363_v33  ;;  %v2758_v33 = vmax.f32 %v2694_v51, 0.0  ;;  %v2820_v40 = vsel %vm1722_vm2, %v2727_v21, 0.0 }
 0x2b1   :  { %v3179_v49 = vpop.eup %3178  ;;  %v2664_v28 = vadd.f32 %v6329_v20, %v2593_v39  ;;  %v2821_v5 = vadd.f32 %v2820_v40, %v2819_v41  ;;  %v3005_v40 = vand.u32 127, %v6795_v24 }
 0x2b2   :  { %3184 = vrsqrt.f32 %v2427_v19  ;;  %v2553_v38 = vmul.f32 %v3179_v49, %v6791_v31  ;;  %v2851_v6 = vsel %vm1722_vm2, %v2758_v33, 0.0 }
 0x2b3   :  { %v2728_v0 = vmax.f32 %v2664_v28, 0.0  ;;  %v2852_v31 = vadd.f32 %v2851_v6, %v2850_v47  ;;  %vm3006_vm5 = vcmp.lt.s32.totalorder %v3005_v40, 8 }
 0x2b4   :  { %v2624_v50 = vmul.f32 %v6323_v25, %v2553_v38 }
 0x2b5   :  { %v3181_v8 = vpop.eup %3180  ;;  %v2791_v32 = vsel %vm1722_vm2, %v2728_v0, 0.0 }
 0x2b6   :  { %v2554_v55 = vmul.f32 %v3181_v8, %v6792_v59  ;;  %v2695_v11 = vadd.f32 %v6329_v20, %v2624_v50  ;;  %v2792_v23 = vadd.f32 %v2791_v32, %v2790_v10 }
 0x2b8   :  { %v3183_v63 = vpop.eup %3182  ;;  %v2625_v2 = vmul.f32 %v6323_v25, %v2554_v55  ;;  %v2759_v3 = vmax.f32 %v2695_v11, 0.0 }
 0x2b9   :  { %v2523_v16 = vmul.f32 %v3183_v63, %v6793_v27 }
 0x2ba   :  { %v2696_v18 = vadd.f32 %v6329_v20, %v2625_v2  ;;  %v2882_v44 = vsel %vm1722_vm2, %v2759_v3, 0.0 }
 0x2bb   :  { %v2594_v60 = vmul.f32 %v6323_v25, %v2523_v16  ;;  %v2883_v43 = vadd.f32 %v2882_v44, %v2881_v36  ;;  %v3027_v16 = vld [vmem:[%s6448_s5] ss:$0 sm:$0xff]  ;;  %s3216_s5 = scalar_lea.vmem %s3017_s7, 32 }
 0x2bc   :  { %v3185_v1 = vpop.eup %3184  ;;  %v2760_v57 = vmax.f32 %v2696_v18, 0.0  ;;  %p3217_p8 = scmp.ne.s32.totalorder %s3017_s7, %s3216_s5  ;;  %p3222_p10 = scmp.lt.s32.totalorder %s3216_s5, %s3216_s5 }
 0x2bd   :  { %v2665_v56 = vadd.f32 %v6329_v20, %v2594_v60  ;;  %v2555_v19 = vmul.f32 %v3185_v1, %v6794_v7 }
 0x2be   :  { %v2853_v37 = vsel %vm1722_vm2, %v2760_v57, 0.0  ;;  %p3223_p11 = por %p3222_p10, %p3221_p9 }
 0x2bf   :  { %v2729_v22 = vmax.f32 %v2665_v56, 0.0  ;;  %v2626_v49 = vmul.f32 %v6323_v25, %v2555_v19  ;;  %v2854_v14 = vadd.f32 %v2853_v37, %v2852_v31  ;;  %v2886_v25 = vsel %vm1722_vm2, %v2792_v23, 0.0 }
 0x2c0   :  { %p3224_p12 = pnand %p3223_p11, %p3217_p8 }
 0x2c1   :  { %v2697_v9 = vadd.f32 %v6329_v20, %v2626_v49  ;;  %v2822_v45 = vsel %vm1722_vm2, %v2729_v22, 0.0  ;;  %v2895_v61 = vsel %vm1722_vm2, %v2854_v14, 0.0 }
 0x2c2   :  { %v2823_v17 = vadd.f32 %v2822_v45, %v2821_v5 }
 0x2c3   :  { %v2761_v38 = vmax.f32 %v2697_v9, 0.0 }
 0x2c4   :  { %v2887_v42 = vsel %vm1722_vm2, %v2823_v17, 0.0 }
 0x2c5   :  { %v2884_v39 = vsel %vm1722_vm2, %v2761_v38, 0.0  ;;  %v2888_v8 = vadd.f32 %v2887_v42, %v2886_v25 }
 0x2c6   :  { %v2885_v4 = vadd.f32 %v2884_v39, %v2883_v43 }
 0x2c7   :  { %v2889_v35 = vrot.slane %v2888_v8, 4 }
 0x2c8   :  { %v2896_v20 = vsel %vm1722_vm2, %v2885_v4, 0.0 }
 0x2c9   :  { %v2890_v50 = vadd.f32 %v2889_v35, %v2888_v8  ;;  %v2897_v53 = vadd.f32 %v2896_v20, %v2895_v61 }
 0x2cb   :  { %v2891_v51 = vrot.slane %v2890_v50, 2  ;;  %v2898_v28 = vrot.slane %v2897_v53, 4 }
 0x2cd   :  { %v2892_v59 = vadd.f32 %v2891_v51, %v2890_v50  ;;  %v2899_v55 = vadd.f32 %v2898_v28, %v2897_v53 }
 0x2cf   :  { %v2893_v63 = vrot.slane %v2892_v59, 1  ;;  %v2900_v29 = vrot.slane %v2899_v55, 2 }
 0x2d1   :  { %v2901_v52 = vadd.f32 %v2900_v29, %v2899_v55  ;;  %v2894_v21 = vadd.f32 %v2893_v63, %v2892_v59 }
 0x2d3   :  { %v2902_v11 = vrot.slane %v2901_v52, 1  ;;  %v2904_v0 = vmul.f32 0.00390625, %v2894_v21 }
 0x2d5   :  { %v2903_v15 = vadd.f32 %v2902_v11, %v2901_v52 }
 0x2d7   :  { %v2905_v2 = vmul.f32 0.00390625, %v2903_v15 }
 0x2d9   :  { %v2920_v27 = vsel %vm2919_vm4, %v2905_v2, %v2904_v0 }
 0x2da   :  { %3043 = vmatmul.mubr.msk.f32.vlgmr.msra.gmra.mrb[0].mxu0 %vm1722_vm2, %v2920_v27 }
 0x3ad   :  { %v2989_v34 = vpop.f32.mrb[0].mxu0 }
 0x3ae   :  { %v2990_v62 = vadd.f32 %v3027_v16, %v2989_v34  ;;  %v3044_v48 = vpop.f32.mrb[1].mxu0 }
 0x3b0   :  { %v2993_v26 = vsub.f32 0.0, %v2990_v62  ;;  %v2999_v30 = vand.u32 2147483647, %v2990_v62 }
 0x3b2   :  { %v2994_v33 = vmul.f32 1.442695, %v2993_v26  ;;  %v3000_v18 = vadd.f32 1.0, %v2999_v30 }
 0x3b4   :  { %3186 = vpow2.f32 %v2994_v33 }
 0x3b5   :  { %3188 = vrcp.f32 %v3000_v18 }
 0x3be   :  { %v3187_v60 = vpop.eup %3186 }
 0x3bf   :  { %v2996_v1 = vadd.f32 1.0, %v3187_v60  ;;  %v3189_v58 = vpop.eup %3188 }
 0x3c0   :  { %v3002_v3 = vmul.f32 %v3189_v58, %v2990_v62 }
 0x3c1   :  { %3190 = vrcp.f32 %v2996_v1 }
 0x3c2   :  { %v3003_v57 = vmul.f32 0.6981317, %v3002_v3 }
 0x3cb   :  { %v3191_v56 = vpop.eup %3190 }
 0x3cc   :  { %v3007_v7 = vsel %vm3006_vm5, %v3191_v56, %v3003_v57 }
 0x3cd   :  { %3009 = vst.msk [vmem:[#allocation5] sm:$0x3] %vm3008_vm6, %v3007_v7 }
 0x3ce   :  { %3227 = shalt.err (!%p3224_p12)
}
 0x3cf   :  { %s3228_s10 = scalar_lea.hbm %s6449_s6, 32 }
 0x3d0   :  { %p3229_p13 = scmp.ne.s32.totalorder %s6449_s6, %s3228_s10  ;;  %p3232_p0 = scmp.lt.u32.totalorder %s3228_s10, %s6449_s6 }
 0x3d2   :  { %p3234_p1 = pnand %p3232_p0, %p3229_p13 }
 0x3d4   :  { %3237 = shalt.err (!%p3234_p1)
}
 0x3d5   :  { %3019 = dma.vmem_to_hbm [thread:$0]  %s3017_s7, 32, %s6449_s6, [#allocation4]  }
 0x3d6   :  { %3240 = dma.done.wait [#allocation4], 32  }
 0x3d7   :  { %3241 = vsyncadd [#allocation4], 4294967264 }
 0x3d8   :  { %3023 = vsyncpa [#allocation3], 1 }
 0x3d9   :  { %3024 = vsyncpa [#allocation4], 1 }

</bundles_post_ra>
